<compile_context>
chip_gen: v6e
topology: v6e:2x2x1
jax: 0.10.0
libtpu: 0.0.40
codegen_flags: <defaults>
</compile_context>

<pallas_src>
import functools

import jax
import jax.numpy as jnp
from jax.experimental import pallas as pl
from jax.experimental.pallas import tpu as pltpu


# ------------------------- fused GRU-stack + FC kernel -----------------------
def fused_gru_fc_kernel(*refs, S, B, H, n_layers):
    """Single kernel: n_layers GRU layers over the whole sequence + FC head.

    Input refs (all VMEM, full arrays):
      refs[0]                 : x2d      (S*B, Din)   time-major flattened input
      per layer l (5 refs)    : wih_t    (Din_l, 3H)  input->gates, transposed (r|z|n)
                                whh_r_t  (H, H)
                                whh_z_t  (H, H)
                                whh_n_t  (H, H)
                                b        (4, H)  rows = [b_ir+b_hr, b_iz+b_hz, b_in, b_hn]
      refs[-2 of inputs]      : wfc_t    (H, DP)      fc weight, transposed, lane-padded
      refs[-1 of inputs]      : bfc      (1, DP)      fc bias, lane-padded
    Output refs:
      out_ref                 : (S*B, DP)  fc applied to every timestep/batch row
      hid_ref                 : (n_layers, B, H) final hidden state per layer
    Scratch:
      hall                    : VMEM (S*B, H) per-timestep outputs of current layer
    """
    n_in = 1 + 5 * n_layers + 2
    x_ref = refs[0]
    wfc_ref = refs[n_in - 2]
    bfc_ref = refs[n_in - 1]
    out_ref = refs[n_in]
    hid_ref = refs[n_in + 1]
    hall = refs[n_in + 2]

    f32 = jnp.float32
    x_all = x_ref[...]                                   # (S*B, Din)

    for l in range(n_layers):
        base = 1 + 5 * l
        wih_ref = refs[base + 0]
        whhr_ref = refs[base + 1]
        whhz_ref = refs[base + 2]
        whhn_ref = refs[base + 3]
        b_ref = refs[base + 4]

        # ---- hoisted input projection: ONE well-shaped matmul per layer ----
        gx = jnp.dot(x_all, wih_ref[...], preferred_element_type=f32)  # (S*B, 3H)
        bvals = b_ref[...]                                             # (4, H)
        gx_r = gx[:, 0 * H:1 * H] + bvals[0:1, :]    # bias folded in, once
        gx_z = gx[:, 1 * H:2 * H] + bvals[1:2, :]
        gx_n = gx[:, 2 * H:3 * H] + bvals[2:3, :]
        b_hn = bvals[3:4, :]                         # stays with the hidden n-gate

        # Hidden->gate weights, loaded into vregs once per layer (per-gate, so
        # the inner loop never lane-slices a packed (B, 3H) tensor).
        w_r = whhr_ref[...]
        w_z = whhz_ref[...]
        w_n = whhn_ref[...]

        h = jnp.zeros((B, H), f32)
        # Fully unrolled time loop (S static & small).
        for t in range(S):
            lo = t * B
            r = jax.nn.sigmoid(gx_r[lo:lo + B, :] +
                               jnp.dot(h, w_r, preferred_element_type=f32))
            z = jax.nn.sigmoid(gx_z[lo:lo + B, :] +
                               jnp.dot(h, w_z, preferred_element_type=f32))
            gh_n = jnp.dot(h, w_n, preferred_element_type=f32) + b_hn
            n = jnp.tanh(gx_n[lo:lo + B, :] + r * gh_n)
            h = (1.0 - z) * n + z * h
            # Store per-timestep output; off the recurrence critical path.
            hall[pl.ds(lo, B), :] = h

        hid_ref[l] = h                                # final hidden of layer l
        x_all = hall[...]                             # next layer's input (value)

    # ---- FC head, fused; lane-dense (DP is a multiple of 128) output -------
    # Apply to every (t, b) row; the wrapper selects the last-batch rows.
    out_ref[...] = (jnp.dot(x_all, wfc_ref[...], preferred_element_type=f32)
                    + bfc_ref[...]).astype(out_ref.dtype)


# ----------------------------- wrapper / forward ------------------------------
def _prep_gru_layer(w_ih, w_hh, b_ih, b_hh, H):
    """Repack PyTorch-layout GRU weights for the kernel."""
    wih_t = w_ih.T.astype(jnp.float32)                      # (Din, 3H)
    whh_r_t = w_hh[0 * H:1 * H].T.astype(jnp.float32)       # (H, H)
    whh_z_t = w_hh[1 * H:2 * H].T.astype(jnp.float32)
    whh_n_t = w_hh[2 * H:3 * H].T.astype(jnp.float32)
    b = jnp.stack([b_ih[0 * H:1 * H] + b_hh[0 * H:1 * H],   # r: combined
                   b_ih[1 * H:2 * H] + b_hh[1 * H:2 * H],   # z: combined
                   b_ih[2 * H:3 * H],                       # n: input-side
                   b_hh[2 * H:3 * H]], axis=0).astype(jnp.float32)  # n: hidden-side
    return wih_t, whh_r_t, whh_z_t, whh_n_t, b


@functools.partial(jax.jit, static_argnames=("n_layers",))
def model_forward(x_bf, params, n_layers):
    """x_bf: (B, S, input_size) batch_first, like the PyTorch module."""
    B, S, Din = x_bf.shape
    H = params["gru_0"][1].shape[1]
    w_fc, b_fc = params["fc"]
    Dout = w_fc.shape[0]
    DP = ((Dout + 127) // 128) * 128                         # lane-dense FC columns

    # Tiny one-time relayout to time-major, flattened for the hoisted matmul.
    x2d = jnp.transpose(x_bf, (1, 0, 2)).reshape(S * B, Din).astype(jnp.float32)

    inputs = [x2d]
    for l in range(n_layers):
        inputs.extend(_prep_gru_layer(*params[f"gru_{l}"], H))
    wfc_t = jnp.zeros((H, DP), jnp.float32).at[:, :Dout].set(w_fc.T)
    bfc = jnp.zeros((1, DP), jnp.float32).at[:, :Dout].set(b_fc)
    inputs += [wfc_t, bfc]

    kernel = functools.partial(fused_gru_fc_kernel, S=S, B=B, H=H,
                               n_layers=n_layers)
    out_full, hidden = pl.pallas_call(
        kernel,
        out_shape=(jax.ShapeDtypeStruct((S * B, DP), jnp.float32),
                   jax.ShapeDtypeStruct((n_layers, B, H), jnp.float32)),
        in_specs=[pl.BlockSpec(memory_space=pltpu.MemorySpace.VMEM)] * len(inputs),
        out_specs=(pl.BlockSpec(memory_space=pltpu.MemorySpace.VMEM),
                   pl.BlockSpec(memory_space=pltpu.MemorySpace.VMEM)),
        scratch_shapes=[pltpu.VMEM((S * B, H), jnp.float32)],
    )(*inputs)

    # PyTorch: fc(out[-1, :]) with batch_first output -> last batch element's
    # per-timestep states.  Rows (t*B + B-1) of the time-major output.
    out = out_full[B - 1::B, :Dout]                          # (S, Dout)
    return out, hidden


# --------------------------- pure-JAX reference ------------------------------
def reference_forward(x_bf, params, n_layers):
    x_tm = jnp.transpose(x_bf, (1, 0, 2))
    S, B, _ = x_tm.shape
    layer_in = x_tm
    finals = []
    for l in range(n_layers):
        w_ih, w_hh, b_ih, b_hh = params[f"gru_{l}"]
        H = w_hh.shape[1]
        h = jnp.zeros((B, H), jnp.float32)
        outs = []
        for t in range(S):
            gx = layer_in[t] @ w_ih.T
            gh = h @ w_hh.T
            r = jax.nn.sigmoid(gx[:, :H] + b_ih[:H] + gh[:, :H] + b_hh[:H])
            z = jax.nn.sigmoid(gx[:, H:2 * H] + b_ih[H:2 * H]
                               + gh[:, H:2 * H] + b_hh[H:2 * H])
            n = jnp.tanh(gx[:, 2 * H:] + b_ih[2 * H:]
                         + r * (gh[:, 2 * H:] + b_hh[2 * H:]))
            h = (1.0 - z) * n + z * h
            outs.append(h)
        layer_in = jnp.stack(outs, axis=0)
        finals.append(h)
    hidden = jnp.stack(finals, axis=0)
    w_fc, b_fc = params["fc"]
    out = layer_in[:, -1, :] @ w_fc.T + b_fc
    return out, hidden


# ---------------------------------- main --------------------------------------
if __name__ == "__main__":
    input_size, output_size = 100, 10
    hidden_dim, n_layers = 32, 2
    batch, seq = 2, 8

    key = jax.random.PRNGKey(0)
    keys = jax.random.split(key, 16)
    ki = iter(keys)

    # Deterministic param init (PyTorch-style uniform(-1/sqrt(H), 1/sqrt(H)))
    params = {}
    k_gru = 1.0 / jnp.sqrt(hidden_dim)
    for l in range(n_layers):
        din = input_size if l == 0 else hidden_dim
        w_ih = jax.random.uniform(next(ki), (3 * hidden_dim, din),
                                  minval=-k_gru, maxval=k_gru, dtype=jnp.float32)
        w_hh = jax.random.uniform(next(ki), (3 * hidden_dim, hidden_dim),
                                  minval=-k_gru, maxval=k_gru, dtype=jnp.float32)
        b_ih = jax.random.uniform(next(ki), (3 * hidden_dim,),
                                  minval=-k_gru, maxval=k_gru, dtype=jnp.float32)
        b_hh = jax.random.uniform(next(ki), (3 * hidden_dim,),
                                  minval=-k_gru, maxval=k_gru, dtype=jnp.float32)
        params[f"gru_{l}"] = (w_ih, w_hh, b_ih, b_hh)
    k_fc = 1.0 / jnp.sqrt(hidden_dim)
    w_fc = jax.random.uniform(next(ki), (output_size, hidden_dim),
                              minval=-k_fc, maxval=k_fc, dtype=jnp.float32)
    b_fc = jax.random.uniform(next(ki), (output_size,),
                              minval=-k_fc, maxval=k_fc, dtype=jnp.float32)
    params["fc"] = (w_fc, b_fc)

    x = jax.random.normal(next(ki), (batch, seq, input_size), dtype=jnp.float32)

    out, hidden = model_forward(x, params, n_layers)
    out, hidden = jax.block_until_ready((out, hidden))

    out_ref, hidden_ref = reference_forward(x, params, n_layers)
    assert out.shape == (seq, output_size)
    assert hidden.shape == (n_layers, batch, hidden_dim)
    assert jnp.allclose(out, out_ref, atol=1e-3, rtol=1e-3)
    assert jnp.allclose(hidden, hidden_ref, atol=1e-3, rtol=1e-3)

    print("KERNEL_OK")
</pallas_src>

<mosaic_0001>
module attributes {stable_mosaic.version = 11 : i64} {
  func.func @fused_gru_fc_kernel(%arg0: memref<16x100xf32, #tpu.memory_space<vmem>>, %arg1: memref<100x96xf32, #tpu.memory_space<vmem>>, %arg2: memref<32x32xf32, #tpu.memory_space<vmem>>, %arg3: memref<32x32xf32, #tpu.memory_space<vmem>>, %arg4: memref<32x32xf32, #tpu.memory_space<vmem>>, %arg5: memref<4x32xf32, #tpu.memory_space<vmem>>, %arg6: memref<32x96xf32, #tpu.memory_space<vmem>>, %arg7: memref<32x32xf32, #tpu.memory_space<vmem>>, %arg8: memref<32x32xf32, #tpu.memory_space<vmem>>, %arg9: memref<32x32xf32, #tpu.memory_space<vmem>>, %arg10: memref<4x32xf32, #tpu.memory_space<vmem>>, %arg11: memref<32x128xf32, #tpu.memory_space<vmem>>, %arg12: memref<1x128xf32, #tpu.memory_space<vmem>>, %arg13: memref<16x128xf32, #tpu.memory_space<vmem>>, %arg14: memref<2x2x32xf32, #tpu.memory_space<vmem>>, %arg15: memref<16x32xf32, #tpu.memory_space<vmem>>) attributes {dimension_semantics = [], scalar_prefetch = 0 : i64, scratch_operands = 1 : i64, tpu.core_type = #tpu.core_type<tc>} {
    %c0 = arith.constant 0 : index
    %c0_0 = arith.constant 0 : index
    %0 = vector.load %arg0[%c0, %c0_0] : memref<16x100xf32, #tpu.memory_space<vmem>>, vector<16x100xf32>
    %c0_1 = arith.constant 0 : index
    %c0_2 = arith.constant 0 : index
    %1 = vector.load %arg1[%c0_1, %c0_2] : memref<100x96xf32, #tpu.memory_space<vmem>>, vector<100x96xf32>
    %cst = arith.constant dense<0.000000e+00> : vector<16x96xf32>
    %2 = tpu.matmul %0, %1, %cst {dimension_numbers = #tpu.dot_dimension_numbers<[1], [0], [0], [1], [0, 0, 1, 1], [], []>} : vector<16x100xf32>, vector<100x96xf32>, vector<16x96xf32> -> vector<16x96xf32>
    %c0_3 = arith.constant 0 : index
    %c0_4 = arith.constant 0 : index
    %3 = vector.load %arg5[%c0_3, %c0_4] : memref<4x32xf32, #tpu.memory_space<vmem>>, vector<4x32xf32>
    %4 = vector.extract_strided_slice %2 {offsets = [0, 0], sizes = [16, 32], strides = [1, 1]} : vector<16x96xf32> to vector<16x32xf32>
    %5 = vector.extract_strided_slice %3 {offsets = [0, 0], sizes = [1, 32], strides = [1, 1]} : vector<4x32xf32> to vector<1x32xf32>
    %6 = vector.broadcast %5 : vector<1x32xf32> to vector<16x32xf32>
    %7 = arith.addf %4, %6 : vector<16x32xf32>
    %8 = vector.extract_strided_slice %2 {offsets = [0, 32], sizes = [16, 32], strides = [1, 1]} : vector<16x96xf32> to vector<16x32xf32>
    %9 = vector.extract_strided_slice %3 {offsets = [1, 0], sizes = [1, 32], strides = [1, 1]} : vector<4x32xf32> to vector<1x32xf32>
    %10 = vector.broadcast %9 : vector<1x32xf32> to vector<16x32xf32>
    %11 = arith.addf %8, %10 : vector<16x32xf32>
    %12 = vector.extract_strided_slice %2 {offsets = [0, 64], sizes = [16, 32], strides = [1, 1]} : vector<16x96xf32> to vector<16x32xf32>
    %13 = vector.extract_strided_slice %3 {offsets = [2, 0], sizes = [1, 32], strides = [1, 1]} : vector<4x32xf32> to vector<1x32xf32>
    %14 = vector.broadcast %13 : vector<1x32xf32> to vector<16x32xf32>
    %15 = arith.addf %12, %14 : vector<16x32xf32>
    %16 = vector.extract_strided_slice %3 {offsets = [3, 0], sizes = [1, 32], strides = [1, 1]} : vector<4x32xf32> to vector<1x32xf32>
    %c0_5 = arith.constant 0 : index
    %c0_6 = arith.constant 0 : index
    %17 = vector.load %arg2[%c0_5, %c0_6] : memref<32x32xf32, #tpu.memory_space<vmem>>, vector<32x32xf32>
    %c0_7 = arith.constant 0 : index
    %c0_8 = arith.constant 0 : index
    %18 = vector.load %arg3[%c0_7, %c0_8] : memref<32x32xf32, #tpu.memory_space<vmem>>, vector<32x32xf32>
    %c0_9 = arith.constant 0 : index
    %c0_10 = arith.constant 0 : index
    %19 = vector.load %arg4[%c0_9, %c0_10] : memref<32x32xf32, #tpu.memory_space<vmem>>, vector<32x32xf32>
    %cst_11 = arith.constant 0.000000e+00 : f32
    %20 = vector.broadcast %cst_11 : f32 to vector<2x32xf32>
    %21 = vector.extract_strided_slice %7 {offsets = [0, 0], sizes = [2, 32], strides = [1, 1]} : vector<16x32xf32> to vector<2x32xf32>
    %cst_12 = arith.constant dense<0.000000e+00> : vector<2x32xf32>
    %22 = tpu.matmul %20, %17, %cst_12 {dimension_numbers = #tpu.dot_dimension_numbers<[1], [0], [0], [1], [0, 0, 1, 1], [], []>} : vector<2x32xf32>, vector<32x32xf32>, vector<2x32xf32> -> vector<2x32xf32>
    %23 = arith.addf %21, %22 : vector<2x32xf32>
    %24 = arith.negf %23 : vector<2x32xf32>
    %25 = math.exp %24 : vector<2x32xf32>
    %cst_13 = arith.constant 1.000000e+00 : f32
    %26 = vector.broadcast %cst_13 : f32 to vector<2x32xf32>
    %27 = arith.addf %26, %25 : vector<2x32xf32>
    %28 = arith.divf %26, %27 : vector<2x32xf32>
    %29 = vector.extract_strided_slice %11 {offsets = [0, 0], sizes = [2, 32], strides = [1, 1]} : vector<16x32xf32> to vector<2x32xf32>
    %cst_14 = arith.constant dense<0.000000e+00> : vector<2x32xf32>
    %30 = tpu.matmul %20, %18, %cst_14 {dimension_numbers = #tpu.dot_dimension_numbers<[1], [0], [0], [1], [0, 0, 1, 1], [], []>} : vector<2x32xf32>, vector<32x32xf32>, vector<2x32xf32> -> vector<2x32xf32>
    %31 = arith.addf %29, %30 : vector<2x32xf32>
    %32 = arith.negf %31 : vector<2x32xf32>
    %33 = math.exp %32 : vector<2x32xf32>
    %cst_15 = arith.constant 1.000000e+00 : f32
    %34 = vector.broadcast %cst_15 : f32 to vector<2x32xf32>
    %35 = arith.addf %34, %33 : vector<2x32xf32>
    %36 = arith.divf %34, %35 : vector<2x32xf32>
    %cst_16 = arith.constant dense<0.000000e+00> : vector<2x32xf32>
    %37 = tpu.matmul %20, %19, %cst_16 {dimension_numbers = #tpu.dot_dimension_numbers<[1], [0], [0], [1], [0, 0, 1, 1], [], []>} : vector<2x32xf32>, vector<32x32xf32>, vector<2x32xf32> -> vector<2x32xf32>
    %38 = vector.broadcast %16 : vector<1x32xf32> to vector<2x32xf32>
    %39 = arith.addf %37, %38 : vector<2x32xf32>
    %40 = vector.extract_strided_slice %15 {offsets = [0, 0], sizes = [2, 32], strides = [1, 1]} : vector<16x32xf32> to vector<2x32xf32>
    %41 = arith.mulf %28, %39 : vector<2x32xf32>
    %42 = arith.addf %40, %41 : vector<2x32xf32>
    %43 = math.tanh %42 : vector<2x32xf32>
    %cst_17 = arith.constant 1.000000e+00 : f32
    %44 = vector.broadcast %cst_17 : f32 to vector<2x32xf32>
    %45 = arith.subf %44, %36 : vector<2x32xf32>
    %46 = arith.mulf %45, %43 : vector<2x32xf32>
    %47 = arith.mulf %36, %20 : vector<2x32xf32>
    %48 = arith.addf %46, %47 : vector<2x32xf32>
    %c0_18 = arith.constant 0 : index
    %c0_19 = arith.constant 0 : index
    %49 = vector.load %arg15[%c0_18, %c0_19] : memref<16x32xf32, #tpu.memory_space<vmem>>, vector<2x32xf32>
    tpu.vector_store %arg15[%c0_18, %c0_19], %48 {strides = array<i32>} : memref<16x32xf32, #tpu.memory_space<vmem>>, vector<2x32xf32>,
    %50 = vector.extract_strided_slice %7 {offsets = [2, 0], sizes = [2, 32], strides = [1, 1]} : vector<16x32xf32> to vector<2x32xf32>
    %cst_20 = arith.constant dense<0.000000e+00> : vector<2x32xf32>
    %51 = tpu.matmul %48, %17, %cst_20 {dimension_numbers = #tpu.dot_dimension_numbers<[1], [0], [0], [1], [0, 0, 1, 1], [], []>} : vector<2x32xf32>, vector<32x32xf32>, vector<2x32xf32> -> vector<2x32xf32>
    %52 = arith.addf %50, %51 : vector<2x32xf32>
    %53 = arith.negf %52 : vector<2x32xf32>
    %54 = math.exp %53 : vector<2x32xf32>
    %cst_21 = arith.constant 1.000000e+00 : f32
    %55 = vector.broadcast %cst_21 : f32 to vector<2x32xf32>
    %56 = arith.addf %55, %54 : vector<2x32xf32>
    %57 = arith.divf %55, %56 : vector<2x32xf32>
    %58 = vector.extract_strided_slice %11 {offsets = [2, 0], sizes = [2, 32], strides = [1, 1]} : vector<16x32xf32> to vector<2x32xf32>
    %cst_22 = arith.constant dense<0.000000e+00> : vector<2x32xf32>
    %59 = tpu.matmul %48, %18, %cst_22 {dimension_numbers = #tpu.dot_dimension_numbers<[1], [0], [0], [1], [0, 0, 1, 1], [], []>} : vector<2x32xf32>, vector<32x32xf32>, vector<2x32xf32> -> vector<2x32xf32>
    %60 = arith.addf %58, %59 : vector<2x32xf32>
    %61 = arith.negf %60 : vector<2x32xf32>
    %62 = math.exp %61 : vector<2x32xf32>
    %cst_23 = arith.constant 1.000000e+00 : f32
    %63 = vector.broadcast %cst_23 : f32 to vector<2x32xf32>
    %64 = arith.addf %63, %62 : vector<2x32xf32>
    %65 = arith.divf %63, %64 : vector<2x32xf32>
    %cst_24 = arith.constant dense<0.000000e+00> : vector<2x32xf32>
    %66 = tpu.matmul %48, %19, %cst_24 {dimension_numbers = #tpu.dot_dimension_numbers<[1], [0], [0], [1], [0, 0, 1, 1], [], []>} : vector<2x32xf32>, vector<32x32xf32>, vector<2x32xf32> -> vector<2x32xf32>
    %67 = vector.broadcast %16 : vector<1x32xf32> to vector<2x32xf32>
    %68 = arith.addf %66, %67 : vector<2x32xf32>
    %69 = vector.extract_strided_slice %15 {offsets = [2, 0], sizes = [2, 32], strides = [1, 1]} : vector<16x32xf32> to vector<2x32xf32>
    %70 = arith.mulf %57, %68 : vector<2x32xf32>
    %71 = arith.addf %69, %70 : vector<2x32xf32>
    %72 = math.tanh %71 : vector<2x32xf32>
    %cst_25 = arith.constant 1.000000e+00 : f32
    %73 = vector.broadcast %cst_25 : f32 to vector<2x32xf32>
    %74 = arith.subf %73, %65 : vector<2x32xf32>
    %75 = arith.mulf %74, %72 : vector<2x32xf32>
    %76 = arith.mulf %65, %48 : vector<2x32xf32>
    %77 = arith.addf %75, %76 : vector<2x32xf32>
    %c2 = arith.constant 2 : index
    %c0_26 = arith.constant 0 : index
    %78 = vector.load %arg15[%c2, %c0_26] : memref<16x32xf32, #tpu.memory_space<vmem>>, vector<2x32xf32>
    tpu.vector_store %arg15[%c2, %c0_26], %77 {strides = array<i32>} : memref<16x32xf32, #tpu.memory_space<vmem>>, vector<2x32xf32>,
    %79 = vector.extract_strided_slice %7 {offsets = [4, 0], sizes = [2, 32], strides = [1, 1]} : vector<16x32xf32> to vector<2x32xf32>
    %cst_27 = arith.constant dense<0.000000e+00> : vector<2x32xf32>
    %80 = tpu.matmul %77, %17, %cst_27 {dimension_numbers = #tpu.dot_dimension_numbers<[1], [0], [0], [1], [0, 0, 1, 1], [], []>} : vector<2x32xf32>, vector<32x32xf32>, vector<2x32xf32> -> vector<2x32xf32>
    %81 = arith.addf %79, %80 : vector<2x32xf32>
    %82 = arith.negf %81 : vector<2x32xf32>
    %83 = math.exp %82 : vector<2x32xf32>
    %cst_28 = arith.constant 1.000000e+00 : f32
    %84 = vector.broadcast %cst_28 : f32 to vector<2x32xf32>
    %85 = arith.addf %84, %83 : vector<2x32xf32>
    %86 = arith.divf %84, %85 : vector<2x32xf32>
    %87 = vector.extract_strided_slice %11 {offsets = [4, 0], sizes = [2, 32], strides = [1, 1]} : vector<16x32xf32> to vector<2x32xf32>
    %cst_29 = arith.constant dense<0.000000e+00> : vector<2x32xf32>
    %88 = tpu.matmul %77, %18, %cst_29 {dimension_numbers = #tpu.dot_dimension_numbers<[1], [0], [0], [1], [0, 0, 1, 1], [], []>} : vector<2x32xf32>, vector<32x32xf32>, vector<2x32xf32> -> vector<2x32xf32>
    %89 = arith.addf %87, %88 : vector<2x32xf32>
    %90 = arith.negf %89 : vector<2x32xf32>
    %91 = math.exp %90 : vector<2x32xf32>
    %cst_30 = arith.constant 1.000000e+00 : f32
    %92 = vector.broadcast %cst_30 : f32 to vector<2x32xf32>
    %93 = arith.addf %92, %91 : vector<2x32xf32>
    %94 = arith.divf %92, %93 : vector<2x32xf32>
    %cst_31 = arith.constant dense<0.000000e+00> : vector<2x32xf32>
    %95 = tpu.matmul %77, %19, %cst_31 {dimension_numbers = #tpu.dot_dimension_numbers<[1], [0], [0], [1], [0, 0, 1, 1], [], []>} : vector<2x32xf32>, vector<32x32xf32>, vector<2x32xf32> -> vector<2x32xf32>
    %96 = vector.broadcast %16 : vector<1x32xf32> to vector<2x32xf32>
    %97 = arith.addf %95, %96 : vector<2x32xf32>
    %98 = vector.extract_strided_slice %15 {offsets = [4, 0], sizes = [2, 32], strides = [1, 1]} : vector<16x32xf32> to vector<2x32xf32>
    %99 = arith.mulf %86, %97 : vector<2x32xf32>
    %100 = arith.addf %98, %99 : vector<2x32xf32>
    %101 = math.tanh %100 : vector<2x32xf32>
    %cst_32 = arith.constant 1.000000e+00 : f32
    %102 = vector.broadcast %cst_32 : f32 to vector<2x32xf32>
    %103 = arith.subf %102, %94 : vector<2x32xf32>
    %104 = arith.mulf %103, %101 : vector<2x32xf32>
    %105 = arith.mulf %94, %77 : vector<2x32xf32>
    %106 = arith.addf %104, %105 : vector<2x32xf32>
    %c4 = arith.constant 4 : index
    %c0_33 = arith.constant 0 : index
    %107 = vector.load %arg15[%c4, %c0_33] : memref<16x32xf32, #tpu.memory_space<vmem>>, vector<2x32xf32>
    tpu.vector_store %arg15[%c4, %c0_33], %106 {strides = array<i32>} : memref<16x32xf32, #tpu.memory_space<vmem>>, vector<2x32xf32>,
    %108 = vector.extract_strided_slice %7 {offsets = [6, 0], sizes = [2, 32], strides = [1, 1]} : vector<16x32xf32> to vector<2x32xf32>
    %cst_34 = arith.constant dense<0.000000e+00> : vector<2x32xf32>
    %109 = tpu.matmul %106, %17, %cst_34 {dimension_numbers = #tpu.dot_dimension_numbers<[1], [0], [0], [1], [0, 0, 1, 1], [], []>} : vector<2x32xf32>, vector<32x32xf32>, vector<2x32xf32> -> vector<2x32xf32>
    %110 = arith.addf %108, %109 : vector<2x32xf32>
    %111 = arith.negf %110 : vector<2x32xf32>
    %112 = math.exp %111 : vector<2x32xf32>
    %cst_35 = arith.constant 1.000000e+00 : f32
    %113 = vector.broadcast %cst_35 : f32 to vector<2x32xf32>
    %114 = arith.addf %113, %112 : vector<2x32xf32>
    %115 = arith.divf %113, %114 : vector<2x32xf32>
    %116 = vector.extract_strided_slice %11 {offsets = [6, 0], sizes = [2, 32], strides = [1, 1]} : vector<16x32xf32> to vector<2x32xf32>
    %cst_36 = arith.constant dense<0.000000e+00> : vector<2x32xf32>
    %117 = tpu.matmul %106, %18, %cst_36 {dimension_numbers = #tpu.dot_dimension_numbers<[1], [0], [0], [1], [0, 0, 1, 1], [], []>} : vector<2x32xf32>, vector<32x32xf32>, vector<2x32xf32> -> vector<2x32xf32>
    %118 = arith.addf %116, %117 : vector<2x32xf32>
    %119 = arith.negf %118 : vector<2x32xf32>
    %120 = math.exp %119 : vector<2x32xf32>
    %cst_37 = arith.constant 1.000000e+00 : f32
    %121 = vector.broadcast %cst_37 : f32 to vector<2x32xf32>
    %122 = arith.addf %121, %120 : vector<2x32xf32>
    %123 = arith.divf %121, %122 : vector<2x32xf32>
    %cst_38 = arith.constant dense<0.000000e+00> : vector<2x32xf32>
    %124 = tpu.matmul %106, %19, %cst_38 {dimension_numbers = #tpu.dot_dimension_numbers<[1], [0], [0], [1], [0, 0, 1, 1], [], []>} : vector<2x32xf32>, vector<32x32xf32>, vector<2x32xf32> -> vector<2x32xf32>
    %125 = vector.broadcast %16 : vector<1x32xf32> to vector<2x32xf32>
    %126 = arith.addf %124, %125 : vector<2x32xf32>
    %127 = vector.extract_strided_slice %15 {offsets = [6, 0], sizes = [2, 32], strides = [1, 1]} : vector<16x32xf32> to vector<2x32xf32>
    %128 = arith.mulf %115, %126 : vector<2x32xf32>
    %129 = arith.addf %127, %128 : vector<2x32xf32>
    %130 = math.tanh %129 : vector<2x32xf32>
    %cst_39 = arith.constant 1.000000e+00 : f32
    %131 = vector.broadcast %cst_39 : f32 to vector<2x32xf32>
    %132 = arith.subf %131, %123 : vector<2x32xf32>
    %133 = arith.mulf %132, %130 : vector<2x32xf32>
    %134 = arith.mulf %123, %106 : vector<2x32xf32>
    %135 = arith.addf %133, %134 : vector<2x32xf32>
    %c6 = arith.constant 6 : index
    %c0_40 = arith.constant 0 : index
    %136 = vector.load %arg15[%c6, %c0_40] : memref<16x32xf32, #tpu.memory_space<vmem>>, vector<2x32xf32>
    tpu.vector_store %arg15[%c6, %c0_40], %135 {strides = array<i32>} : memref<16x32xf32, #tpu.memory_space<vmem>>, vector<2x32xf32>,
    %137 = vector.extract_strided_slice %7 {offsets = [8, 0], sizes = [2, 32], strides = [1, 1]} : vector<16x32xf32> to vector<2x32xf32>
    %cst_41 = arith.constant dense<0.000000e+00> : vector<2x32xf32>
    %138 = tpu.matmul %135, %17, %cst_41 {dimension_numbers = #tpu.dot_dimension_numbers<[1], [0], [0], [1], [0, 0, 1, 1], [], []>} : vector<2x32xf32>, vector<32x32xf32>, vector<2x32xf32> -> vector<2x32xf32>
    %139 = arith.addf %137, %138 : vector<2x32xf32>
    %140 = arith.negf %139 : vector<2x32xf32>
    %141 = math.exp %140 : vector<2x32xf32>
    %cst_42 = arith.constant 1.000000e+00 : f32
    %142 = vector.broadcast %cst_42 : f32 to vector<2x32xf32>
    %143 = arith.addf %142, %141 : vector<2x32xf32>
    %144 = arith.divf %142, %143 : vector<2x32xf32>
    %145 = vector.extract_strided_slice %11 {offsets = [8, 0], sizes = [2, 32], strides = [1, 1]} : vector<16x32xf32> to vector<2x32xf32>
    %cst_43 = arith.constant dense<0.000000e+00> : vector<2x32xf32>
    %146 = tpu.matmul %135, %18, %cst_43 {dimension_numbers = #tpu.dot_dimension_numbers<[1], [0], [0], [1], [0, 0, 1, 1], [], []>} : vector<2x32xf32>, vector<32x32xf32>, vector<2x32xf32> -> vector<2x32xf32>
    %147 = arith.addf %145, %146 : vector<2x32xf32>
    %148 = arith.negf %147 : vector<2x32xf32>
    %149 = math.exp %148 : vector<2x32xf32>
    %cst_44 = arith.constant 1.000000e+00 : f32
    %150 = vector.broadcast %cst_44 : f32 to vector<2x32xf32>
    %151 = arith.addf %150, %149 : vector<2x32xf32>
    %152 = arith.divf %150, %151 : vector<2x32xf32>
    %cst_45 = arith.constant dense<0.000000e+00> : vector<2x32xf32>
    %153 = tpu.matmul %135, %19, %cst_45 {dimension_numbers = #tpu.dot_dimension_numbers<[1], [0], [0], [1], [0, 0, 1, 1], [], []>} : vector<2x32xf32>, vector<32x32xf32>, vector<2x32xf32> -> vector<2x32xf32>
    %154 = vector.broadcast %16 : vector<1x32xf32> to vector<2x32xf32>
    %155 = arith.addf %153, %154 : vector<2x32xf32>
    %156 = vector.extract_strided_slice %15 {offsets = [8, 0], sizes = [2, 32], strides = [1, 1]} : vector<16x32xf32> to vector<2x32xf32>
    %157 = arith.mulf %144, %155 : vector<2x32xf32>
    %158 = arith.addf %156, %157 : vector<2x32xf32>
    %159 = math.tanh %158 : vector<2x32xf32>
    %cst_46 = arith.constant 1.000000e+00 : f32
    %160 = vector.broadcast %cst_46 : f32 to vector<2x32xf32>
    %161 = arith.subf %160, %152 : vector<2x32xf32>
    %162 = arith.mulf %161, %159 : vector<2x32xf32>
    %163 = arith.mulf %152, %135 : vector<2x32xf32>
    %164 = arith.addf %162, %163 : vector<2x32xf32>
    %c8 = arith.constant 8 : index
    %c0_47 = arith.constant 0 : index
    %165 = vector.load %arg15[%c8, %c0_47] : memref<16x32xf32, #tpu.memory_space<vmem>>, vector<2x32xf32>
    tpu.vector_store %arg15[%c8, %c0_47], %164 {strides = array<i32>} : memref<16x32xf32, #tpu.memory_space<vmem>>, vector<2x32xf32>,
    %166 = vector.extract_strided_slice %7 {offsets = [10, 0], sizes = [2, 32], strides = [1, 1]} : vector<16x32xf32> to vector<2x32xf32>
    %cst_48 = arith.constant dense<0.000000e+00> : vector<2x32xf32>
    %167 = tpu.matmul %164, %17, %cst_48 {dimension_numbers = #tpu.dot_dimension_numbers<[1], [0], [0], [1], [0, 0, 1, 1], [], []>} : vector<2x32xf32>, vector<32x32xf32>, vector<2x32xf32> -> vector<2x32xf32>
    %168 = arith.addf %166, %167 : vector<2x32xf32>
    %169 = arith.negf %168 : vector<2x32xf32>
    %170 = math.exp %169 : vector<2x32xf32>
    %cst_49 = arith.constant 1.000000e+00 : f32
    %171 = vector.broadcast %cst_49 : f32 to vector<2x32xf32>
    %172 = arith.addf %171, %170 : vector<2x32xf32>
    %173 = arith.divf %171, %172 : vector<2x32xf32>
    %174 = vector.extract_strided_slice %11 {offsets = [10, 0], sizes = [2, 32], strides = [1, 1]} : vector<16x32xf32> to vector<2x32xf32>
    %cst_50 = arith.constant dense<0.000000e+00> : vector<2x32xf32>
    %175 = tpu.matmul %164, %18, %cst_50 {dimension_numbers = #tpu.dot_dimension_numbers<[1], [0], [0], [1], [0, 0, 1, 1], [], []>} : vector<2x32xf32>, vector<32x32xf32>, vector<2x32xf32> -> vector<2x32xf32>
    %176 = arith.addf %174, %175 : vector<2x32xf32>
    %177 = arith.negf %176 : vector<2x32xf32>
    %178 = math.exp %177 : vector<2x32xf32>
    %cst_51 = arith.constant 1.000000e+00 : f32
    %179 = vector.broadcast %cst_51 : f32 to vector<2x32xf32>
    %180 = arith.addf %179, %178 : vector<2x32xf32>
    %181 = arith.divf %179, %180 : vector<2x32xf32>
    %cst_52 = arith.constant dense<0.000000e+00> : vector<2x32xf32>
    %182 = tpu.matmul %164, %19, %cst_52 {dimension_numbers = #tpu.dot_dimension_numbers<[1], [0], [0], [1], [0, 0, 1, 1], [], []>} : vector<2x32xf32>, vector<32x32xf32>, vector<2x32xf32> -> vector<2x32xf32>
    %183 = vector.broadcast %16 : vector<1x32xf32> to vector<2x32xf32>
    %184 = arith.addf %182, %183 : vector<2x32xf32>
    %185 = vector.extract_strided_slice %15 {offsets = [10, 0], sizes = [2, 32], strides = [1, 1]} : vector<16x32xf32> to vector<2x32xf32>
    %186 = arith.mulf %173, %184 : vector<2x32xf32>
    %187 = arith.addf %185, %186 : vector<2x32xf32>
    %188 = math.tanh %187 : vector<2x32xf32>
    %cst_53 = arith.constant 1.000000e+00 : f32
    %189 = vector.broadcast %cst_53 : f32 to vector<2x32xf32>
    %190 = arith.subf %189, %181 : vector<2x32xf32>
    %191 = arith.mulf %190, %188 : vector<2x32xf32>
    %192 = arith.mulf %181, %164 : vector<2x32xf32>
    %193 = arith.addf %191, %192 : vector<2x32xf32>
    %c10 = arith.constant 10 : index
    %c0_54 = arith.constant 0 : index
    %194 = vector.load %arg15[%c10, %c0_54] : memref<16x32xf32, #tpu.memory_space<vmem>>, vector<2x32xf32>
    tpu.vector_store %arg15[%c10, %c0_54], %193 {strides = array<i32>} : memref<16x32xf32, #tpu.memory_space<vmem>>, vector<2x32xf32>,
    %195 = vector.extract_strided_slice %7 {offsets = [12, 0], sizes = [2, 32], strides = [1, 1]} : vector<16x32xf32> to vector<2x32xf32>
    %cst_55 = arith.constant dense<0.000000e+00> : vector<2x32xf32>
    %196 = tpu.matmul %193, %17, %cst_55 {dimension_numbers = #tpu.dot_dimension_numbers<[1], [0], [0], [1], [0, 0, 1, 1], [], []>} : vector<2x32xf32>, vector<32x32xf32>, vector<2x32xf32> -> vector<2x32xf32>
    %197 = arith.addf %195, %196 : vector<2x32xf32>
    %198 = arith.negf %197 : vector<2x32xf32>
    %199 = math.exp %198 : vector<2x32xf32>
    %cst_56 = arith.constant 1.000000e+00 : f32
    %200 = vector.broadcast %cst_56 : f32 to vector<2x32xf32>
    %201 = arith.addf %200, %199 : vector<2x32xf32>
    %202 = arith.divf %200, %201 : vector<2x32xf32>
    %203 = vector.extract_strided_slice %11 {offsets = [12, 0], sizes = [2, 32], strides = [1, 1]} : vector<16x32xf32> to vector<2x32xf32>
    %cst_57 = arith.constant dense<0.000000e+00> : vector<2x32xf32>
    %204 = tpu.matmul %193, %18, %cst_57 {dimension_numbers = #tpu.dot_dimension_numbers<[1], [0], [0], [1], [0, 0, 1, 1], [], []>} : vector<2x32xf32>, vector<32x32xf32>, vector<2x32xf32> -> vector<2x32xf32>
    %205 = arith.addf %203, %204 : vector<2x32xf32>
    %206 = arith.negf %205 : vector<2x32xf32>
    %207 = math.exp %206 : vector<2x32xf32>
    %cst_58 = arith.constant 1.000000e+00 : f32
    %208 = vector.broadcast %cst_58 : f32 to vector<2x32xf32>
    %209 = arith.addf %208, %207 : vector<2x32xf32>
    %210 = arith.divf %208, %209 : vector<2x32xf32>
    %cst_59 = arith.constant dense<0.000000e+00> : vector<2x32xf32>
    %211 = tpu.matmul %193, %19, %cst_59 {dimension_numbers = #tpu.dot_dimension_numbers<[1], [0], [0], [1], [0, 0, 1, 1], [], []>} : vector<2x32xf32>, vector<32x32xf32>, vector<2x32xf32> -> vector<2x32xf32>
    %212 = vector.broadcast %16 : vector<1x32xf32> to vector<2x32xf32>
    %213 = arith.addf %211, %212 : vector<2x32xf32>
    %214 = vector.extract_strided_slice %15 {offsets = [12, 0], sizes = [2, 32], strides = [1, 1]} : vector<16x32xf32> to vector<2x32xf32>
    %215 = arith.mulf %202, %213 : vector<2x32xf32>
    %216 = arith.addf %214, %215 : vector<2x32xf32>
    %217 = math.tanh %216 : vector<2x32xf32>
    %cst_60 = arith.constant 1.000000e+00 : f32
    %218 = vector.broadcast %cst_60 : f32 to vector<2x32xf32>
    %219 = arith.subf %218, %210 : vector<2x32xf32>
    %220 = arith.mulf %219, %217 : vector<2x32xf32>
    %221 = arith.mulf %210, %193 : vector<2x32xf32>
    %222 = arith.addf %220, %221 : vector<2x32xf32>
    %c12 = arith.constant 12 : index
    %c0_61 = arith.constant 0 : index
    %223 = vector.load %arg15[%c12, %c0_61] : memref<16x32xf32, #tpu.memory_space<vmem>>, vector<2x32xf32>
    tpu.vector_store %arg15[%c12, %c0_61], %222 {strides = array<i32>} : memref<16x32xf32, #tpu.memory_space<vmem>>, vector<2x32xf32>,
    %224 = vector.extract_strided_slice %7 {offsets = [14, 0], sizes = [2, 32], strides = [1, 1]} : vector<16x32xf32> to vector<2x32xf32>
    %cst_62 = arith.constant dense<0.000000e+00> : vector<2x32xf32>
    %225 = tpu.matmul %222, %17, %cst_62 {dimension_numbers = #tpu.dot_dimension_numbers<[1], [0], [0], [1], [0, 0, 1, 1], [], []>} : vector<2x32xf32>, vector<32x32xf32>, vector<2x32xf32> -> vector<2x32xf32>
    %226 = arith.addf %224, %225 : vector<2x32xf32>
    %227 = arith.negf %226 : vector<2x32xf32>
    %228 = math.exp %227 : vector<2x32xf32>
    %cst_63 = arith.constant 1.000000e+00 : f32
    %229 = vector.broadcast %cst_63 : f32 to vector<2x32xf32>
    %230 = arith.addf %229, %228 : vector<2x32xf32>
    %231 = arith.divf %229, %230 : vector<2x32xf32>
    %232 = vector.extract_strided_slice %11 {offsets = [14, 0], sizes = [2, 32], strides = [1, 1]} : vector<16x32xf32> to vector<2x32xf32>
    %cst_64 = arith.constant dense<0.000000e+00> : vector<2x32xf32>
    %233 = tpu.matmul %222, %18, %cst_64 {dimension_numbers = #tpu.dot_dimension_numbers<[1], [0], [0], [1], [0, 0, 1, 1], [], []>} : vector<2x32xf32>, vector<32x32xf32>, vector<2x32xf32> -> vector<2x32xf32>
    %234 = arith.addf %232, %233 : vector<2x32xf32>
    %235 = arith.negf %234 : vector<2x32xf32>
    %236 = math.exp %235 : vector<2x32xf32>
    %cst_65 = arith.constant 1.000000e+00 : f32
    %237 = vector.broadcast %cst_65 : f32 to vector<2x32xf32>
    %238 = arith.addf %237, %236 : vector<2x32xf32>
    %239 = arith.divf %237, %238 : vector<2x32xf32>
    %cst_66 = arith.constant dense<0.000000e+00> : vector<2x32xf32>
    %240 = tpu.matmul %222, %19, %cst_66 {dimension_numbers = #tpu.dot_dimension_numbers<[1], [0], [0], [1], [0, 0, 1, 1], [], []>} : vector<2x32xf32>, vector<32x32xf32>, vector<2x32xf32> -> vector<2x32xf32>
    %241 = vector.broadcast %16 : vector<1x32xf32> to vector<2x32xf32>
    %242 = arith.addf %240, %241 : vector<2x32xf32>
    %243 = vector.extract_strided_slice %15 {offsets = [14, 0], sizes = [2, 32], strides = [1, 1]} : vector<16x32xf32> to vector<2x32xf32>
    %244 = arith.mulf %231, %242 : vector<2x32xf32>
    %245 = arith.addf %243, %244 : vector<2x32xf32>
    %246 = math.tanh %245 : vector<2x32xf32>
    %cst_67 = arith.constant 1.000000e+00 : f32
    %247 = vector.broadcast %cst_67 : f32 to vector<2x32xf32>
    %248 = arith.subf %247, %239 : vector<2x32xf32>
    %249 = arith.mulf %248, %246 : vector<2x32xf32>
    %250 = arith.mulf %239, %222 : vector<2x32xf32>
    %251 = arith.addf %249, %250 : vector<2x32xf32>
    %c14 = arith.constant 14 : index
    %c0_68 = arith.constant 0 : index
    %252 = vector.load %arg15[%c14, %c0_68] : memref<16x32xf32, #tpu.memory_space<vmem>>, vector<2x32xf32>
    tpu.vector_store %arg15[%c14, %c0_68], %251 {strides = array<i32>} : memref<16x32xf32, #tpu.memory_space<vmem>>, vector<2x32xf32>,
    %c0_69 = arith.constant 0 : index
    %c0_70 = arith.constant 0 : index
    %c0_71 = arith.constant 0 : index
    %253 = vector.load %arg14[%c0_69, %c0_70, %c0_71] : memref<2x2x32xf32, #tpu.memory_space<vmem>>, vector<1x2x32xf32>
    %254 = vector.shape_cast %253 : vector<1x2x32xf32> to vector<2x32xf32>
    %255 = vector.shape_cast %251 : vector<2x32xf32> to vector<1x2x32xf32>
    tpu.vector_store %arg14[%c0_69, %c0_70, %c0_71], %255 {strides = array<i32>} : memref<2x2x32xf32, #tpu.memory_space<vmem>>, vector<1x2x32xf32>,
    %c0_72 = arith.constant 0 : index
    %c0_73 = arith.constant 0 : index
    %256 = vector.load %arg15[%c0_72, %c0_73] : memref<16x32xf32, #tpu.memory_space<vmem>>, vector<16x32xf32>
    %c0_74 = arith.constant 0 : index
    %c0_75 = arith.constant 0 : index
    %257 = vector.load %arg6[%c0_74, %c0_75] : memref<32x96xf32, #tpu.memory_space<vmem>>, vector<32x96xf32>
    %cst_76 = arith.constant dense<0.000000e+00> : vector<16x96xf32>
    %258 = tpu.matmul %256, %257, %cst_76 {dimension_numbers = #tpu.dot_dimension_numbers<[1], [0], [0], [1], [0, 0, 1, 1], [], []>} : vector<16x32xf32>, vector<32x96xf32>, vector<16x96xf32> -> vector<16x96xf32>
    %c0_77 = arith.constant 0 : index
    %c0_78 = arith.constant 0 : index
    %259 = vector.load %arg10[%c0_77, %c0_78] : memref<4x32xf32, #tpu.memory_space<vmem>>, vector<4x32xf32>
    %260 = vector.extract_strided_slice %258 {offsets = [0, 0], sizes = [16, 32], strides = [1, 1]} : vector<16x96xf32> to vector<16x32xf32>
    %261 = vector.extract_strided_slice %259 {offsets = [0, 0], sizes = [1, 32], strides = [1, 1]} : vector<4x32xf32> to vector<1x32xf32>
    %262 = vector.broadcast %261 : vector<1x32xf32> to vector<16x32xf32>
    %263 = arith.addf %260, %262 : vector<16x32xf32>
    %264 = vector.extract_strided_slice %258 {offsets = [0, 32], sizes = [16, 32], strides = [1, 1]} : vector<16x96xf32> to vector<16x32xf32>
    %265 = vector.extract_strided_slice %259 {offsets = [1, 0], sizes = [1, 32], strides = [1, 1]} : vector<4x32xf32> to vector<1x32xf32>
    %266 = vector.broadcast %265 : vector<1x32xf32> to vector<16x32xf32>
    %267 = arith.addf %264, %266 : vector<16x32xf32>
    %268 = vector.extract_strided_slice %258 {offsets = [0, 64], sizes = [16, 32], strides = [1, 1]} : vector<16x96xf32> to vector<16x32xf32>
    %269 = vector.extract_strided_slice %259 {offsets = [2, 0], sizes = [1, 32], strides = [1, 1]} : vector<4x32xf32> to vector<1x32xf32>
    %270 = vector.broadcast %269 : vector<1x32xf32> to vector<16x32xf32>
    %271 = arith.addf %268, %270 : vector<16x32xf32>
    %272 = vector.extract_strided_slice %259 {offsets = [3, 0], sizes = [1, 32], strides = [1, 1]} : vector<4x32xf32> to vector<1x32xf32>
    %c0_79 = arith.constant 0 : index
    %c0_80 = arith.constant 0 : index
    %273 = vector.load %arg7[%c0_79, %c0_80] : memref<32x32xf32, #tpu.memory_space<vmem>>, vector<32x32xf32>
    %c0_81 = arith.constant 0 : index
    %c0_82 = arith.constant 0 : index
    %274 = vector.load %arg8[%c0_81, %c0_82] : memref<32x32xf32, #tpu.memory_space<vmem>>, vector<32x32xf32>
    %c0_83 = arith.constant 0 : index
    %c0_84 = arith.constant 0 : index
    %275 = vector.load %arg9[%c0_83, %c0_84] : memref<32x32xf32, #tpu.memory_space<vmem>>, vector<32x32xf32>
    %cst_85 = arith.constant 0.000000e+00 : f32
    %276 = vector.broadcast %cst_85 : f32 to vector<2x32xf32>
    %277 = vector.extract_strided_slice %263 {offsets = [0, 0], sizes = [2, 32], strides = [1, 1]} : vector<16x32xf32> to vector<2x32xf32>
    %cst_86 = arith.constant dense<0.000000e+00> : vector<2x32xf32>
    %278 = tpu.matmul %276, %273, %cst_86 {dimension_numbers = #tpu.dot_dimension_numbers<[1], [0], [0], [1], [0, 0, 1, 1], [], []>} : vector<2x32xf32>, vector<32x32xf32>, vector<2x32xf32> -> vector<2x32xf32>
    %279 = arith.addf %277, %278 : vector<2x32xf32>
    %280 = arith.negf %279 : vector<2x32xf32>
    %281 = math.exp %280 : vector<2x32xf32>
    %cst_87 = arith.constant 1.000000e+00 : f32
    %282 = vector.broadcast %cst_87 : f32 to vector<2x32xf32>
    %283 = arith.addf %282, %281 : vector<2x32xf32>
    %284 = arith.divf %282, %283 : vector<2x32xf32>
    %285 = vector.extract_strided_slice %267 {offsets = [0, 0], sizes = [2, 32], strides = [1, 1]} : vector<16x32xf32> to vector<2x32xf32>
    %cst_88 = arith.constant dense<0.000000e+00> : vector<2x32xf32>
    %286 = tpu.matmul %276, %274, %cst_88 {dimension_numbers = #tpu.dot_dimension_numbers<[1], [0], [0], [1], [0, 0, 1, 1], [], []>} : vector<2x32xf32>, vector<32x32xf32>, vector<2x32xf32> -> vector<2x32xf32>
    %287 = arith.addf %285, %286 : vector<2x32xf32>
    %288 = arith.negf %287 : vector<2x32xf32>
    %289 = math.exp %288 : vector<2x32xf32>
    %cst_89 = arith.constant 1.000000e+00 : f32
    %290 = vector.broadcast %cst_89 : f32 to vector<2x32xf32>
    %291 = arith.addf %290, %289 : vector<2x32xf32>
    %292 = arith.divf %290, %291 : vector<2x32xf32>
    %cst_90 = arith.constant dense<0.000000e+00> : vector<2x32xf32>
    %293 = tpu.matmul %276, %275, %cst_90 {dimension_numbers = #tpu.dot_dimension_numbers<[1], [0], [0], [1], [0, 0, 1, 1], [], []>} : vector<2x32xf32>, vector<32x32xf32>, vector<2x32xf32> -> vector<2x32xf32>
    %294 = vector.broadcast %272 : vector<1x32xf32> to vector<2x32xf32>
    %295 = arith.addf %293, %294 : vector<2x32xf32>
    %296 = vector.extract_strided_slice %271 {offsets = [0, 0], sizes = [2, 32], strides = [1, 1]} : vector<16x32xf32> to vector<2x32xf32>
    %297 = arith.mulf %284, %295 : vector<2x32xf32>
    %298 = arith.addf %296, %297 : vector<2x32xf32>
    %299 = math.tanh %298 : vector<2x32xf32>
    %cst_91 = arith.constant 1.000000e+00 : f32
    %300 = vector.broadcast %cst_91 : f32 to vector<2x32xf32>
    %301 = arith.subf %300, %292 : vector<2x32xf32>
    %302 = arith.mulf %301, %299 : vector<2x32xf32>
    %303 = arith.mulf %292, %276 : vector<2x32xf32>
    %304 = arith.addf %302, %303 : vector<2x32xf32>
    %c0_92 = arith.constant 0 : index
    %c0_93 = arith.constant 0 : index
    %305 = vector.load %arg15[%c0_92, %c0_93] : memref<16x32xf32, #tpu.memory_space<vmem>>, vector<2x32xf32>
    tpu.vector_store %arg15[%c0_92, %c0_93], %304 {strides = array<i32>} : memref<16x32xf32, #tpu.memory_space<vmem>>, vector<2x32xf32>,
    %306 = vector.extract_strided_slice %263 {offsets = [2, 0], sizes = [2, 32], strides = [1, 1]} : vector<16x32xf32> to vector<2x32xf32>
    %cst_94 = arith.constant dense<0.000000e+00> : vector<2x32xf32>
    %307 = tpu.matmul %304, %273, %cst_94 {dimension_numbers = #tpu.dot_dimension_numbers<[1], [0], [0], [1], [0, 0, 1, 1], [], []>} : vector<2x32xf32>, vector<32x32xf32>, vector<2x32xf32> -> vector<2x32xf32>
    %308 = arith.addf %306, %307 : vector<2x32xf32>
    %309 = arith.negf %308 : vector<2x32xf32>
    %310 = math.exp %309 : vector<2x32xf32>
    %cst_95 = arith.constant 1.000000e+00 : f32
    %311 = vector.broadcast %cst_95 : f32 to vector<2x32xf32>
    %312 = arith.addf %311, %310 : vector<2x32xf32>
    %313 = arith.divf %311, %312 : vector<2x32xf32>
    %314 = vector.extract_strided_slice %267 {offsets = [2, 0], sizes = [2, 32], strides = [1, 1]} : vector<16x32xf32> to vector<2x32xf32>
    %cst_96 = arith.constant dense<0.000000e+00> : vector<2x32xf32>
    %315 = tpu.matmul %304, %274, %cst_96 {dimension_numbers = #tpu.dot_dimension_numbers<[1], [0], [0], [1], [0, 0, 1, 1], [], []>} : vector<2x32xf32>, vector<32x32xf32>, vector<2x32xf32> -> vector<2x32xf32>
    %316 = arith.addf %314, %315 : vector<2x32xf32>
    %317 = arith.negf %316 : vector<2x32xf32>
    %318 = math.exp %317 : vector<2x32xf32>
    %cst_97 = arith.constant 1.000000e+00 : f32
    %319 = vector.broadcast %cst_97 : f32 to vector<2x32xf32>
    %320 = arith.addf %319, %318 : vector<2x32xf32>
    %321 = arith.divf %319, %320 : vector<2x32xf32>
    %cst_98 = arith.constant dense<0.000000e+00> : vector<2x32xf32>
    %322 = tpu.matmul %304, %275, %cst_98 {dimension_numbers = #tpu.dot_dimension_numbers<[1], [0], [0], [1], [0, 0, 1, 1], [], []>} : vector<2x32xf32>, vector<32x32xf32>, vector<2x32xf32> -> vector<2x32xf32>
    %323 = vector.broadcast %272 : vector<1x32xf32> to vector<2x32xf32>
    %324 = arith.addf %322, %323 : vector<2x32xf32>
    %325 = vector.extract_strided_slice %271 {offsets = [2, 0], sizes = [2, 32], strides = [1, 1]} : vector<16x32xf32> to vector<2x32xf32>
    %326 = arith.mulf %313, %324 : vector<2x32xf32>
    %327 = arith.addf %325, %326 : vector<2x32xf32>
    %328 = math.tanh %327 : vector<2x32xf32>
    %cst_99 = arith.constant 1.000000e+00 : f32
    %329 = vector.broadcast %cst_99 : f32 to vector<2x32xf32>
    %330 = arith.subf %329, %321 : vector<2x32xf32>
    %331 = arith.mulf %330, %328 : vector<2x32xf32>
    %332 = arith.mulf %321, %304 : vector<2x32xf32>
    %333 = arith.addf %331, %332 : vector<2x32xf32>
    %c2_100 = arith.constant 2 : index
    %c0_101 = arith.constant 0 : index
    %334 = vector.load %arg15[%c2_100, %c0_101] : memref<16x32xf32, #tpu.memory_space<vmem>>, vector<2x32xf32>
    tpu.vector_store %arg15[%c2_100, %c0_101], %333 {strides = array<i32>} : memref<16x32xf32, #tpu.memory_space<vmem>>, vector<2x32xf32>,
    %335 = vector.extract_strided_slice %263 {offsets = [4, 0], sizes = [2, 32], strides = [1, 1]} : vector<16x32xf32> to vector<2x32xf32>
    %cst_102 = arith.constant dense<0.000000e+00> : vector<2x32xf32>
    %336 = tpu.matmul %333, %273, %cst_102 {dimension_numbers = #tpu.dot_dimension_numbers<[1], [0], [0], [1], [0, 0, 1, 1], [], []>} : vector<2x32xf32>, vector<32x32xf32>, vector<2x32xf32> -> vector<2x32xf32>
    %337 = arith.addf %335, %336 : vector<2x32xf32>
    %338 = arith.negf %337 : vector<2x32xf32>
    %339 = math.exp %338 : vector<2x32xf32>
    %cst_103 = arith.constant 1.000000e+00 : f32
    %340 = vector.broadcast %cst_103 : f32 to vector<2x32xf32>
    %341 = arith.addf %340, %339 : vector<2x32xf32>
    %342 = arith.divf %340, %341 : vector<2x32xf32>
    %343 = vector.extract_strided_slice %267 {offsets = [4, 0], sizes = [2, 32], strides = [1, 1]} : vector<16x32xf32> to vector<2x32xf32>
    %cst_104 = arith.constant dense<0.000000e+00> : vector<2x32xf32>
    %344 = tpu.matmul %333, %274, %cst_104 {dimension_numbers = #tpu.dot_dimension_numbers<[1], [0], [0], [1], [0, 0, 1, 1], [], []>} : vector<2x32xf32>, vector<32x32xf32>, vector<2x32xf32> -> vector<2x32xf32>
    %345 = arith.addf %343, %344 : vector<2x32xf32>
    %346 = arith.negf %345 : vector<2x32xf32>
    %347 = math.exp %346 : vector<2x32xf32>
    %cst_105 = arith.constant 1.000000e+00 : f32
    %348 = vector.broadcast %cst_105 : f32 to vector<2x32xf32>
    %349 = arith.addf %348, %347 : vector<2x32xf32>
    %350 = arith.divf %348, %349 : vector<2x32xf32>
    %cst_106 = arith.constant dense<0.000000e+00> : vector<2x32xf32>
    %351 = tpu.matmul %333, %275, %cst_106 {dimension_numbers = #tpu.dot_dimension_numbers<[1], [0], [0], [1], [0, 0, 1, 1], [], []>} : vector<2x32xf32>, vector<32x32xf32>, vector<2x32xf32> -> vector<2x32xf32>
    %352 = vector.broadcast %272 : vector<1x32xf32> to vector<2x32xf32>
    %353 = arith.addf %351, %352 : vector<2x32xf32>
    %354 = vector.extract_strided_slice %271 {offsets = [4, 0], sizes = [2, 32], strides = [1, 1]} : vector<16x32xf32> to vector<2x32xf32>
    %355 = arith.mulf %342, %353 : vector<2x32xf32>
    %356 = arith.addf %354, %355 : vector<2x32xf32>
    %357 = math.tanh %356 : vector<2x32xf32>
    %cst_107 = arith.constant 1.000000e+00 : f32
    %358 = vector.broadcast %cst_107 : f32 to vector<2x32xf32>
    %359 = arith.subf %358, %350 : vector<2x32xf32>
    %360 = arith.mulf %359, %357 : vector<2x32xf32>
    %361 = arith.mulf %350, %333 : vector<2x32xf32>
    %362 = arith.addf %360, %361 : vector<2x32xf32>
    %c4_108 = arith.constant 4 : index
    %c0_109 = arith.constant 0 : index
    %363 = vector.load %arg15[%c4_108, %c0_109] : memref<16x32xf32, #tpu.memory_space<vmem>>, vector<2x32xf32>
    tpu.vector_store %arg15[%c4_108, %c0_109], %362 {strides = array<i32>} : memref<16x32xf32, #tpu.memory_space<vmem>>, vector<2x32xf32>,
    %364 = vector.extract_strided_slice %263 {offsets = [6, 0], sizes = [2, 32], strides = [1, 1]} : vector<16x32xf32> to vector<2x32xf32>
    %cst_110 = arith.constant dense<0.000000e+00> : vector<2x32xf32>
    %365 = tpu.matmul %362, %273, %cst_110 {dimension_numbers = #tpu.dot_dimension_numbers<[1], [0], [0], [1], [0, 0, 1, 1], [], []>} : vector<2x32xf32>, vector<32x32xf32>, vector<2x32xf32> -> vector<2x32xf32>
    %366 = arith.addf %364, %365 : vector<2x32xf32>
    %367 = arith.negf %366 : vector<2x32xf32>
    %368 = math.exp %367 : vector<2x32xf32>
    %cst_111 = arith.constant 1.000000e+00 : f32
    %369 = vector.broadcast %cst_111 : f32 to vector<2x32xf32>
    %370 = arith.addf %369, %368 : vector<2x32xf32>
    %371 = arith.divf %369, %370 : vector<2x32xf32>
    %372 = vector.extract_strided_slice %267 {offsets = [6, 0], sizes = [2, 32], strides = [1, 1]} : vector<16x32xf32> to vector<2x32xf32>
    %cst_112 = arith.constant dense<0.000000e+00> : vector<2x32xf32>
    %373 = tpu.matmul %362, %274, %cst_112 {dimension_numbers = #tpu.dot_dimension_numbers<[1], [0], [0], [1], [0, 0, 1, 1], [], []>} : vector<2x32xf32>, vector<32x32xf32>, vector<2x32xf32> -> vector<2x32xf32>
    %374 = arith.addf %372, %373 : vector<2x32xf32>
    %375 = arith.negf %374 : vector<2x32xf32>
    %376 = math.exp %375 : vector<2x32xf32>
    %cst_113 = arith.constant 1.000000e+00 : f32
    %377 = vector.broadcast %cst_113 : f32 to vector<2x32xf32>
    %378 = arith.addf %377, %376 : vector<2x32xf32>
    %379 = arith.divf %377, %378 : vector<2x32xf32>
    %cst_114 = arith.constant dense<0.000000e+00> : vector<2x32xf32>
    %380 = tpu.matmul %362, %275, %cst_114 {dimension_numbers = #tpu.dot_dimension_numbers<[1], [0], [0], [1], [0, 0, 1, 1], [], []>} : vector<2x32xf32>, vector<32x32xf32>, vector<2x32xf32> -> vector<2x32xf32>
    %381 = vector.broadcast %272 : vector<1x32xf32> to vector<2x32xf32>
    %382 = arith.addf %380, %381 : vector<2x32xf32>
    %383 = vector.extract_strided_slice %271 {offsets = [6, 0], sizes = [2, 32], strides = [1, 1]} : vector<16x32xf32> to vector<2x32xf32>
    %384 = arith.mulf %371, %382 : vector<2x32xf32>
    %385 = arith.addf %383, %384 : vector<2x32xf32>
    %386 = math.tanh %385 : vector<2x32xf32>
    %cst_115 = arith.constant 1.000000e+00 : f32
    %387 = vector.broadcast %cst_115 : f32 to vector<2x32xf32>
    %388 = arith.subf %387, %379 : vector<2x32xf32>
    %389 = arith.mulf %388, %386 : vector<2x32xf32>
    %390 = arith.mulf %379, %362 : vector<2x32xf32>
    %391 = arith.addf %389, %390 : vector<2x32xf32>
    %c6_116 = arith.constant 6 : index
    %c0_117 = arith.constant 0 : index
    %392 = vector.load %arg15[%c6_116, %c0_117] : memref<16x32xf32, #tpu.memory_space<vmem>>, vector<2x32xf32>
    tpu.vector_store %arg15[%c6_116, %c0_117], %391 {strides = array<i32>} : memref<16x32xf32, #tpu.memory_space<vmem>>, vector<2x32xf32>,
    %393 = vector.extract_strided_slice %263 {offsets = [8, 0], sizes = [2, 32], strides = [1, 1]} : vector<16x32xf32> to vector<2x32xf32>
    %cst_118 = arith.constant dense<0.000000e+00> : vector<2x32xf32>
    %394 = tpu.matmul %391, %273, %cst_118 {dimension_numbers = #tpu.dot_dimension_numbers<[1], [0], [0], [1], [0, 0, 1, 1], [], []>} : vector<2x32xf32>, vector<32x32xf32>, vector<2x32xf32> -> vector<2x32xf32>
    %395 = arith.addf %393, %394 : vector<2x32xf32>
    %396 = arith.negf %395 : vector<2x32xf32>
    %397 = math.exp %396 : vector<2x32xf32>
    %cst_119 = arith.constant 1.000000e+00 : f32
    %398 = vector.broadcast %cst_119 : f32 to vector<2x32xf32>
    %399 = arith.addf %398, %397 : vector<2x32xf32>
    %400 = arith.divf %398, %399 : vector<2x32xf32>
    %401 = vector.extract_strided_slice %267 {offsets = [8, 0], sizes = [2, 32], strides = [1, 1]} : vector<16x32xf32> to vector<2x32xf32>
    %cst_120 = arith.constant dense<0.000000e+00> : vector<2x32xf32>
    %402 = tpu.matmul %391, %274, %cst_120 {dimension_numbers = #tpu.dot_dimension_numbers<[1], [0], [0], [1], [0, 0, 1, 1], [], []>} : vector<2x32xf32>, vector<32x32xf32>, vector<2x32xf32> -> vector<2x32xf32>
    %403 = arith.addf %401, %402 : vector<2x32xf32>
    %404 = arith.negf %403 : vector<2x32xf32>
    %405 = math.exp %404 : vector<2x32xf32>
    %cst_121 = arith.constant 1.000000e+00 : f32
    %406 = vector.broadcast %cst_121 : f32 to vector<2x32xf32>
    %407 = arith.addf %406, %405 : vector<2x32xf32>
    %408 = arith.divf %406, %407 : vector<2x32xf32>
    %cst_122 = arith.constant dense<0.000000e+00> : vector<2x32xf32>
    %409 = tpu.matmul %391, %275, %cst_122 {dimension_numbers = #tpu.dot_dimension_numbers<[1], [0], [0], [1], [0, 0, 1, 1], [], []>} : vector<2x32xf32>, vector<32x32xf32>, vector<2x32xf32> -> vector<2x32xf32>
    %410 = vector.broadcast %272 : vector<1x32xf32> to vector<2x32xf32>
    %411 = arith.addf %409, %410 : vector<2x32xf32>
    %412 = vector.extract_strided_slice %271 {offsets = [8, 0], sizes = [2, 32], strides = [1, 1]} : vector<16x32xf32> to vector<2x32xf32>
    %413 = arith.mulf %400, %411 : vector<2x32xf32>
    %414 = arith.addf %412, %413 : vector<2x32xf32>
    %415 = math.tanh %414 : vector<2x32xf32>
    %cst_123 = arith.constant 1.000000e+00 : f32
    %416 = vector.broadcast %cst_123 : f32 to vector<2x32xf32>
    %417 = arith.subf %416, %408 : vector<2x32xf32>
    %418 = arith.mulf %417, %415 : vector<2x32xf32>
    %419 = arith.mulf %408, %391 : vector<2x32xf32>
    %420 = arith.addf %418, %419 : vector<2x32xf32>
    %c8_124 = arith.constant 8 : index
    %c0_125 = arith.constant 0 : index
    %421 = vector.load %arg15[%c8_124, %c0_125] : memref<16x32xf32, #tpu.memory_space<vmem>>, vector<2x32xf32>
    tpu.vector_store %arg15[%c8_124, %c0_125], %420 {strides = array<i32>} : memref<16x32xf32, #tpu.memory_space<vmem>>, vector<2x32xf32>,
    %422 = vector.extract_strided_slice %263 {offsets = [10, 0], sizes = [2, 32], strides = [1, 1]} : vector<16x32xf32> to vector<2x32xf32>
    %cst_126 = arith.constant dense<0.000000e+00> : vector<2x32xf32>
    %423 = tpu.matmul %420, %273, %cst_126 {dimension_numbers = #tpu.dot_dimension_numbers<[1], [0], [0], [1], [0, 0, 1, 1], [], []>} : vector<2x32xf32>, vector<32x32xf32>, vector<2x32xf32> -> vector<2x32xf32>
    %424 = arith.addf %422, %423 : vector<2x32xf32>
    %425 = arith.negf %424 : vector<2x32xf32>
    %426 = math.exp %425 : vector<2x32xf32>
    %cst_127 = arith.constant 1.000000e+00 : f32
    %427 = vector.broadcast %cst_127 : f32 to vector<2x32xf32>
    %428 = arith.addf %427, %426 : vector<2x32xf32>
    %429 = arith.divf %427, %428 : vector<2x32xf32>
    %430 = vector.extract_strided_slice %267 {offsets = [10, 0], sizes = [2, 32], strides = [1, 1]} : vector<16x32xf32> to vector<2x32xf32>
    %cst_128 = arith.constant dense<0.000000e+00> : vector<2x32xf32>
    %431 = tpu.matmul %420, %274, %cst_128 {dimension_numbers = #tpu.dot_dimension_numbers<[1], [0], [0], [1], [0, 0, 1, 1], [], []>} : vector<2x32xf32>, vector<32x32xf32>, vector<2x32xf32> -> vector<2x32xf32>
    %432 = arith.addf %430, %431 : vector<2x32xf32>
    %433 = arith.negf %432 : vector<2x32xf32>
    %434 = math.exp %433 : vector<2x32xf32>
    %cst_129 = arith.constant 1.000000e+00 : f32
    %435 = vector.broadcast %cst_129 : f32 to vector<2x32xf32>
    %436 = arith.addf %435, %434 : vector<2x32xf32>
    %437 = arith.divf %435, %436 : vector<2x32xf32>
    %cst_130 = arith.constant dense<0.000000e+00> : vector<2x32xf32>
    %438 = tpu.matmul %420, %275, %cst_130 {dimension_numbers = #tpu.dot_dimension_numbers<[1], [0], [0], [1], [0, 0, 1, 1], [], []>} : vector<2x32xf32>, vector<32x32xf32>, vector<2x32xf32> -> vector<2x32xf32>
    %439 = vector.broadcast %272 : vector<1x32xf32> to vector<2x32xf32>
    %440 = arith.addf %438, %439 : vector<2x32xf32>
    %441 = vector.extract_strided_slice %271 {offsets = [10, 0], sizes = [2, 32], strides = [1, 1]} : vector<16x32xf32> to vector<2x32xf32>
    %442 = arith.mulf %429, %440 : vector<2x32xf32>
    %443 = arith.addf %441, %442 : vector<2x32xf32>
    %444 = math.tanh %443 : vector<2x32xf32>
    %cst_131 = arith.constant 1.000000e+00 : f32
    %445 = vector.broadcast %cst_131 : f32 to vector<2x32xf32>
    %446 = arith.subf %445, %437 : vector<2x32xf32>
    %447 = arith.mulf %446, %444 : vector<2x32xf32>
    %448 = arith.mulf %437, %420 : vector<2x32xf32>
    %449 = arith.addf %447, %448 : vector<2x32xf32>
    %c10_132 = arith.constant 10 : index
    %c0_133 = arith.constant 0 : index
    %450 = vector.load %arg15[%c10_132, %c0_133] : memref<16x32xf32, #tpu.memory_space<vmem>>, vector<2x32xf32>
    tpu.vector_store %arg15[%c10_132, %c0_133], %449 {strides = array<i32>} : memref<16x32xf32, #tpu.memory_space<vmem>>, vector<2x32xf32>,
    %451 = vector.extract_strided_slice %263 {offsets = [12, 0], sizes = [2, 32], strides = [1, 1]} : vector<16x32xf32> to vector<2x32xf32>
    %cst_134 = arith.constant dense<0.000000e+00> : vector<2x32xf32>
    %452 = tpu.matmul %449, %273, %cst_134 {dimension_numbers = #tpu.dot_dimension_numbers<[1], [0], [0], [1], [0, 0, 1, 1], [], []>} : vector<2x32xf32>, vector<32x32xf32>, vector<2x32xf32> -> vector<2x32xf32>
    %453 = arith.addf %451, %452 : vector<2x32xf32>
    %454 = arith.negf %453 : vector<2x32xf32>
    %455 = math.exp %454 : vector<2x32xf32>
    %cst_135 = arith.constant 1.000000e+00 : f32
    %456 = vector.broadcast %cst_135 : f32 to vector<2x32xf32>
    %457 = arith.addf %456, %455 : vector<2x32xf32>
    %458 = arith.divf %456, %457 : vector<2x32xf32>
    %459 = vector.extract_strided_slice %267 {offsets = [12, 0], sizes = [2, 32], strides = [1, 1]} : vector<16x32xf32> to vector<2x32xf32>
    %cst_136 = arith.constant dense<0.000000e+00> : vector<2x32xf32>
    %460 = tpu.matmul %449, %274, %cst_136 {dimension_numbers = #tpu.dot_dimension_numbers<[1], [0], [0], [1], [0, 0, 1, 1], [], []>} : vector<2x32xf32>, vector<32x32xf32>, vector<2x32xf32> -> vector<2x32xf32>
    %461 = arith.addf %459, %460 : vector<2x32xf32>
    %462 = arith.negf %461 : vector<2x32xf32>
    %463 = math.exp %462 : vector<2x32xf32>
    %cst_137 = arith.constant 1.000000e+00 : f32
    %464 = vector.broadcast %cst_137 : f32 to vector<2x32xf32>
    %465 = arith.addf %464, %463 : vector<2x32xf32>
    %466 = arith.divf %464, %465 : vector<2x32xf32>
    %cst_138 = arith.constant dense<0.000000e+00> : vector<2x32xf32>
    %467 = tpu.matmul %449, %275, %cst_138 {dimension_numbers = #tpu.dot_dimension_numbers<[1], [0], [0], [1], [0, 0, 1, 1], [], []>} : vector<2x32xf32>, vector<32x32xf32>, vector<2x32xf32> -> vector<2x32xf32>
    %468 = vector.broadcast %272 : vector<1x32xf32> to vector<2x32xf32>
    %469 = arith.addf %467, %468 : vector<2x32xf32>
    %470 = vector.extract_strided_slice %271 {offsets = [12, 0], sizes = [2, 32], strides = [1, 1]} : vector<16x32xf32> to vector<2x32xf32>
    %471 = arith.mulf %458, %469 : vector<2x32xf32>
    %472 = arith.addf %470, %471 : vector<2x32xf32>
    %473 = math.tanh %472 : vector<2x32xf32>
    %cst_139 = arith.constant 1.000000e+00 : f32
    %474 = vector.broadcast %cst_139 : f32 to vector<2x32xf32>
    %475 = arith.subf %474, %466 : vector<2x32xf32>
    %476 = arith.mulf %475, %473 : vector<2x32xf32>
    %477 = arith.mulf %466, %449 : vector<2x32xf32>
    %478 = arith.addf %476, %477 : vector<2x32xf32>
    %c12_140 = arith.constant 12 : index
    %c0_141 = arith.constant 0 : index
    %479 = vector.load %arg15[%c12_140, %c0_141] : memref<16x32xf32, #tpu.memory_space<vmem>>, vector<2x32xf32>
    tpu.vector_store %arg15[%c12_140, %c0_141], %478 {strides = array<i32>} : memref<16x32xf32, #tpu.memory_space<vmem>>, vector<2x32xf32>,
    %480 = vector.extract_strided_slice %263 {offsets = [14, 0], sizes = [2, 32], strides = [1, 1]} : vector<16x32xf32> to vector<2x32xf32>
    %cst_142 = arith.constant dense<0.000000e+00> : vector<2x32xf32>
    %481 = tpu.matmul %478, %273, %cst_142 {dimension_numbers = #tpu.dot_dimension_numbers<[1], [0], [0], [1], [0, 0, 1, 1], [], []>} : vector<2x32xf32>, vector<32x32xf32>, vector<2x32xf32> -> vector<2x32xf32>
    %482 = arith.addf %480, %481 : vector<2x32xf32>
    %483 = arith.negf %482 : vector<2x32xf32>
    %484 = math.exp %483 : vector<2x32xf32>
    %cst_143 = arith.constant 1.000000e+00 : f32
    %485 = vector.broadcast %cst_143 : f32 to vector<2x32xf32>
    %486 = arith.addf %485, %484 : vector<2x32xf32>
    %487 = arith.divf %485, %486 : vector<2x32xf32>
    %488 = vector.extract_strided_slice %267 {offsets = [14, 0], sizes = [2, 32], strides = [1, 1]} : vector<16x32xf32> to vector<2x32xf32>
    %cst_144 = arith.constant dense<0.000000e+00> : vector<2x32xf32>
    %489 = tpu.matmul %478, %274, %cst_144 {dimension_numbers = #tpu.dot_dimension_numbers<[1], [0], [0], [1], [0, 0, 1, 1], [], []>} : vector<2x32xf32>, vector<32x32xf32>, vector<2x32xf32> -> vector<2x32xf32>
    %490 = arith.addf %488, %489 : vector<2x32xf32>
    %491 = arith.negf %490 : vector<2x32xf32>
    %492 = math.exp %491 : vector<2x32xf32>
    %cst_145 = arith.constant 1.000000e+00 : f32
    %493 = vector.broadcast %cst_145 : f32 to vector<2x32xf32>
    %494 = arith.addf %493, %492 : vector<2x32xf32>
    %495 = arith.divf %493, %494 : vector<2x32xf32>
    %cst_146 = arith.constant dense<0.000000e+00> : vector<2x32xf32>
    %496 = tpu.matmul %478, %275, %cst_146 {dimension_numbers = #tpu.dot_dimension_numbers<[1], [0], [0], [1], [0, 0, 1, 1], [], []>} : vector<2x32xf32>, vector<32x32xf32>, vector<2x32xf32> -> vector<2x32xf32>
    %497 = vector.broadcast %272 : vector<1x32xf32> to vector<2x32xf32>
    %498 = arith.addf %496, %497 : vector<2x32xf32>
    %499 = vector.extract_strided_slice %271 {offsets = [14, 0], sizes = [2, 32], strides = [1, 1]} : vector<16x32xf32> to vector<2x32xf32>
    %500 = arith.mulf %487, %498 : vector<2x32xf32>
    %501 = arith.addf %499, %500 : vector<2x32xf32>
    %502 = math.tanh %501 : vector<2x32xf32>
    %cst_147 = arith.constant 1.000000e+00 : f32
    %503 = vector.broadcast %cst_147 : f32 to vector<2x32xf32>
    %504 = arith.subf %503, %495 : vector<2x32xf32>
    %505 = arith.mulf %504, %502 : vector<2x32xf32>
    %506 = arith.mulf %495, %478 : vector<2x32xf32>
    %507 = arith.addf %505, %506 : vector<2x32xf32>
    %c14_148 = arith.constant 14 : index
    %c0_149 = arith.constant 0 : index
    %508 = vector.load %arg15[%c14_148, %c0_149] : memref<16x32xf32, #tpu.memory_space<vmem>>, vector<2x32xf32>
    tpu.vector_store %arg15[%c14_148, %c0_149], %507 {strides = array<i32>} : memref<16x32xf32, #tpu.memory_space<vmem>>, vector<2x32xf32>,
    %c1 = arith.constant 1 : index
    %c0_150 = arith.constant 0 : index
    %c0_151 = arith.constant 0 : index
    %509 = vector.load %arg14[%c1, %c0_150, %c0_151] : memref<2x2x32xf32, #tpu.memory_space<vmem>>, vector<1x2x32xf32>
    %510 = vector.shape_cast %509 : vector<1x2x32xf32> to vector<2x32xf32>
    %511 = vector.shape_cast %507 : vector<2x32xf32> to vector<1x2x32xf32>
    tpu.vector_store %arg14[%c1, %c0_150, %c0_151], %511 {strides = array<i32>} : memref<2x2x32xf32, #tpu.memory_space<vmem>>, vector<1x2x32xf32>,
    %c0_152 = arith.constant 0 : index
    %c0_153 = arith.constant 0 : index
    %512 = vector.load %arg15[%c0_152, %c0_153] : memref<16x32xf32, #tpu.memory_space<vmem>>, vector<16x32xf32>
    %c0_154 = arith.constant 0 : index
    %c0_155 = arith.constant 0 : index
    %513 = vector.load %arg11[%c0_154, %c0_155] : memref<32x128xf32, #tpu.memory_space<vmem>>, vector<32x128xf32>
    %cst_156 = arith.constant dense<0.000000e+00> : vector<16x128xf32>
    %514 = tpu.matmul %512, %513, %cst_156 {dimension_numbers = #tpu.dot_dimension_numbers<[1], [0], [0], [1], [0, 0, 1, 1], [], []>} : vector<16x32xf32>, vector<32x128xf32>, vector<16x128xf32> -> vector<16x128xf32>
    %c0_157 = arith.constant 0 : index
    %c0_158 = arith.constant 0 : index
    %515 = vector.load %arg12[%c0_157, %c0_158] : memref<1x128xf32, #tpu.memory_space<vmem>>, vector<1x128xf32>
    %516 = vector.broadcast %515 : vector<1x128xf32> to vector<16x128xf32>
    %517 = arith.addf %514, %516 : vector<16x128xf32>
    %c0_159 = arith.constant 0 : index
    %c0_160 = arith.constant 0 : index
    %518 = vector.load %arg13[%c0_159, %c0_160] : memref<16x128xf32, #tpu.memory_space<vmem>>, vector<16x128xf32>
    tpu.vector_store %arg13[%c0_159, %c0_160], %517 {strides = array<i32>} : memref<16x128xf32, #tpu.memory_space<vmem>>, vector<16x128xf32>,
    return
  }
}

</mosaic_0001>

<bundles_post_ra>
// kernel: model_forward.1
= control target key start
LH: loop header
LB: loop body
LE: loop exit
PB: predicated region body
PF: predicated region fallthrough
CT: control target
= control target key end

     0   :  { %vm69_vm0 = vcmask 1043456   ;;  %v5716_v3 = vmov 0.0   ;;  %vm5717_vm1 = vmmov 0   ;;  %s6891_s0 = inlined_call_operand.vmem [shape: f32[16,100], index: 0, kind: input, shape index: {}]   ;;  %s6892_s1 = inlined_call_operand.vmem [shape: f32[100,96], index: 1, kind: input, shape index: {}]   ;;  %s6893_s2 = inlined_call_operand.vmem [shape: f32[32,32], index: 2, kind: input, shape index: {}]   ;;  %s6894_s3 = inlined_call_operand.vmem [shape: f32[32,32], index: 3, kind: input, shape index: {}]   ;;  %s6895_s4 = inlined_call_operand.vmem [shape: f32[32,32], index: 4, kind: input, shape index: {}]   ;;  %s6896_s5 = inlined_call_operand.vmem [shape: f32[4,32], index: 5, kind: input, shape index: {}]   ;;  %s6897_s6 = inlined_call_operand.vmem [shape: f32[32,96], index: 6, kind: input, shape index: {}]   ;;  %s6898_s7 = inlined_call_operand.vmem [shape: f32[32,32], index: 7, kind: input, shape index: {}]   ;;  %s6899_s8 = inlined_call_operand.vmem [shape: f32[32,32], index: 8, kind: input, shape index: {}]   ;;  %s6900_s9 = inlined_call_operand.vmem [shape: f32[32,32], index: 9, kind: input, shape index: {}]   ;;  %s6901_s10 = inlined_call_operand.vmem [shape: f32[4,32], index: 10, kind: input, shape index: {}]   ;;  %s6902_s11 = inlined_call_operand.vmem [shape: f32[32,128], index: 11, kind: input, shape index: {}]   ;;  %s6903_s12 = inlined_call_operand.vmem [shape: f32[1,128], index: 12, kind: input, shape index: {}]   ;;  %s6904_s13 = inlined_call_operand.vmem [shape: f32[16,128], index: 13, kind: output, shape index: {0}]   ;;  %s6905_s14 = inlined_call_operand.hbm [shape: f32[2,2,32], index: 14, kind: output, shape index: {1}]  }
   0x1   :  { %v61_v0 = vld [vmem:[%s6892_s1 + $0x60] sm:$0xf]  ;;  %v5804_v1 = vld [vmem:[%s6893_s2 + $0x18] sm:$0xff]  ;;  %4962 = vmatprep.subr.mxu1 %v5716_v3  ;;  %v5813_v4 = vld [vmem:[%s6893_s2 + $0x10] sm:$0xff]  ;;  %4970 = vmatprep.mubr.msk.f32.mxu1 %vm5717_vm1, %v5716_v3 }
   0x2   :  { %v60_v2 = vld [vmem:[%s6892_s1 + $0x58] sm:$0xff]  ;;  %4933 = vmatprep.subr.msk.mxu0 %vm69_vm0, %v61_v0  ;;  %4963 = vmatpush3.msra.mxu1 %v5804_v1  ;;  %v59_v5 = vld [vmem:[%s6892_s1 + $0x50] sm:$0xff]  ;;  %v5823_v6 = vld [vmem:[%s6893_s2 + $0x8] sm:$0xff] }
   0x3   :  { %4934 = vmatpush3.msk.msra.mxu0 %vm69_vm0, %v61_v0  ;;  %4964 = vmatprep.subr.mxu1 %v5716_v3  ;;  %v58_v7 = vld [vmem:[%s6892_s1 + $0x48] sm:$0xff]  ;;  %v5833_v8 = vld [vmem:[%s6893_s2] sm:$0xff]  ;;  %v56_v10 = vld [vmem:[%s6892_s1 + $0x38] sm:$0xff] }
   0x4   :  { %4935 = vmatprep.subr.mxu0 %v60_v2  ;;  %4965 = vmatpush3.msra.mxu1 %v5813_v4  ;;  %v57_v9 = vld [vmem:[%s6892_s1 + $0x40] sm:$0xff]  ;;  %v5849_v11 = vld [vmem:[%s6894_s3 + $0x18] sm:$0xff] }
   0x5   :  { %4936 = vmatpush3.msra.mxu0 %v60_v2  ;;  %4966 = vmatprep.subr.mxu1 %v5716_v3 }
   0x6   :  { %4937 = vmatprep.subr.mxu0 %v59_v5  ;;  %4967 = vmatpush3.msra.mxu1 %v5823_v6 }
   0x7   :  { %4938 = vmatpush3.msra.mxu0 %v59_v5  ;;  %4968 = vmatprep.subr.mxu1 %v5716_v3 }
   0x8   :  { %4939 = vmatprep.subr.mxu0 %v58_v7  ;;  %4969 = vmatpush3.msra.mxu1 %v5833_v8 }
   0x9   :  { %4940 = vmatpush3.msra.mxu0 %v58_v7 }
   0xa   :  { %4941 = vmatprep.subr.mxu0 %v57_v9 }
   0xb   :  { %20 = vsyncpa [#allocation4], 0  ;;  %4973 = vmatprep.subr.mxu1 %v5716_v3  ;;  %4942 = vmatpush3.msra.mxu0 %v57_v9  ;;  %v55_v12 = vld [vmem:[%s6892_s1 + $0x30] sm:$0xff]  ;;  %v54_v14 = vld [vmem:[%s6892_s1 + $0x28] sm:$0xff]  ;;  %v149_v16 = vlaneseq  ;;  %vm62_vm2 = vcmask 818176   ;;  %s5720_s20 = smov 96  }
   0xc   :  { %4971 = vmatmul.mubr.f32.vlgmr.msra.gmra.mxu1 %v5716_v3  ;;  %4943 = vmatprep.subr.mxu0 %v56_v10  ;;  %v5859_v13 = vld [vmem:[%s6894_s3 + $0x10] sm:$0xff]  ;;  %v5869_v15 = vld [vmem:[%s6894_s3 + $0x8] sm:$0xff]  ;;  %v5876_v17 = vld [vmem:[%s6894_s3] sm:$0xff]  ;;  %vm442_vm3 = vcmask 254976   ;;  %vm187_vm4 = vcmask 261120   ;;  %vm702_vm5 = vcmask 257026  }
   0xd   :  { %4974 = vmatpush3.msra.mxu1 %v5849_v11  ;;  %4944 = vmatpush3.msra.mxu0 %v56_v10  ;;  %v53_v18 = vld [vmem:[%s6892_s1 + $0x20] sm:$0xff]  ;;  %v52_v19 = vld [vmem:[%s6892_s1 + $0x18] sm:$0xff]  ;;  %v5891_v21 = vshrl.u32 %v149_v16, 7  ;;  %v51_v22 = vld [vmem:[%s6892_s1 + $0x10] sm:$0xff]  ;;  %vm1228_vm6 = vcmask 261126   ;;  %vm965_vm7 = vcmask 259076  }
   0xe   :  { %4975 = vmatprep.subr.mxu1 %v5716_v3  ;;  %4945 = vmatprep.subr.mxu0 %v55_v12  ;;  %v47_v20 = vld [vmem:[%s6891_s0] sm:$0xff]  ;;  %v5901_v23 = vld [vmem:[%s6895_s4 + $0x18] sm:$0xff]  ;;  %v50_v24 = vld [vmem:[%s6892_s1 + $0x8] sm:$0xff] }
   0xf   :  { %4976 = vmatpush3.msra.mxu1 %v5859_v13  ;;  %4946 = vmatpush3.msra.mxu0 %v55_v12  ;;  %v5911_v25 = vld [vmem:[%s6895_s4 + $0x10] sm:$0xff]  ;;  %v167_v26 = vsub.s32 2, %v5891_v21  ;;  %v5918_v27 = vld [vmem:[%s6896_s5] sm:$0xf]  ;;  %v157_v28 = vsub.s32 1, %v5891_v21  ;;  %v5928_v30 = vld [vmem:[%s6895_s4 + $0x8] sm:$0xff] }
  0x10   :  { %4977 = vmatprep.subr.mxu1 %v5716_v3  ;;  %4947 = vmatprep.subr.mxu0 %v54_v14  ;;  %v49_v29 = vld [vmem:[%s6892_s1] sm:$0xff]  ;;  %v48_v31 = vld [vmem:[%s6891_s0 + $0x8] sm:$0xff]  ;;  %s5718_s0 = smov 64   ;;  %s5719_s1 = smov 32   ;;  %v151_v38 = vsub.s32 0, %v5891_v21  ;;  %v351_v51 = vsub.s32 3, %v5891_v21 }
  0x11   :  { %4978 = vmatpush3.msra.mxu1 %v5869_v15  ;;  %4948 = vmatpush3.msra.mxu0 %v54_v14  ;;  %v5938_v32 = vld [vmem:[%s6895_s4] sm:$0xff]  ;;  %v168_v33 = vrot.slane %v5918_v27, %v167_v26  ;;  %v158_v34 = vrot.slane %v5918_v27, %v157_v28 }
  0x12   :  { %4979 = vmatprep.subr.mxu1 %v5716_v3  ;;  %4981 = vmatprep.mubr.msk.f32.mxu1 %vm5717_vm1, %v5716_v3  ;;  %v152_v40 = vrot.slane %v5918_v27, %v151_v38  ;;  %v5994_v52 = vrot.slane %v5918_v27, %v351_v51 }
  0x13   :  { %4980 = vmatpush3.msra.mxu1 %v5876_v17  ;;  %4949 = vmatprep.subr.mxu0 %v53_v18 }
  0x14   :  { %4982 = vmatmul.mubr.f32.vlgmr.msra.gmra.mxu1 %v5716_v3  ;;  %4950 = vmatpush3.msra.mxu0 %v53_v18 }
  0x15   :  { %4951 = vmatprep.subr.mxu0 %v52_v19  ;;  %4959 = vmatprep.mubr.msk.f32.mxu0 %vm62_vm2, %v47_v20 }
  0x16   :  { %4952 = vmatpush3.msra.mxu0 %v52_v19  ;;  %4984 = vmatprep.subr.mxu1 %v5716_v3 }
  0x17   :  { %4953 = vmatprep.subr.mxu0 %v51_v22  ;;  %4985 = vmatpush3.msra.mxu1 %v5901_v23 }
  0x18   :  { %4954 = vmatpush3.msra.mxu0 %v51_v22  ;;  %4986 = vmatprep.subr.mxu1 %v5716_v3 }
  0x19   :  { %4955 = vmatprep.subr.mxu0 %v50_v24  ;;  %4987 = vmatpush3.msra.mxu1 %v5911_v25 }
  0x1a   :  { %4956 = vmatpush3.msra.mxu0 %v50_v24  ;;  %4988 = vmatprep.subr.mxu1 %v5716_v3 }
  0x1b   :  { %4957 = vmatprep.subr.mxu0 %v49_v29  ;;  %4989 = vmatpush3.msra.mxu1 %v5928_v30 }
  0x1c   :  { %4958 = vmatpush3.msra.mxu0 %v49_v29  ;;  %4990 = vmatprep.subr.mxu1 %v5716_v3 }
  0x1d   :  { %4960 = vmatmul.mubr.msk.f32.vlgmr.msra.gmra.mxu0 %vm62_vm2, %v48_v31  ;;  %4991 = vmatpush3.msra.mxu1 %v5938_v32 }
  0x1e   :  { %4992 = vmatprep.mubr.msk.f32.mxu1 %vm5717_vm1, %v5716_v3  ;;  %170 = vrot.lane.b32.xlu0 %v168_v33, %s5718_s0 }
  0x1f   :  { %4993 = vmatmul.mubr.f32.vlgmr.msra.gmra.mxu1 %v5716_v3  ;;  %160 = vrot.lane.b32.xlu1 %v158_v34, %s5719_s1 }
  0x20   :  { %4995 = vmatprep.subr.mxu1 %v5716_v3  ;;  %5006 = vmatprep.subr.mxu0 %v5716_v3 }
  0x21   :  { %4996 = vmatpush3.msra.mxu1 %v5804_v1  ;;  %5007 = vmatpush3.msra.mxu0 %v5849_v11 }
  0x22   :  { %4997 = vmatprep.subr.mxu1 %v5716_v3  ;;  %5008 = vmatprep.subr.mxu0 %v5716_v3 }
  0x23   :  { %4998 = vmatpush3.msra.mxu1 %v5813_v4  ;;  %5009 = vmatpush3.msra.mxu0 %v5859_v13 }
  0x24   :  { %4999 = vmatprep.subr.mxu1 %v5716_v3  ;;  %5010 = vmatprep.subr.mxu0 %v5716_v3 }
  0x25   :  { %5000 = vmatpush3.msra.mxu1 %v5823_v6  ;;  %5011 = vmatpush3.msra.mxu0 %v5869_v15 }
  0x26   :  { %5001 = vmatprep.subr.mxu1 %v5716_v3  ;;  %5012 = vmatprep.subr.mxu0 %v5716_v3 }
  0x27   :  { %5002 = vmatpush3.msra.mxu1 %v5833_v8  ;;  %5003 = vmatprep.mubr.msk.f32.mxu1 %vm5717_vm1, %v5716_v3 }
  0x28   :  { %5013 = vmatpush3.msra.mxu0 %v5876_v17  ;;  %5014 = vmatprep.mubr.msk.f32.mxu0 %vm5717_vm1, %v5716_v3 }
  0x29   :  { %5017 = vmatprep.subr.mxu1 %v5716_v3  ;;  %5028 = vmatprep.subr.mxu0 %v5716_v3 }
  0x90   :  { %v5998_v56 = vpop.permute.xlu0 %170 }
  0x91   :  { %v6005_v61 = vpop.permute.xlu1 %160 }
  0xcc   :  { %v257_v35 = vpop.f32.mrf.mxu1 }
  0xce   :  { %v4972_v36 = vpop.f32.mrf.mxu1 }
  0xd4   :  { %v334_v37 = vpop.f32.mrf.mxu1 }
  0xd5   :  { %339 = vrot.lane.b32.xlu1 %v334_v37, %s5719_s1 }
  0xd6   :  { %v4983_v39 = vpop.f32.mrf.mxu1 }
  0xdd   :  { %v5982_v41 = vpop.f32.mrf.mxu0 }
  0xde   :  { %v5985_v42 = vadd.f32 %v5982_v41, %v152_v40 }
  0xdf   :  { %v139_v43 = vpop.f32.mrf.mxu0  ;;  %v419_v44 = vpop.f32.mrf.mxu1 }
  0xe0   :  { %v5987_v45 = vadd.f32 %v152_v40, %v139_v43  ;;  %v420_v53 = vadd.f32 %v419_v44, %v5994_v52  ;;  %v6001_v57 = vadd.f32 %v5998_v56, %v139_v43  ;;  %v6008_v63 = vadd.f32 %v6005_v61, %v139_v43 }
  0xe1   :  { %v4994_v46 = vpop.f32.mrf.mxu1 }
  0xe2   :  { %v261_v47 = vadd.f32 %v257_v35, %v5987_v45 }
  0xe4   :  { %v4587_v48 = vmul.f32 -1.442695, %v261_v47 }
  0xe6   :  { %5519 = vpow2.f32 %v4587_v48 }
  0xf3   :  { %v5520_v49 = vpop.eup %5519 }
  0xf4   :  { %v265_v50 = vadd.f32 1.0, %v5520_v49 }
  0xf6   :  { %5521 = vrcp.f32 %v265_v50 }
 0x103   :  { %v5522_v54 = vpop.eup %5521 }
 0x104   :  { %v423_v55 = vmul.f32 %v5522_v54, %v420_v53 }
 0x106   :  { %425 = vrot.lane.b32.xlu0 %v423_v55, %s5718_s0 }
 0x147   :  { %v340_v62 = vpop.permute.xlu1 %339 }
 0x148   :  { %v342_v0 = vadd.f32 %v340_v62, %v6008_v63 }
 0x14a   :  { %v4588_v2 = vmul.f32 -1.442695, %v342_v0 }
 0x178   :  { %v426_v58 = vpop.permute.xlu0 %425 }
 0x179   :  { %v428_v59 = vadd.f32 %v426_v58, %v6001_v57 }
 0x17b   :  { %5523 = vtanh.f32 %v428_v59 }
 0x17c   :  { %5525 = vpow2.f32 %v4588_v2 }
 0x188   :  { %v5524_v60 = vpop.eup %5523 }
 0x189   :  { %432 = vrot.lane.b32.xlu0 %v5524_v60, %s5720_s20  ;;  %v5526_v5 = vpop.eup %5525 }
 0x18a   :  { %v346_v7 = vadd.f32 1.0, %v5526_v5 }
 0x18c   :  { %5527 = vrcp.f32 %v346_v7 }
 0x199   :  { %v5528_v9 = vpop.eup %5527 }
 0x19a   :  { %v430_v10 = vsub.f32 1.0, %v5528_v9  ;;  %v436_v14 = vmul.f32 0.0, %v5528_v9 }
 0x1fb   :  { %v433_v12 = vpop.permute.xlu0 %432 }
 0x1fc   :  { %v435_v16 = vmul.f32 %v433_v12, %v430_v10 }
 0x1fe   :  { %v6011_v18 = vadd.f32 %v436_v14, %v435_v16 }
 0x200   :  { %439 = vrot.lane.b32.xlu1 %v6011_v18, %s5720_s20  ;;  %v694_v60 = vrot.slane %v6011_v18, 6 }
 0x272   :  { %v440_v19 = vpop.permute.xlu1 %439 }
 0x273   :  { %443 = vst.msk [vmem:[#allocation2] sm:$0x3] %vm442_vm3, %v440_v19  ;;  %5004 = vmatmul.mubr.msk.f32.vlgmr.msra.gmra.mxu1 %vm187_vm4, %v440_v19  ;;  %5015 = vmatmul.mubr.msk.f32.vlgmr.msra.gmra.mxu0 %vm187_vm4, %v440_v19 }
 0x274   :  { %5018 = vmatpush3.msra.mxu1 %v5901_v23  ;;  %5025 = vmatprep.mubr.msk.f32.mxu1 %vm5717_vm1, %v5716_v3 }
 0x275   :  { %5019 = vmatprep.subr.mxu1 %v5716_v3  ;;  %5029 = vmatpush3.msra.mxu0 %v5804_v1 }
 0x276   :  { %5020 = vmatpush3.msra.mxu1 %v5911_v25  ;;  %5030 = vmatprep.subr.mxu0 %v5716_v3 }
 0x277   :  { %5021 = vmatprep.subr.mxu1 %v5716_v3  ;;  %5031 = vmatpush3.msra.mxu0 %v5813_v4 }
 0x278   :  { %5022 = vmatpush3.msra.mxu1 %v5928_v30  ;;  %5032 = vmatprep.subr.mxu0 %v5716_v3 }
 0x279   :  { %5023 = vmatprep.subr.mxu1 %v5716_v3  ;;  %5033 = vmatpush3.msra.mxu0 %v5823_v6 }
 0x27a   :  { %5024 = vmatpush3.msra.mxu1 %v5938_v32  ;;  %5034 = vmatprep.subr.mxu0 %v5716_v3 }
 0x27b   :  { %5026 = vmatmul.mubr.msk.f32.vlgmr.msra.gmra.mxu1 %vm187_vm4, %v440_v19  ;;  %5039 = vmatprep.subr.mxu1 %v5716_v3 }
 0x27c   :  { %5040 = vmatpush3.msra.mxu1 %v5849_v11  ;;  %5035 = vmatpush3.msra.mxu0 %v5833_v8 }
 0x27d   :  { %5041 = vmatprep.subr.mxu1 %v5716_v3  ;;  %5036 = vmatprep.mubr.msk.f32.mxu0 %vm5717_vm1, %v5716_v3 }
 0x27e   :  { %5042 = vmatpush3.msra.mxu1 %v5859_v13  ;;  %5047 = vmatprep.mubr.msk.f32.mxu1 %vm5717_vm1, %v5716_v3 }
 0x27f   :  { %5043 = vmatprep.subr.mxu1 %v5716_v3  ;;  %5050 = vmatprep.subr.mxu0 %v5716_v3 }
 0x280   :  { %5044 = vmatpush3.msra.mxu1 %v5869_v15 }
 0x281   :  { %5045 = vmatprep.subr.mxu1 %v5716_v3 }
 0x282   :  { %5046 = vmatpush3.msra.mxu1 %v5876_v17 }
 0x283   :  { %5061 = vmatprep.subr.mxu1 %v5716_v3 }
 0x333   :  { %v512_v20 = vpop.f32.mrf.mxu1  ;;  %v592_v22 = vpop.f32.mrf.mxu0 }
 0x334   :  { %v517_v24 = vrot.slane %v512_v20, 6  ;;  %v597_v27 = vrot.slane %v592_v22, 6 }
 0x335   :  { %v5005_v29 = vpop.f32.mrf.mxu1  ;;  %v5016_v31 = vpop.f32.mrf.mxu0 }
 0x336   :  { %v519_v33 = vadd.f32 %v517_v24, %v5987_v45  ;;  %598 = vrot.lane.b32.xlu1 %v597_v27, %s5719_s1 }
 0x338   :  { %v4590_v34 = vmul.f32 -1.442695, %v519_v33 }
 0x33a   :  { %5529 = vpow2.f32 %v4590_v34 }
 0x33b   :  { %v674_v35 = vpop.f32.mrf.mxu1 }
 0x33c   :  { %v675_v40 = vadd.f32 %v674_v35, %v5994_v52 }
 0x33d   :  { %v5027_v36 = vpop.f32.mrf.mxu1 }
 0x33e   :  { %v679_v43 = vrot.slane %v675_v40, 6 }
 0x347   :  { %v5530_v37 = vpop.eup %5529 }
 0x348   :  { %v523_v39 = vadd.f32 1.0, %v5530_v37 }
 0x34a   :  { %5531 = vrcp.f32 %v523_v39 }
 0x357   :  { %v5532_v44 = vpop.eup %5531 }
 0x358   :  { %v681_v46 = vmul.f32 %v5532_v44, %v679_v43 }
 0x35a   :  { %683 = vrot.lane.b32.xlu0 %v681_v46, %s5718_s0 }
 0x3a8   :  { %v599_v50 = vpop.permute.xlu1 %598 }
 0x3a9   :  { %v601_v53 = vadd.f32 %v599_v50, %v6008_v63 }
 0x3ab   :  { %v4592_v54 = vmul.f32 -1.442695, %v601_v53 }
 0x3cc   :  { %v684_v47 = vpop.permute.xlu0 %683 }
 0x3cd   :  { %v686_v48 = vadd.f32 %v684_v47, %v6001_v57 }
 0x3cf   :  { %5533 = vtanh.f32 %v686_v48 }
 0x3d0   :  { %5535 = vpow2.f32 %v4592_v54 }
 0x3dc   :  { %v5534_v49 = vpop.eup %5533 }
 0x3dd   :  { %690 = vrot.lane.b32.xlu0 %v5534_v49, %s5720_s20  ;;  %v5536_v55 = vpop.eup %5535 }
 0x3de   :  { %v605_v58 = vadd.f32 1.0, %v5536_v55 }
 0x3e0   :  { %5537 = vrcp.f32 %v605_v58 }
 0x3ed   :  { %v5538_v59 = vpop.eup %5537 }
 0x3ee   :  { %v688_v62 = vsub.f32 1.0, %v5538_v59  ;;  %v696_v5 = vmul.f32 %v5538_v59, %v694_v60 }
 0x44f   :  { %v691_v0 = vpop.permute.xlu0 %690 }
 0x450   :  { %v693_v2 = vmul.f32 %v691_v0, %v688_v62 }
 0x452   :  { %v6057_v7 = vadd.f32 %v696_v5, %v693_v2 }
 0x454   :  { %v704_v9 = vrot.slane %v6057_v7, 2  ;;  %v957_v54 = vrot.slane %v6057_v7, 6 }
 0x456   :  { %705 = vrot.lane.b32.xlu1 %v704_v9, %s5720_s20 }
 0x4c8   :  { %v706_v10 = vpop.permute.xlu1 %705 }
 0x4c9   :  { %5037 = vmatmul.mubr.msk.f32.vlgmr.msra.gmra.mxu0 %vm187_vm4, %v706_v10  ;;  %5048 = vmatmul.mubr.msk.f32.vlgmr.msra.gmra.mxu1 %vm187_vm4, %v706_v10 }
 0x4ca   :  { %5051 = vmatpush3.msra.mxu0 %v5901_v23  ;;  %5058 = vmatprep.mubr.msk.f32.mxu0 %vm5717_vm1, %v5716_v3 }
 0x4cb   :  { %5052 = vmatprep.subr.mxu0 %v5716_v3  ;;  %5062 = vmatpush3.msra.mxu1 %v5804_v1 }
 0x4cc   :  { %5053 = vmatpush3.msra.mxu0 %v5911_v25  ;;  %5063 = vmatprep.subr.mxu1 %v5716_v3 }
 0x4cd   :  { %5054 = vmatprep.subr.mxu0 %v5716_v3  ;;  %5064 = vmatpush3.msra.mxu1 %v5813_v4 }
 0x4ce   :  { %5055 = vmatpush3.msra.mxu0 %v5928_v30  ;;  %5065 = vmatprep.subr.mxu1 %v5716_v3 }
 0x4cf   :  { %5056 = vmatprep.subr.mxu0 %v5716_v3  ;;  %5066 = vmatpush3.msra.mxu1 %v5823_v6 }
 0x4d0   :  { %5057 = vmatpush3.msra.mxu0 %v5938_v32  ;;  %5067 = vmatprep.subr.mxu1 %v5716_v3 }
 0x4d1   :  { %5059 = vmatmul.mubr.msk.f32.vlgmr.msra.gmra.mxu0 %vm187_vm4, %v706_v10  ;;  %5072 = vmatprep.subr.mxu0 %v5716_v3 }
 0x4d2   :  { %5073 = vmatpush3.msra.mxu0 %v5849_v11  ;;  %5068 = vmatpush3.msra.mxu1 %v5833_v8 }
 0x4d3   :  { %5074 = vmatprep.subr.mxu0 %v5716_v3  ;;  %5069 = vmatprep.mubr.msk.f32.mxu1 %vm5717_vm1, %v5716_v3 }
 0x4d4   :  { %5075 = vmatpush3.msra.mxu0 %v5859_v13  ;;  %5080 = vmatprep.mubr.msk.f32.mxu0 %vm5717_vm1, %v5716_v3 }
 0x4d5   :  { %5076 = vmatprep.subr.mxu0 %v5716_v3  ;;  %5083 = vmatprep.subr.mxu1 %v5716_v3 }
 0x4d6   :  { %5077 = vmatpush3.msra.mxu0 %v5869_v15 }
 0x4d7   :  { %5078 = vmatprep.subr.mxu0 %v5716_v3 }
 0x4d8   :  { %5079 = vmatpush3.msra.mxu0 %v5876_v17 }
 0x4d9   :  { %5094 = vmatprep.subr.mxu0 %v5716_v3 }
 0x589   :  { %v775_v12 = vpop.f32.mrf.mxu0  ;;  %v855_v14 = vpop.f32.mrf.mxu1 }
 0x58a   :  { %v780_v16 = vrot.slane %v775_v12, 4  ;;  %v860_v18 = vrot.slane %v855_v14, 4 }
 0x58b   :  { %v5038_v19 = vpop.f32.mrf.mxu0  ;;  %v5049_v20 = vpop.f32.mrf.mxu1 }
 0x58c   :  { %v782_v22 = vadd.f32 %v780_v16, %v5987_v45  ;;  %861 = vrot.lane.b32.xlu1 %v860_v18, %s5719_s1 }
 0x58e   :  { %v4595_v24 = vmul.f32 -1.442695, %v782_v22 }
 0x590   :  { %5539 = vpow2.f32 %v4595_v24 }
 0x591   :  { %v937_v27 = vpop.f32.mrf.mxu0 }
 0x592   :  { %v938_v34 = vadd.f32 %v937_v27, %v5994_v52 }
 0x593   :  { %v5060_v29 = vpop.f32.mrf.mxu0 }
 0x594   :  { %v942_v35 = vrot.slane %v938_v34, 4 }
 0x59d   :  { %v5540_v31 = vpop.eup %5539 }
 0x59e   :  { %v786_v33 = vadd.f32 1.0, %v5540_v31 }
 0x5a0   :  { %5541 = vrcp.f32 %v786_v33 }
 0x5ad   :  { %v5542_v36 = vpop.eup %5541 }
 0x5ae   :  { %v944_v37 = vmul.f32 %v5542_v36, %v942_v35 }
 0x5b0   :  { %946 = vrot.lane.b32.xlu0 %v944_v37, %s5718_s0 }
 0x5fe   :  { %v862_v44 = vpop.permute.xlu1 %861 }
 0x5ff   :  { %v864_v46 = vadd.f32 %v862_v44, %v6008_v63 }
 0x601   :  { %v4597_v47 = vmul.f32 -1.442695, %v864_v46 }
 0x622   :  { %v947_v39 = vpop.permute.xlu0 %946 }
 0x623   :  { %v949_v40 = vadd.f32 %v947_v39, %v6001_v57 }
 0x625   :  { %5543 = vtanh.f32 %v949_v40 }
 0x626   :  { %5545 = vpow2.f32 %v4597_v47 }
 0x632   :  { %v5544_v43 = vpop.eup %5543 }
 0x633   :  { %953 = vrot.lane.b32.xlu0 %v5544_v43, %s5720_s20  ;;  %v5546_v48 = vpop.eup %5545 }
 0x634   :  { %v868_v49 = vadd.f32 1.0, %v5546_v48 }
 0x636   :  { %5547 = vrcp.f32 %v868_v49 }
 0x643   :  { %v5548_v50 = vpop.eup %5547 }
 0x644   :  { %v951_v53 = vsub.f32 1.0, %v5548_v50  ;;  %v959_v58 = vmul.f32 %v5548_v50, %v957_v54 }
 0x6a5   :  { %v954_v55 = vpop.permute.xlu0 %953 }
 0x6a6   :  { %v956_v59 = vmul.f32 %v954_v55, %v951_v53 }
 0x6a8   :  { %v6102_v60 = vadd.f32 %v959_v58, %v956_v59 }
 0x6aa   :  { %v967_v62 = vrot.slane %v6102_v60, 4  ;;  %v1220_v46 = vrot.slane %v6102_v60, 6 }
 0x6ac   :  { %968 = vrot.lane.b32.xlu1 %v967_v62, %s5720_s20 }
 0x71e   :  { %v969_v0 = vpop.permute.xlu1 %968 }
 0x71f   :  { %5070 = vmatmul.mubr.msk.f32.vlgmr.msra.gmra.mxu1 %vm187_vm4, %v969_v0  ;;  %5081 = vmatmul.mubr.msk.f32.vlgmr.msra.gmra.mxu0 %vm187_vm4, %v969_v0 }
 0x720   :  { %5084 = vmatpush3.msra.mxu1 %v5901_v23  ;;  %5091 = vmatprep.mubr.msk.f32.mxu1 %vm5717_vm1, %v5716_v3 }
 0x721   :  { %5085 = vmatprep.subr.mxu1 %v5716_v3  ;;  %5095 = vmatpush3.msra.mxu0 %v5804_v1 }
 0x722   :  { %5086 = vmatpush3.msra.mxu1 %v5911_v25  ;;  %5096 = vmatprep.subr.mxu0 %v5716_v3 }
 0x723   :  { %5087 = vmatprep.subr.mxu1 %v5716_v3  ;;  %5097 = vmatpush3.msra.mxu0 %v5813_v4 }
 0x724   :  { %5088 = vmatpush3.msra.mxu1 %v5928_v30  ;;  %5098 = vmatprep.subr.mxu0 %v5716_v3 }
 0x725   :  { %5089 = vmatprep.subr.mxu1 %v5716_v3  ;;  %5099 = vmatpush3.msra.mxu0 %v5823_v6 }
 0x726   :  { %5090 = vmatpush3.msra.mxu1 %v5938_v32  ;;  %5100 = vmatprep.subr.mxu0 %v5716_v3 }
 0x727   :  { %5092 = vmatmul.mubr.msk.f32.vlgmr.msra.gmra.mxu1 %vm187_vm4, %v969_v0  ;;  %5105 = vmatprep.subr.mxu1 %v5716_v3 }
 0x728   :  { %5106 = vmatpush3.msra.mxu1 %v5849_v11  ;;  %5101 = vmatpush3.msra.mxu0 %v5833_v8 }
 0x729   :  { %5107 = vmatprep.subr.mxu1 %v5716_v3  ;;  %5102 = vmatprep.mubr.msk.f32.mxu0 %vm5717_vm1, %v5716_v3 }
 0x72a   :  { %5108 = vmatpush3.msra.mxu1 %v5859_v13  ;;  %5113 = vmatprep.mubr.msk.f32.mxu1 %vm5717_vm1, %v5716_v3 }
 0x72b   :  { %5109 = vmatprep.subr.mxu1 %v5716_v3  ;;  %5116 = vmatprep.subr.mxu0 %v5716_v3 }
 0x72c   :  { %5110 = vmatpush3.msra.mxu1 %v5869_v15 }
 0x72d   :  { %5111 = vmatprep.subr.mxu1 %v5716_v3 }
 0x72e   :  { %5112 = vmatpush3.msra.mxu1 %v5876_v17 }
 0x72f   :  { %5127 = vmatprep.subr.mxu1 %v5716_v3 }
 0x7df   :  { %v1038_v2 = vpop.f32.mrf.mxu1  ;;  %v1118_v5 = vpop.f32.mrf.mxu0 }
 0x7e0   :  { %v1043_v9 = vrot.slane %v1038_v2, 2  ;;  %v1123_v10 = vrot.slane %v1118_v5, 2 }
 0x7e1   :  { %v5071_v12 = vpop.f32.mrf.mxu1  ;;  %v5082_v14 = vpop.f32.mrf.mxu0 }
 0x7e2   :  { %v1045_v16 = vadd.f32 %v1043_v9, %v5987_v45  ;;  %1124 = vrot.lane.b32.xlu1 %v1123_v10, %s5719_s1 }
 0x7e4   :  { %v4600_v18 = vmul.f32 -1.442695, %v1045_v16 }
 0x7e6   :  { %5549 = vpow2.f32 %v4600_v18  ;;  %v6192_v18 = vadd.f32 %v5982_v41, %v5998_v56 }
 0x7e7   :  { %v1200_v19 = vpop.f32.mrf.mxu1 }
 0x7e8   :  { %v1201_v27 = vadd.f32 %v1200_v19, %v5994_v52 }
 0x7e9   :  { %v5093_v20 = vpop.f32.mrf.mxu1 }
 0x7ea   :  { %v1205_v29 = vrot.slane %v1201_v27, 2  ;;  %v6198_v27 = vadd.f32 %v5982_v41, %v6005_v61 }
 0x7f3   :  { %v5550_v22 = vpop.eup %5549 }
 0x7f4   :  { %v1049_v24 = vadd.f32 1.0, %v5550_v22 }
 0x7f6   :  { %5551 = vrcp.f32 %v1049_v24 }
 0x803   :  { %v5552_v31 = vpop.eup %5551 }
 0x804   :  { %v1207_v33 = vmul.f32 %v5552_v31, %v1205_v29 }
 0x806   :  { %1209 = vrot.lane.b32.xlu0 %v1207_v33, %s5718_s0 }
 0x854   :  { %v1125_v36 = vpop.permute.xlu1 %1124 }
 0x855   :  { %v1127_v37 = vadd.f32 %v1125_v36, %v6008_v63 }
 0x857   :  { %v4602_v39 = vmul.f32 -1.442695, %v1127_v37 }
 0x878   :  { %v1210_v34 = vpop.permute.xlu0 %1209 }
 0x879   :  { %v1212_v35 = vadd.f32 %v1210_v34, %v6001_v57 }
 0x87b   :  { %5553 = vtanh.f32 %v1212_v35 }
 0x87c   :  { %5555 = vpow2.f32 %v4602_v39 }
 0x888   :  { %v5554_v45 = vpop.eup %5553 }
 0x889   :  { %1216 = vrot.lane.b32.xlu0 %v5554_v45, %s5720_s20  ;;  %v5556_v40 = vpop.eup %5555 }
 0x88a   :  { %v1131_v43 = vadd.f32 1.0, %v5556_v40 }
 0x88c   :  { %5557 = vrcp.f32 %v1131_v43 }
 0x899   :  { %v5558_v44 = vpop.eup %5557 }
 0x89a   :  { %v1214_v47 = vsub.f32 1.0, %v5558_v44  ;;  %v1222_v50 = vmul.f32 %v5558_v44, %v1220_v46 }
 0x8fb   :  { %v1217_v48 = vpop.permute.xlu0 %1216 }
 0x8fc   :  { %v1219_v49 = vmul.f32 %v1217_v48, %v1214_v47 }
 0x8fe   :  { %v6147_v57 = vadd.f32 %v1222_v50, %v1219_v49 }
 0x900   :  { %v1230_v53 = vrot.slane %v6147_v57, 6 }
 0x902   :  { %1231 = vrot.lane.b32.xlu1 %v1230_v53, %s5720_s20 }
 0x974   :  { %v1232_v63 = vpop.permute.xlu1 %1231 }
 0x975   :  { %5103 = vmatmul.mubr.msk.f32.vlgmr.msra.gmra.mxu0 %vm187_vm4, %v1232_v63  ;;  %5114 = vmatmul.mubr.msk.f32.vlgmr.msra.gmra.mxu1 %vm187_vm4, %v1232_v63 }
 0x976   :  { %5117 = vmatpush3.msra.mxu0 %v5901_v23  ;;  %5124 = vmatprep.mubr.msk.f32.mxu0 %vm5717_vm1, %v5716_v3 }
 0x977   :  { %5118 = vmatprep.subr.mxu0 %v5716_v3  ;;  %5128 = vmatpush3.msra.mxu1 %v5804_v1 }
 0x978   :  { %5119 = vmatpush3.msra.mxu0 %v5911_v25  ;;  %5129 = vmatprep.subr.mxu1 %v5716_v3 }
 0x979   :  { %5120 = vmatprep.subr.mxu0 %v5716_v3  ;;  %5130 = vmatpush3.msra.mxu1 %v5813_v4 }
 0x97a   :  { %5121 = vmatpush3.msra.mxu0 %v5928_v30  ;;  %5131 = vmatprep.subr.mxu1 %v5716_v3 }
 0x97b   :  { %5122 = vmatprep.subr.mxu0 %v5716_v3  ;;  %5132 = vmatpush3.msra.mxu1 %v5823_v6 }
 0x97c   :  { %5123 = vmatpush3.msra.mxu0 %v5938_v32  ;;  %5133 = vmatprep.subr.mxu1 %v5716_v3 }
 0x97d   :  { %5125 = vmatmul.mubr.msk.f32.vlgmr.msra.gmra.mxu0 %vm187_vm4, %v1232_v63  ;;  %5138 = vmatprep.subr.mxu0 %v5716_v3 }
 0x97e   :  { %5139 = vmatpush3.msra.mxu0 %v5849_v11  ;;  %5134 = vmatpush3.msra.mxu1 %v5833_v8 }
 0x97f   :  { %5140 = vmatprep.subr.mxu0 %v5716_v3  ;;  %5135 = vmatprep.mubr.msk.f32.mxu1 %vm5717_vm1, %v5716_v3 }
 0x980   :  { %5141 = vmatpush3.msra.mxu0 %v5859_v13  ;;  %5146 = vmatprep.mubr.msk.f32.mxu0 %vm5717_vm1, %v5716_v3 }
 0x981   :  { %5142 = vmatprep.subr.mxu0 %v5716_v3  ;;  %5149 = vmatprep.subr.mxu1 %v5716_v3 }
 0x982   :  { %5143 = vmatpush3.msra.mxu0 %v5869_v15 }
 0x983   :  { %5144 = vmatprep.subr.mxu0 %v5716_v3 }
 0x984   :  { %5145 = vmatpush3.msra.mxu0 %v5876_v17 }
 0x985   :  { %5160 = vmatprep.subr.mxu0 %v5716_v3 }
 0xa35   :  { %v1301_v54 = vpop.f32.mrf.mxu0  ;;  %v1378_v55 = vpop.f32.mrf.mxu1 }
 0xa36   :  { %v1305_v58 = vadd.f32 %v1301_v54, %v5985_v42  ;;  %1383 = vrot.lane.b32.xlu1 %v1378_v55, %s5719_s1 }
 0xa37   :  { %v5104_v59 = vpop.f32.mrf.mxu0  ;;  %v5115_v62 = vpop.f32.mrf.mxu1 }
 0xa38   :  { %v4605_v0 = vmul.f32 -1.442695, %v1305_v58 }
 0xa3a   :  { %5559 = vpow2.f32 %v4605_v0 }
 0xa3d   :  { %v1459_v2 = vpop.f32.mrf.mxu0 }
 0xa3e   :  { %v1460_v12 = vadd.f32 %v1459_v2, %v5994_v52 }
 0xa3f   :  { %v5126_v5 = vpop.f32.mrf.mxu0 }
 0xa47   :  { %v5560_v9 = vpop.eup %5559 }
 0xa48   :  { %v1309_v10 = vadd.f32 1.0, %v5560_v9 }
 0xa4a   :  { %5561 = vrcp.f32 %v1309_v10 }
 0xa57   :  { %v5562_v14 = vpop.eup %5561 }
 0xa58   :  { %v1463_v16 = vmul.f32 %v5562_v14, %v1460_v12 }
 0xa5a   :  { %1465 = vrot.lane.b32.xlu0 %v1463_v16, %s5718_s0 }
 0xaa8   :  { %v1384_v24 = vpop.permute.xlu1 %1383 }
 0xaa9   :  { %v1386_v29 = vadd.f32 %v1384_v24, %v6198_v27  ;;  %v5681_v24 = vld [vmem:[%s6893_s2 + $0x8] sm:$0xff] }
 0xaab   :  { %v4607_v31 = vmul.f32 -1.442695, %v1386_v29  ;;  %v5685_v29 = vld [vmem:[%s6894_s3 + $0x8] sm:$0xff] }
 0xacc   :  { %v1466_v19 = vpop.permute.xlu0 %1465 }
 0xacd   :  { %v1468_v20 = vadd.f32 %v1466_v19, %v6192_v18 }
 0xacf   :  { %5563 = vtanh.f32 %v1468_v20 }
 0xad0   :  { %5565 = vpow2.f32 %v4607_v31 }
 0xadc   :  { %v5564_v22 = vpop.eup %5563 }
 0xadd   :  { %1472 = vrot.lane.b32.xlu0 %v5564_v22, %s5720_s20  ;;  %v5566_v33 = vpop.eup %5565  ;;  %v5679_v22 = vld [vmem:[%s6893_s2 + $0x18] sm:$0xff] }
 0xade   :  { %v1390_v34 = vadd.f32 1.0, %v5566_v33 }
 0xae0   :  { %5567 = vrcp.f32 %v1390_v34 }
 0xaed   :  { %v5568_v56 = vpop.eup %5567 }
 0xaee   :  { %v1470_v35 = vsub.f32 1.0, %v5568_v56  ;;  %v1477_v36 = vmul.f32 %v5568_v56, %v1230_v53 }
 0xb4f   :  { %v1473_v45 = vpop.permute.xlu0 %1472 }
 0xb50   :  { %v1475_v37 = vmul.f32 %v1473_v45, %v1470_v35 }
 0xb52   :  { %v6203_v39 = vadd.f32 %v1477_v36, %v1475_v37 }
 0xb54   :  { %1480 = vrot.lane.b32.xlu1 %v6203_v39, %s5720_s20  ;;  %v1734_v5 = vrot.slane %v6203_v39, 6 }
 0xbc6   :  { %v1481_v41 = vpop.permute.xlu1 %1480 }
 0xbc7   :  { %1483 = vst.msk [vmem:[#allocation2 + $0x8] sm:$0x3] %vm442_vm3, %v1481_v41  ;;  %5136 = vmatmul.mubr.msk.f32.vlgmr.msra.gmra.mxu1 %vm187_vm4, %v1481_v41  ;;  %5147 = vmatmul.mubr.msk.f32.vlgmr.msra.gmra.mxu0 %vm187_vm4, %v1481_v41 }
 0xbc8   :  { %5150 = vmatpush3.msra.mxu1 %v5901_v23  ;;  %5157 = vmatprep.mubr.msk.f32.mxu1 %vm5717_vm1, %v5716_v3 }
 0xbc9   :  { %5151 = vmatprep.subr.mxu1 %v5716_v3  ;;  %5161 = vmatpush3.msra.mxu0 %v5804_v1 }
 0xbca   :  { %5152 = vmatpush3.msra.mxu1 %v5911_v25  ;;  %5162 = vmatprep.subr.mxu0 %v5716_v3 }
 0xbcb   :  { %5153 = vmatprep.subr.mxu1 %v5716_v3  ;;  %5163 = vmatpush3.msra.mxu0 %v5813_v4 }
 0xbcc   :  { %5154 = vmatpush3.msra.mxu1 %v5928_v30  ;;  %5164 = vmatprep.subr.mxu0 %v5716_v3 }
 0xbcd   :  { %5155 = vmatprep.subr.mxu1 %v5716_v3  ;;  %5165 = vmatpush3.msra.mxu0 %v5823_v6 }
 0xbce   :  { %5156 = vmatpush3.msra.mxu1 %v5938_v32  ;;  %5166 = vmatprep.subr.mxu0 %v5716_v3 }
 0xbcf   :  { %5158 = vmatmul.mubr.msk.f32.vlgmr.msra.gmra.mxu1 %vm187_vm4, %v1481_v41  ;;  %5171 = vmatprep.subr.mxu1 %v5716_v3 }
 0xbd0   :  { %5172 = vmatpush3.msra.mxu1 %v5849_v11  ;;  %5167 = vmatpush3.msra.mxu0 %v5833_v8 }
 0xbd1   :  { %5173 = vmatprep.subr.mxu1 %v5716_v3  ;;  %5168 = vmatprep.mubr.msk.f32.mxu0 %vm5717_vm1, %v5716_v3 }
 0xbd2   :  { %5174 = vmatpush3.msra.mxu1 %v5859_v13  ;;  %5179 = vmatprep.mubr.msk.f32.mxu1 %vm5717_vm1, %v5716_v3 }
 0xbd3   :  { %5175 = vmatprep.subr.mxu1 %v5716_v3  ;;  %5182 = vmatprep.subr.mxu0 %v5716_v3 }
 0xbd4   :  { %5176 = vmatpush3.msra.mxu1 %v5869_v15 }
 0xbd5   :  { %5177 = vmatprep.subr.mxu1 %v5716_v3 }
 0xbd6   :  { %5178 = vmatpush3.msra.mxu1 %v5876_v17 }
 0xbd7   :  { %5193 = vmatprep.subr.mxu1 %v5716_v3 }
 0xc87   :  { %v1552_v1 = vpop.f32.mrf.mxu1  ;;  %v1632_v4 = vpop.f32.mrf.mxu0 }
 0xc88   :  { %v1557_v6 = vrot.slane %v1552_v1, 6  ;;  %v1637_v8 = vrot.slane %v1632_v4, 6 }
 0xc89   :  { %v5137_v11 = vpop.f32.mrf.mxu1  ;;  %v5148_v13 = vpop.f32.mrf.mxu0 }
 0xc8a   :  { %v1559_v61 = vadd.f32 %v1557_v6, %v5985_v42  ;;  %1638 = vrot.lane.b32.xlu1 %v1637_v8, %s5719_s1 }
 0xc8c   :  { %v4610_v40 = vmul.f32 -1.442695, %v1559_v61 }
 0xc8e   :  { %5569 = vpow2.f32 %v4610_v40 }
 0xc8f   :  { %v1714_v43 = vpop.f32.mrf.mxu1 }
 0xc90   :  { %v1715_v47 = vadd.f32 %v1714_v43, %v5994_v52 }
 0xc91   :  { %v5159_v15 = vpop.f32.mrf.mxu1 }
 0xc92   :  { %v1719_v48 = vrot.slane %v1715_v47, 6 }
 0xc9b   :  { %v5570_v44 = vpop.eup %5569 }
 0xc9c   :  { %v1563_v46 = vadd.f32 1.0, %v5570_v44 }
 0xc9e   :  { %5571 = vrcp.f32 %v1563_v46 }
 0xcab   :  { %v5572_v49 = vpop.eup %5571 }
 0xcac   :  { %v1721_v50 = vmul.f32 %v5572_v49, %v1719_v48 }
 0xcae   :  { %1723 = vrot.lane.b32.xlu0 %v1721_v50, %s5718_s0 }
 0xcfc   :  { %v1639_v55 = vpop.permute.xlu1 %1638 }
 0xcfd   :  { %v1641_v58 = vadd.f32 %v1639_v55, %v6198_v27 }
 0xcff   :  { %v4612_v59 = vmul.f32 -1.442695, %v1641_v58 }
 0xd20   :  { %v1724_v53 = vpop.permute.xlu0 %1723 }
 0xd21   :  { %v1726_v63 = vadd.f32 %v1724_v53, %v6192_v18 }
 0xd23   :  { %5573 = vtanh.f32 %v1726_v63 }
 0xd24   :  { %5575 = vpow2.f32 %v4612_v59 }
 0xd30   :  { %v5574_v54 = vpop.eup %5573 }
 0xd31   :  { %1730 = vrot.lane.b32.xlu0 %v5574_v54, %s5720_s20  ;;  %v5576_v62 = vpop.eup %5575 }
 0xd32   :  { %v1645_v0 = vadd.f32 1.0, %v5576_v62  ;;  %v5686_v62 = vld [vmem:[%s6895_s4 + $0x18] sm:$0xff] }
 0xd34   :  { %5577 = vrcp.f32 %v1645_v0  ;;  %v5687_v0 = vld [vmem:[%s6895_s4 + $0x10] sm:$0xff] }
 0xd41   :  { %v5578_v2 = vpop.eup %5577 }
 0xd42   :  { %v1728_v9 = vsub.f32 1.0, %v5578_v2  ;;  %v1736_v14 = vmul.f32 %v5578_v2, %v1734_v5  ;;  %v5688_v2 = vld [vmem:[%s6895_s4 + $0x8] sm:$0xff]  ;;  %v5689_v5 = vld [vmem:[%s6895_s4] sm:$0xff] }
 0xda3   :  { %v1731_v10 = vpop.permute.xlu0 %1730 }
 0xda4   :  { %v1733_v12 = vmul.f32 %v1731_v10, %v1728_v9 }
 0xda6   :  { %v6249_v16 = vadd.f32 %v1736_v14, %v1733_v12 }
 0xda8   :  { %v1743_v19 = vrot.slane %v6249_v16, 2  ;;  %v1996_v50 = vrot.slane %v6249_v16, 6 }
 0xdaa   :  { %1744 = vrot.lane.b32.xlu1 %v1743_v19, %s5720_s20 }
 0xe1c   :  { %v1745_v20 = vpop.permute.xlu1 %1744 }
 0xe1d   :  { %5169 = vmatmul.mubr.msk.f32.vlgmr.msra.gmra.mxu0 %vm187_vm4, %v1745_v20  ;;  %5180 = vmatmul.mubr.msk.f32.vlgmr.msra.gmra.mxu1 %vm187_vm4, %v1745_v20 }
 0xe1e   :  { %5183 = vmatpush3.msra.mxu0 %v5901_v23  ;;  %5190 = vmatprep.mubr.msk.f32.mxu0 %vm5717_vm1, %v5716_v3  ;;  %v5680_v23 = vld [vmem:[%s6893_s2 + $0x10] sm:$0xff] }
 0xe1f   :  { %5184 = vmatprep.subr.mxu0 %v5716_v3  ;;  %5194 = vmatpush3.msra.mxu1 %v5679_v22 }
 0xe20   :  { %5185 = vmatpush3.msra.mxu0 %v5911_v25  ;;  %5195 = vmatprep.subr.mxu1 %v5716_v3  ;;  %v5682_v25 = vld [vmem:[%s6894_s3 + $0x18] sm:$0xff] }
 0xe21   :  { %5186 = vmatprep.subr.mxu0 %v5716_v3  ;;  %5196 = vmatpush3.msra.mxu1 %v5680_v23 }
 0xe22   :  { %5187 = vmatpush3.msra.mxu0 %v5928_v30  ;;  %5197 = vmatprep.subr.mxu1 %v5716_v3  ;;  %v5683_v30 = vld [vmem:[%s6893_s2] sm:$0xff] }
 0xe23   :  { %5188 = vmatprep.subr.mxu0 %v5716_v3  ;;  %5198 = vmatpush3.msra.mxu1 %v5681_v24 }
 0xe24   :  { %5189 = vmatpush3.msra.mxu0 %v5938_v32  ;;  %5199 = vmatprep.subr.mxu1 %v5716_v3  ;;  %v5684_v32 = vld [vmem:[%s6894_s3 + $0x10] sm:$0xff] }
 0xe25   :  { %5191 = vmatmul.mubr.msk.f32.vlgmr.msra.gmra.mxu0 %vm187_vm4, %v1745_v20  ;;  %5204 = vmatprep.subr.mxu0 %v5716_v3 }
 0xe26   :  { %5205 = vmatpush3.msra.mxu0 %v5682_v25  ;;  %5200 = vmatpush3.msra.mxu1 %v5683_v30 }
 0xe27   :  { %5206 = vmatprep.subr.mxu0 %v5716_v3  ;;  %5201 = vmatprep.mubr.msk.f32.mxu1 %vm5717_vm1, %v5716_v3 }
 0xe28   :  { %5207 = vmatpush3.msra.mxu0 %v5684_v32  ;;  %5212 = vmatprep.mubr.msk.f32.mxu0 %vm5717_vm1, %v5716_v3 }
 0xe29   :  { %5208 = vmatprep.subr.mxu0 %v5716_v3  ;;  %5215 = vmatprep.subr.mxu1 %v5716_v3 }
 0xe2a   :  { %5209 = vmatpush3.msra.mxu0 %v5685_v29 }
 0xe2b   :  { %5210 = vmatprep.subr.mxu0 %v5716_v3 }
 0xe2c   :  { %5211 = vmatpush3.msra.mxu0 %v5876_v17 }
 0xedd   :  { %v1814_v31 = vpop.f32.mrf.mxu0  ;;  %v1894_v33 = vpop.f32.mrf.mxu1 }
 0xede   :  { %v1819_v34 = vrot.slane %v1814_v31, 4  ;;  %v1899_v56 = vrot.slane %v1894_v33, 4 }
 0xedf   :  { %v5170_v35 = vpop.f32.mrf.mxu0  ;;  %v5181_v45 = vpop.f32.mrf.mxu1 }
 0xee0   :  { %v1821_v36 = vadd.f32 %v1819_v34, %v5985_v42  ;;  %1900 = vrot.lane.b32.xlu1 %v1899_v56, %s5719_s1 }
 0xee2   :  { %v4615_v37 = vmul.f32 -1.442695, %v1821_v36 }
 0xee4   :  { %5579 = vpow2.f32 %v4615_v37 }
 0xee5   :  { %v1976_v39 = vpop.f32.mrf.mxu0 }
 0xee6   :  { %v1977_v6 = vadd.f32 %v1976_v39, %v5994_v52 }
 0xee7   :  { %v5192_v41 = vpop.f32.mrf.mxu0 }
 0xee8   :  { %v1981_v17 = vrot.slane %v1977_v6, 4 }
 0xef1   :  { %v5580_v1 = vpop.eup %5579 }
 0xef2   :  { %v1825_v4 = vadd.f32 1.0, %v5580_v1  ;;  %v2272_v1 = vld [vmem:[%s6897_s6 + $0x10] sm:$0xff] }
 0xef4   :  { %5581 = vrcp.f32 %v1825_v4  ;;  %v6378_v4 = vld [vmem:[%s6898_s7 + $0x8] sm:$0xff] }
 0xf01   :  { %v5582_v8 = vpop.eup %5581 }
 0xf02   :  { %v1983_v11 = vmul.f32 %v5582_v8, %v1981_v17  ;;  %v2270_v17 = vld [vmem:[%s6897_s6] sm:$0xff] }
 0xf04   :  { %1985 = vrot.lane.b32.xlu0 %v1983_v11, %s5718_s0 }
 0xf52   :  { %v1901_v43 = vpop.permute.xlu1 %1900 }
 0xf53   :  { %v1903_v15 = vadd.f32 %v1901_v43, %v6198_v27 }
 0xf55   :  { %v4617_v44 = vmul.f32 -1.442695, %v1903_v15 }
 0xf76   :  { %v1986_v13 = vpop.permute.xlu0 %1985 }
 0xf77   :  { %v1988_v61 = vadd.f32 %v1986_v13, %v6192_v18 }
 0xf79   :  { %5583 = vtanh.f32 %v1988_v61  ;;  %v6391_v61 = vld [vmem:[%s6898_s7] sm:$0xff] }
 0xf7a   :  { %5585 = vpow2.f32 %v4617_v44  ;;  %v6405_v44 = vld [vmem:[%s6900_s9 + $0x10] sm:$0xff] }
 0xf86   :  { %v5584_v40 = vpop.eup %5583 }
 0xf87   :  { %1992 = vrot.lane.b32.xlu0 %v5584_v40, %s5720_s20  ;;  %v5586_v46 = vpop.eup %5585  ;;  %v6396_v40 = vld [vmem:[%s6900_s9 + $0x18] sm:$0xff] }
 0xf88   :  { %v1907_v47 = vadd.f32 1.0, %v5586_v46 }
 0xf8a   :  { %5587 = vrcp.f32 %v1907_v47 }
 0xf97   :  { %v5588_v48 = vpop.eup %5587 }
 0xf98   :  { %v1990_v49 = vsub.f32 1.0, %v5588_v48  ;;  %v1998_v63 = vmul.f32 %v5588_v48, %v1996_v50  ;;  %v6414_v48 = vld [vmem:[%s6900_s9 + $0x8] sm:$0xff] }
 0xff9   :  { %v1993_v53 = vpop.permute.xlu0 %1992 }
 0xffa   :  { %v1995_v54 = vmul.f32 %v1993_v53, %v1990_v49  ;;  %v6423_v49 = vld [vmem:[%s6900_s9] sm:$0xff] }
 0xffb   :  { %v6430_v53 = vld [vmem:[%s6901_s10] sm:$0xf] }
 0xffc   :  { %v6307_v55 = vadd.f32 %v1998_v63, %v1995_v54  ;;  %v2375_v63 = vrot.slane %v6430_v53, %v167_v26  ;;  %v6441_v54 = vld [vmem:[%s6899_s8 + $0x18] sm:$0xff]  ;;  %v6452_v26 = vld [vmem:[%s6899_s8 + $0x10] sm:$0xff] }
 0xffe   :  { %v2005_v58 = vrot.slane %v6307_v55, 4  ;;  %v2258_v8 = vrot.slane %v6307_v55, 6 }
0x1000   :  { %2006 = vrot.lane.b32.xlu1 %v2005_v58, %s5720_s20 }
0x1072   :  { %v2007_v59 = vpop.permute.xlu1 %2006 }
0x1073   :  { %5202 = vmatmul.mubr.msk.f32.vlgmr.msra.gmra.mxu1 %vm187_vm4, %v2007_v59  ;;  %5213 = vmatmul.mubr.msk.f32.vlgmr.msra.gmra.mxu0 %vm187_vm4, %v2007_v59 }
0x1074   :  { %5216 = vmatpush3.msra.mxu1 %v5686_v62  ;;  %5223 = vmatprep.mubr.msk.f32.mxu1 %vm5717_vm1, %v5716_v3 }
0x1075   :  { %5217 = vmatprep.subr.mxu1 %v5716_v3 }
0x1076   :  { %5218 = vmatpush3.msra.mxu1 %v5687_v0 }
0x1077   :  { %5219 = vmatprep.subr.mxu1 %v5716_v3 }
0x1078   :  { %5220 = vmatpush3.msra.mxu1 %v5688_v2 }
0x1079   :  { %5221 = vmatprep.subr.mxu1 %v5716_v3 }
0x107a   :  { %5222 = vmatpush3.msra.mxu1 %v5689_v5 }
0x107b   :  { %5224 = vmatmul.mubr.msk.f32.vlgmr.msra.gmra.mxu1 %vm187_vm4, %v2007_v59  ;;  %5237 = vmatprep.subr.mxu1 %v5716_v3  ;;  %v6470_v59 = vld [vmem:[%s6899_s8] sm:$0xff] }
0x107c   :  { %5245 = vmatprep.mubr.msk.f32.mxu1 %vm5717_vm1, %v5716_v3 }
0x1133   :  { %v2076_v9 = vpop.f32.mrf.mxu1  ;;  %v2156_v10 = vpop.f32.mrf.mxu0 }
0x1134   :  { %v2081_v12 = vrot.slane %v2076_v9, 2  ;;  %v2161_v14 = vrot.slane %v2156_v10, 2 }
0x1135   :  { %v5203_v19 = vpop.f32.mrf.mxu1  ;;  %v5214_v20 = vpop.f32.mrf.mxu0 }
0x1136   :  { %v2083_v22 = vadd.f32 %v2081_v12, %v5985_v42  ;;  %2162 = vrot.lane.b32.xlu1 %v2161_v14, %s5719_s1  ;;  %v2359_v12 = vrot.slane %v6430_v53, %v151_v38  ;;  %v6513_v38 = vrot.slane %v6430_v53, %v351_v51 }
0x1138   :  { %v4620_v23 = vmul.f32 -1.442695, %v2083_v22 }
0x113a   :  { %5589 = vpow2.f32 %v4620_v23  ;;  %699 = vrot.lane.b32.xlu1 %v6057_v7, %s5720_s20 }
0x113b   :  { %v2238_v24 = vpop.f32.mrf.mxu1 }
0x113c   :  { %v2239_v42 = vadd.f32 %v2238_v24, %v5994_v52 }
0x113d   :  { %v5225_v25 = vpop.f32.mrf.mxu1 }
0x113e   :  { %1225 = vrot.lane.b32.xlu1 %v6147_v57, %s5720_s20  ;;  %v2243_v29 = vrot.slane %v2239_v42, 2 }
0x1142   :  { %2001 = vrot.lane.b32.xlu1 %v6307_v55, %s5720_s20  ;;  %v2365_v55 = vrot.slane %v6430_v53, %v157_v28  ;;  %v6462_v28 = vld [vmem:[%s6899_s8 + $0x8] sm:$0xff] }
0x1146   :  { %2377 = vrot.lane.b32.xlu1 %v2375_v63, %s5718_s0 }
0x1147   :  { %v5590_v30 = vpop.eup %5589 }
0x1148   :  { %v2087_v32 = vadd.f32 1.0, %v5590_v30 }
0x114a   :  { %5591 = vrcp.f32 %v2087_v32  ;;  %2367 = vrot.lane.b32.xlu1 %v2365_v55, %s5719_s1 }
0x1157   :  { %v5592_v31 = vpop.eup %5591 }
0x1158   :  { %v2245_v33 = vmul.f32 %v5592_v31, %v2243_v29 }
0x115a   :  { %2247 = vrot.lane.b32.xlu0 %v2245_v33, %s5718_s0 }
0x11a8   :  { %v2163_v34 = vpop.permute.xlu1 %2162 }
0x11a9   :  { %v2165_v36 = vadd.f32 %v2163_v34, %v6198_v27  ;;  %v6369_v27 = vld [vmem:[%s6898_s7 + $0x10] sm:$0xff] }
0x11ab   :  { %v4622_v37 = vmul.f32 -1.442695, %v2165_v36 }
0x11ac   :  { %v700_v7 = vpop.permute.xlu1 %699 }
0x11ad   :  { %703 = vst.msk [vmem:[#allocation2] sm:$0xc] %vm702_vm5, %v700_v7 }
0x11b0   :  { %v1226_v57 = vpop.permute.xlu1 %1225 }
0x11b1   :  { %1229 = vst.msk [vmem:[#allocation2] sm:$0xc0] %vm1228_vm6, %v1226_v57 }
0x11b4   :  { %v2002_v56 = vpop.permute.xlu1 %2001 }
0x11b5   :  { %2004 = vst.msk [vmem:[#allocation2 + $0x8] sm:$0x30] %vm965_vm7, %v2002_v56 }
0x11b8   :  { %v6518_v34 = vpop.permute.xlu1 %2377 }
0x11bc   :  { %v6525_v51 = vpop.permute.xlu1 %2367 }
0x11cc   :  { %v2248_v35 = vpop.permute.xlu0 %2247 }
0x11cd   :  { %v2250_v52 = vadd.f32 %v2248_v35, %v6192_v18  ;;  %v2273_v18 = vld [vmem:[%s6897_s6 + $0x18] sm:$0xff] }
0x11ce   :  { %5226 = vmatprep.subr.mxu0 %v2273_v18 }
0x11cf   :  { %5593 = vtanh.f32 %v2250_v52  ;;  %5227 = vmatpush3.msra.mxu0 %v2273_v18 }
0x11d0   :  { %5595 = vpow2.f32 %v4622_v37  ;;  %5228 = vmatprep.subr.mxu0 %v2272_v1 }
0x11d1   :  { %5229 = vmatpush3.msra.mxu0 %v2272_v1 }
0x11dc   :  { %v5594_v45 = vpop.eup %5593 }
0x11dd   :  { %2254 = vrot.lane.b32.xlu0 %v5594_v45, %s5720_s20  ;;  %v5596_v39 = vpop.eup %5595 }
0x11de   :  { %v2169_v41 = vadd.f32 1.0, %v5596_v39 }
0x11e0   :  { %5597 = vrcp.f32 %v2169_v41 }
0x11e1   :  { %962 = vrot.lane.b32.xlu0 %v6102_v60, %s5720_s20  ;;  %v6363_v60 = vld [vmem:[%s6898_s7 + $0x18] sm:$0xff] }
0x11e2   :  { %5238 = vmatpush3.msra.mxu1 %v6363_v60 }
0x11e3   :  { %5239 = vmatprep.subr.mxu1 %v5716_v3 }
0x11e4   :  { %5240 = vmatpush3.msra.mxu1 %v6369_v27 }
0x11e5   :  { %1739 = vrot.lane.b32.xlu0 %v6249_v16, %s5720_s20  ;;  %v2271_v16 = vld [vmem:[%s6897_s6 + $0x8] sm:$0xff]  ;;  %5241 = vmatprep.subr.mxu1 %v5716_v3 }
0x11e6   :  { %5230 = vmatprep.subr.mxu0 %v2271_v16  ;;  %5242 = vmatpush3.msra.mxu1 %v6378_v4 }
0x11e7   :  { %5231 = vmatpush3.msra.mxu0 %v2271_v16  ;;  %5243 = vmatprep.subr.mxu1 %v5716_v3 }
0x11e8   :  { %5232 = vmatprep.subr.mxu0 %v2270_v17  ;;  %5244 = vmatpush3.msra.mxu1 %v6391_v61 }
0x11e9   :  { %5233 = vmatpush3.msra.mxu0 %v2270_v17  ;;  %5246 = vmatmul.mubr.f32.vlgmr.msra.gmra.mxu1 %v5716_v3 }
0x11ea   :  { %5248 = vmatprep.subr.mxu0 %v5716_v3  ;;  %5259 = vmatprep.subr.mxu1 %v5716_v3 }
0x11eb   :  { %5260 = vmatpush3.msra.mxu1 %v6396_v40  ;;  %5267 = vmatprep.mubr.msk.f32.mxu1 %vm5717_vm1, %v5716_v3 }
0x11ec   :  { %5261 = vmatprep.subr.mxu1 %v5716_v3 }
0x11ed   :  { %v5598_v6 = vpop.eup %5597  ;;  %5262 = vmatpush3.msra.mxu1 %v6405_v44 }
0x11ee   :  { %v2252_v11 = vsub.f32 1.0, %v5598_v6  ;;  %v2260_v15 = vmul.f32 %v5598_v6, %v2258_v8  ;;  %5263 = vmatprep.subr.mxu1 %v5716_v3 }
0x11ef   :  { %5264 = vmatpush3.msra.mxu1 %v6414_v48 }
0x11f0   :  { %5265 = vmatprep.subr.mxu1 %v5716_v3 }
0x11f1   :  { %5266 = vmatpush3.msra.mxu1 %v6423_v49 }
0x11f2   :  { %5268 = vmatmul.mubr.f32.vlgmr.msra.gmra.mxu1 %v5716_v3  ;;  %5281 = vmatprep.subr.mxu1 %v5716_v3 }
0x11f3   :  { %5282 = vmatpush3.msra.mxu1 %v6441_v54  ;;  %5289 = vmatprep.mubr.msk.f32.mxu1 %vm5717_vm1, %v5716_v3 }
0x11f4   :  { %5283 = vmatprep.subr.mxu1 %v5716_v3 }
0x11f5   :  { %5284 = vmatpush3.msra.mxu1 %v6452_v26 }
0x11f6   :  { %5285 = vmatprep.subr.mxu1 %v5716_v3 }
0x11f7   :  { %5286 = vmatpush3.msra.mxu1 %v6462_v28 }
0x11f8   :  { %5287 = vmatprep.subr.mxu1 %v5716_v3 }
0x11f9   :  { %5288 = vmatpush3.msra.mxu1 %v6470_v59 }
0x11fa   :  { %5303 = vmatprep.subr.mxu1 %v5716_v3 }
0x124f   :  { %v2255_v13 = vpop.permute.xlu0 %2254 }
0x1250   :  { %v2257_v43 = vmul.f32 %v2255_v13, %v2252_v11 }
0x1252   :  { %v2261_v46 = vadd.f32 %v2260_v15, %v2257_v43 }
0x1253   :  { %v963_v47 = vpop.permute.xlu0 %962 }
0x1254   :  { %966 = vst.msk [vmem:[#allocation2] sm:$0x30] %vm965_vm7, %v963_v47  ;;  %2263 = vrot.lane.b32.xlu0 %v2261_v46, %s5720_s20 }
0x1257   :  { %v1740_v50 = vpop.permute.xlu0 %1739 }
0x1258   :  { %1742 = vst.msk [vmem:[#allocation2 + $0x8] sm:$0xc] %vm702_vm5, %v1740_v50 }
0x125b   :  { %v2268_v58 = vld [vmem:[#allocation2] sm:$0xff] }
0x125c   :  { %5234 = vmatprep.mubr.msk.f32.mxu0 %vm187_vm4, %v2268_v58 }
0x12a9   :  { %v2460_v2 = vpop.f32.mrf.mxu1 }
0x12ab   :  { %v5247_v5 = vpop.f32.mrf.mxu1 }
0x12b2   :  { %v2622_v9 = vpop.f32.mrf.mxu1 }
0x12b3   :  { %v2623_v29 = vadd.f32 %v2622_v9, %v6513_v38 }
0x12b4   :  { %v5269_v10 = vpop.f32.mrf.mxu1 }
0x12c6   :  { %v2264_v62 = vpop.permute.xlu0 %2263 }
0x12c7   :  { %2266 = vst.msk [vmem:[#allocation2 + $0x8] sm:$0xc0] %vm1228_vm6, %v2264_v62  ;;  %2267 = vst.msk [vmem:[#allocation3 - $0x6] sm:$0xc0] %vm1228_vm6, %v2264_v62 }
0x12ce   :  { %v2269_v0 = vld [vmem:[#allocation2 + $0x8] sm:$0xff] }
0x12cf   :  { %5235 = vmatmul.mubr.msk.f32.vlgmr.msra.gmra.mxu0 %vm187_vm4, %v2269_v0 }
0x12d0   :  { %5249 = vmatpush3.msra.mxu0 %v6441_v54  ;;  %5256 = vmatprep.mubr.msk.f32.mxu0 %vm5717_vm1, %v5716_v3 }
0x12d1   :  { %5250 = vmatprep.subr.mxu0 %v5716_v3 }
0x12d2   :  { %5251 = vmatpush3.msra.mxu0 %v6452_v26 }
0x12d3   :  { %5252 = vmatprep.subr.mxu0 %v5716_v3 }
0x12d4   :  { %5253 = vmatpush3.msra.mxu0 %v6462_v28 }
0x12d5   :  { %5254 = vmatprep.subr.mxu0 %v5716_v3 }
0x12d6   :  { %5255 = vmatpush3.msra.mxu0 %v6470_v59 }
0x12d7   :  { %5257 = vmatmul.mubr.f32.vlgmr.msra.gmra.mxu0 %v5716_v3  ;;  %5270 = vmatprep.subr.mxu0 %v5716_v3 }
0x12d8   :  { %5271 = vmatpush3.msra.mxu0 %v6363_v60  ;;  %5278 = vmatprep.mubr.msk.f32.mxu0 %vm5717_vm1, %v5716_v3 }
0x12d9   :  { %5272 = vmatprep.subr.mxu0 %v5716_v3 }
0x12da   :  { %5273 = vmatpush3.msra.mxu0 %v6369_v27 }
0x12db   :  { %5274 = vmatprep.subr.mxu0 %v5716_v3 }
0x12dc   :  { %5275 = vmatpush3.msra.mxu0 %v6378_v4 }
0x12dd   :  { %5276 = vmatprep.subr.mxu0 %v5716_v3 }
0x12de   :  { %5277 = vmatpush3.msra.mxu0 %v6391_v61 }
0x12df   :  { %5292 = vmatprep.subr.mxu0 %v5716_v3 }
0x138f   :  { %v6502_v14 = vpop.f32.mrf.mxu0 }
0x1390   :  { %v6505_v19 = vadd.f32 %v6502_v14, %v2359_v12 }
0x1391   :  { %v2346_v20 = vpop.f32.mrf.mxu0 }
0x1392   :  { %v6507_v22 = vadd.f32 %v2359_v12, %v2346_v20  ;;  %v6521_v7 = vadd.f32 %v6518_v34, %v2346_v20  ;;  %v6528_v52 = vadd.f32 %v6525_v51, %v2346_v20 }
0x1394   :  { %v2464_v23 = vadd.f32 %v2460_v2, %v6507_v22 }
0x1396   :  { %v4626_v24 = vmul.f32 -1.442695, %v2464_v23 }
0x1397   :  { %v2537_v25 = vpop.f32.mrf.mxu0 }
0x1398   :  { %5599 = vpow2.f32 %v4626_v24 }
0x1399   :  { %v5258_v30 = vpop.f32.mrf.mxu0 }
0x13a5   :  { %v5600_v32 = vpop.eup %5599 }
0x13a6   :  { %v2468_v42 = vadd.f32 1.0, %v5600_v32 }
0x13a8   :  { %5601 = vrcp.f32 %v2468_v42 }
0x13b5   :  { %v5602_v31 = vpop.eup %5601 }
0x13b6   :  { %v2626_v33 = vmul.f32 %v5602_v31, %v2623_v29 }
0x13b8   :  { %2628 = vrot.lane.b32.xlu0 %v2626_v33, %s5718_s0 }
0x13bc   :  { %2542 = vrot.lane.b32.xlu0 %v2537_v25, %s5719_s1 }
0x142a   :  { %v2629_v57 = vpop.permute.xlu0 %2628 }
0x142b   :  { %v2631_v56 = vadd.f32 %v2629_v57, %v6521_v7 }
0x142d   :  { %5603 = vtanh.f32 %v2631_v56 }
0x142e   :  { %v2543_v35 = vpop.permute.xlu0 %2542 }
0x142f   :  { %v2545_v45 = vadd.f32 %v2543_v35, %v6528_v52 }
0x1431   :  { %v4627_v36 = vmul.f32 -1.442695, %v2545_v45 }
0x1433   :  { %5605 = vpow2.f32 %v4627_v36 }
0x143a   :  { %v5604_v21 = vpop.eup %5603 }
0x143b   :  { %2635 = vrot.lane.b32.xlu1 %v5604_v21, %s5720_s20 }
0x1440   :  { %v5606_v37 = vpop.eup %5605 }
0x1441   :  { %v2549_v39 = vadd.f32 1.0, %v5606_v37 }
0x1443   :  { %5607 = vrcp.f32 %v2549_v39 }
0x1450   :  { %v5608_v41 = vpop.eup %5607 }
0x1451   :  { %v2633_v18 = vsub.f32 1.0, %v5608_v41  ;;  %v2639_v6 = vmul.f32 0.0, %v5608_v41 }
0x14ad   :  { %v2636_v1 = vpop.permute.xlu1 %2635 }
0x14ae   :  { %v2638_v16 = vmul.f32 %v2636_v1, %v2633_v18 }
0x14b0   :  { %v6531_v17 = vadd.f32 %v2639_v6, %v2638_v16 }
0x14b2   :  { %2642 = vrot.lane.b32.xlu0 %v6531_v17, %s5720_s20  ;;  %v2896_v29 = vrot.slane %v6531_v17, 6 }
0x1524   :  { %v2643_v8 = vpop.permute.xlu0 %2642 }
0x1525   :  { %2645 = vst.msk [vmem:[#allocation2] sm:$0x3] %vm442_vm3, %v2643_v8  ;;  %5279 = vmatmul.mubr.msk.f32.vlgmr.msra.gmra.mxu0 %vm187_vm4, %v2643_v8  ;;  %5290 = vmatmul.mubr.msk.f32.vlgmr.msra.gmra.mxu1 %vm187_vm4, %v2643_v8 }
0x1526   :  { %5293 = vmatpush3.msra.mxu0 %v6396_v40  ;;  %5300 = vmatprep.mubr.msk.f32.mxu0 %vm5717_vm1, %v5716_v3 }
0x1527   :  { %5294 = vmatprep.subr.mxu0 %v5716_v3  ;;  %5304 = vmatpush3.msra.mxu1 %v6363_v60 }
0x1528   :  { %5295 = vmatpush3.msra.mxu0 %v6405_v44  ;;  %5305 = vmatprep.subr.mxu1 %v5716_v3 }
0x1529   :  { %5296 = vmatprep.subr.mxu0 %v5716_v3  ;;  %5306 = vmatpush3.msra.mxu1 %v6369_v27 }
0x152a   :  { %5297 = vmatpush3.msra.mxu0 %v6414_v48  ;;  %5307 = vmatprep.subr.mxu1 %v5716_v3 }
0x152b   :  { %5298 = vmatprep.subr.mxu0 %v5716_v3  ;;  %5308 = vmatpush3.msra.mxu1 %v6378_v4 }
0x152c   :  { %5299 = vmatpush3.msra.mxu0 %v6423_v49  ;;  %5309 = vmatprep.subr.mxu1 %v5716_v3 }
0x152d   :  { %5301 = vmatmul.mubr.msk.f32.vlgmr.msra.gmra.mxu0 %vm187_vm4, %v2643_v8  ;;  %5314 = vmatprep.subr.mxu0 %v5716_v3 }
0x152e   :  { %5315 = vmatpush3.msra.mxu0 %v6441_v54  ;;  %5310 = vmatpush3.msra.mxu1 %v6391_v61 }
0x152f   :  { %5316 = vmatprep.subr.mxu0 %v5716_v3  ;;  %5311 = vmatprep.mubr.msk.f32.mxu1 %vm5717_vm1, %v5716_v3 }
0x1530   :  { %5317 = vmatpush3.msra.mxu0 %v6452_v26  ;;  %5322 = vmatprep.mubr.msk.f32.mxu0 %vm5717_vm1, %v5716_v3 }
0x1531   :  { %5318 = vmatprep.subr.mxu0 %v5716_v3  ;;  %5325 = vmatprep.subr.mxu1 %v5716_v3 }
0x1532   :  { %5319 = vmatpush3.msra.mxu0 %v6462_v28 }
0x1533   :  { %5320 = vmatprep.subr.mxu0 %v5716_v3 }
0x1534   :  { %5321 = vmatpush3.msra.mxu0 %v6470_v59 }
0x1535   :  { %5336 = vmatprep.subr.mxu0 %v5716_v3 }
0x15e5   :  { %v2714_v11 = vpop.f32.mrf.mxu0  ;;  %v2794_v13 = vpop.f32.mrf.mxu1 }
0x15e6   :  { %v2719_v43 = vrot.slane %v2714_v11, 6  ;;  %v2799_v15 = vrot.slane %v2794_v13, 6 }
0x15e7   :  { %v5280_v46 = vpop.f32.mrf.mxu0  ;;  %v5291_v47 = vpop.f32.mrf.mxu1 }
0x15e8   :  { %v2721_v50 = vadd.f32 %v2719_v43, %v6507_v22  ;;  %2800 = vrot.lane.b32.xlu0 %v2799_v15, %s5719_s1 }
0x15ea   :  { %v4629_v53 = vmul.f32 -1.442695, %v2721_v50 }
0x15ec   :  { %5609 = vpow2.f32 %v4629_v53 }
0x15ed   :  { %v2876_v63 = vpop.f32.mrf.mxu0 }
0x15ee   :  { %v2877_v0 = vadd.f32 %v2876_v63, %v6513_v38 }
0x15ef   :  { %v5302_v55 = vpop.f32.mrf.mxu0 }
0x15f0   :  { %v2881_v2 = vrot.slane %v2877_v0, 6 }
0x15f9   :  { %v5610_v58 = vpop.eup %5609 }
0x15fa   :  { %v2725_v62 = vadd.f32 1.0, %v5610_v58 }
0x15fc   :  { %5611 = vrcp.f32 %v2725_v62 }
0x1609   :  { %v5612_v5 = vpop.eup %5611 }
0x160a   :  { %v2883_v9 = vmul.f32 %v5612_v5, %v2881_v2 }
0x160c   :  { %2885 = vrot.lane.b32.xlu1 %v2883_v9, %s5718_s0 }
0x165a   :  { %v2801_v23 = vpop.permute.xlu0 %2800 }
0x165b   :  { %v2803_v24 = vadd.f32 %v2801_v23, %v6528_v52 }
0x165d   :  { %v4631_v25 = vmul.f32 -1.442695, %v2803_v24 }
0x167e   :  { %v2886_v10 = vpop.permute.xlu1 %2885 }
0x167f   :  { %v2888_v12 = vadd.f32 %v2886_v10, %v6521_v7 }
0x1681   :  { %5613 = vtanh.f32 %v2888_v12 }
0x1682   :  { %5615 = vpow2.f32 %v4631_v25 }
0x168e   :  { %v5614_v20 = vpop.eup %5613 }
0x168f   :  { %2892 = vrot.lane.b32.xlu1 %v5614_v20, %s5720_s20  ;;  %v5616_v30 = vpop.eup %5615 }
0x1690   :  { %v2807_v32 = vadd.f32 1.0, %v5616_v30 }
0x1692   :  { %5617 = vrcp.f32 %v2807_v32 }
0x169f   :  { %v5618_v42 = vpop.eup %5617 }
0x16a0   :  { %v2890_v31 = vsub.f32 1.0, %v5618_v42  ;;  %v2898_v56 = vmul.f32 %v5618_v42, %v2896_v29 }
0x1701   :  { %v2893_v33 = vpop.permute.xlu1 %2892 }
0x1702   :  { %v2895_v57 = vmul.f32 %v2893_v33, %v2890_v31 }
0x1704   :  { %v6577_v21 = vadd.f32 %v2898_v56, %v2895_v57 }
0x1706   :  { %v2905_v35 = vrot.slane %v6577_v21, 2  ;;  %v3158_v10 = vrot.slane %v6577_v21, 6 }
0x1708   :  { %2906 = vrot.lane.b32.xlu0 %v2905_v35, %s5720_s20 }
0x177a   :  { %v2907_v45 = vpop.permute.xlu0 %2906 }
0x177b   :  { %5312 = vmatmul.mubr.msk.f32.vlgmr.msra.gmra.mxu1 %vm187_vm4, %v2907_v45  ;;  %5323 = vmatmul.mubr.msk.f32.vlgmr.msra.gmra.mxu0 %vm187_vm4, %v2907_v45 }
0x177c   :  { %5326 = vmatpush3.msra.mxu1 %v6396_v40  ;;  %5333 = vmatprep.mubr.msk.f32.mxu1 %vm5717_vm1, %v5716_v3 }
0x177d   :  { %5327 = vmatprep.subr.mxu1 %v5716_v3  ;;  %5337 = vmatpush3.msra.mxu0 %v6363_v60 }
0x177e   :  { %5328 = vmatpush3.msra.mxu1 %v6405_v44  ;;  %5338 = vmatprep.subr.mxu0 %v5716_v3 }
0x177f   :  { %5329 = vmatprep.subr.mxu1 %v5716_v3  ;;  %5339 = vmatpush3.msra.mxu0 %v6369_v27 }
0x1780   :  { %5330 = vmatpush3.msra.mxu1 %v6414_v48  ;;  %5340 = vmatprep.subr.mxu0 %v5716_v3 }
0x1781   :  { %5331 = vmatprep.subr.mxu1 %v5716_v3  ;;  %5341 = vmatpush3.msra.mxu0 %v6378_v4 }
0x1782   :  { %5332 = vmatpush3.msra.mxu1 %v6423_v49  ;;  %5342 = vmatprep.subr.mxu0 %v5716_v3 }
0x1783   :  { %5334 = vmatmul.mubr.msk.f32.vlgmr.msra.gmra.mxu1 %vm187_vm4, %v2907_v45  ;;  %5347 = vmatprep.subr.mxu1 %v5716_v3 }
0x1784   :  { %5348 = vmatpush3.msra.mxu1 %v6441_v54  ;;  %5343 = vmatpush3.msra.mxu0 %v6391_v61 }
0x1785   :  { %5349 = vmatprep.subr.mxu1 %v5716_v3  ;;  %5344 = vmatprep.mubr.msk.f32.mxu0 %vm5717_vm1, %v5716_v3 }
0x1786   :  { %5350 = vmatpush3.msra.mxu1 %v6452_v26  ;;  %5355 = vmatprep.mubr.msk.f32.mxu1 %vm5717_vm1, %v5716_v3 }
0x1787   :  { %5351 = vmatprep.subr.mxu1 %v5716_v3  ;;  %5358 = vmatprep.subr.mxu0 %v5716_v3 }
0x1788   :  { %5352 = vmatpush3.msra.mxu1 %v6462_v28 }
0x1789   :  { %5353 = vmatprep.subr.mxu1 %v5716_v3 }
0x178a   :  { %5354 = vmatpush3.msra.mxu1 %v6470_v59 }
0x178b   :  { %5369 = vmatprep.subr.mxu1 %v5716_v3 }
0x183b   :  { %v2976_v36 = vpop.f32.mrf.mxu1  ;;  %v3056_v37 = vpop.f32.mrf.mxu0 }
0x183c   :  { %v2981_v39 = vrot.slane %v2976_v36, 4  ;;  %v3061_v41 = vrot.slane %v3056_v37, 4 }
0x183d   :  { %v5313_v18 = vpop.f32.mrf.mxu1  ;;  %v5324_v1 = vpop.f32.mrf.mxu0 }
0x183e   :  { %v2983_v16 = vadd.f32 %v2981_v39, %v6507_v22  ;;  %3062 = vrot.lane.b32.xlu0 %v3061_v41, %s5719_s1 }
0x1840   :  { %v4634_v6 = vmul.f32 -1.442695, %v2983_v16 }
0x1842   :  { %5619 = vpow2.f32 %v4634_v6 }
0x1843   :  { %v3138_v17 = vpop.f32.mrf.mxu1 }
0x1844   :  { %v3139_v43 = vadd.f32 %v3138_v17, %v6513_v38 }
0x1845   :  { %v5335_v8 = vpop.f32.mrf.mxu1 }
0x1846   :  { %v3143_v15 = vrot.slane %v3139_v43, 4 }
0x184f   :  { %v5620_v11 = vpop.eup %5619 }
0x1850   :  { %v2987_v13 = vadd.f32 1.0, %v5620_v11 }
0x1852   :  { %5621 = vrcp.f32 %v2987_v13 }
0x185f   :  { %v5622_v46 = vpop.eup %5621 }
0x1860   :  { %v3145_v47 = vmul.f32 %v5622_v46, %v3143_v15 }
0x1862   :  { %3147 = vrot.lane.b32.xlu1 %v3145_v47, %s5718_s0 }
0x18b0   :  { %v3063_v55 = vpop.permute.xlu0 %3062 }
0x18b1   :  { %v3065_v58 = vadd.f32 %v3063_v55, %v6528_v52 }
0x18b3   :  { %v4636_v62 = vmul.f32 -1.442695, %v3065_v58 }
0x18d4   :  { %v3148_v50 = vpop.permute.xlu1 %3147 }
0x18d5   :  { %v3150_v53 = vadd.f32 %v3148_v50, %v6521_v7 }
0x18d7   :  { %5623 = vtanh.f32 %v3150_v53 }
0x18d8   :  { %5625 = vpow2.f32 %v4636_v62 }
0x18e4   :  { %v5624_v63 = vpop.eup %5623 }
0x18e5   :  { %3154 = vrot.lane.b32.xlu1 %v5624_v63, %s5720_s20  ;;  %v5626_v0 = vpop.eup %5625 }
0x18e6   :  { %v3069_v2 = vadd.f32 1.0, %v5626_v0 }
0x18e8   :  { %5627 = vrcp.f32 %v3069_v2 }
0x18f5   :  { %v5628_v5 = vpop.eup %5627 }
0x18f6   :  { %v3152_v9 = vsub.f32 1.0, %v5628_v5  ;;  %v3160_v20 = vmul.f32 %v5628_v5, %v3158_v10 }
0x1957   :  { %v3155_v12 = vpop.permute.xlu1 %3154 }
0x1958   :  { %v3157_v23 = vmul.f32 %v3155_v12, %v3152_v9 }
0x195a   :  { %v6622_v24 = vadd.f32 %v3160_v20, %v3157_v23 }
0x195c   :  { %v3167_v25 = vrot.slane %v6622_v24, 4  ;;  %v3420_v47 = vrot.slane %v6622_v24, 6 }
0x195e   :  { %3168 = vrot.lane.b32.xlu0 %v3167_v25, %s5720_s20 }
0x19d0   :  { %v3169_v30 = vpop.permute.xlu0 %3168 }
0x19d1   :  { %5345 = vmatmul.mubr.msk.f32.vlgmr.msra.gmra.mxu0 %vm187_vm4, %v3169_v30  ;;  %5356 = vmatmul.mubr.msk.f32.vlgmr.msra.gmra.mxu1 %vm187_vm4, %v3169_v30 }
0x19d2   :  { %5359 = vmatpush3.msra.mxu0 %v6396_v40  ;;  %5366 = vmatprep.mubr.msk.f32.mxu0 %vm5717_vm1, %v5716_v3 }
0x19d3   :  { %5360 = vmatprep.subr.mxu0 %v5716_v3  ;;  %5370 = vmatpush3.msra.mxu1 %v6363_v60 }
0x19d4   :  { %5361 = vmatpush3.msra.mxu0 %v6405_v44  ;;  %5371 = vmatprep.subr.mxu1 %v5716_v3 }
0x19d5   :  { %5362 = vmatprep.subr.mxu0 %v5716_v3  ;;  %5372 = vmatpush3.msra.mxu1 %v6369_v27 }
0x19d6   :  { %5363 = vmatpush3.msra.mxu0 %v6414_v48  ;;  %5373 = vmatprep.subr.mxu1 %v5716_v3 }
0x19d7   :  { %5364 = vmatprep.subr.mxu0 %v5716_v3  ;;  %5374 = vmatpush3.msra.mxu1 %v6378_v4 }
0x19d8   :  { %5365 = vmatpush3.msra.mxu0 %v6423_v49  ;;  %5375 = vmatprep.subr.mxu1 %v5716_v3 }
0x19d9   :  { %5367 = vmatmul.mubr.msk.f32.vlgmr.msra.gmra.mxu0 %vm187_vm4, %v3169_v30  ;;  %5380 = vmatprep.subr.mxu0 %v5716_v3 }
0x19da   :  { %5381 = vmatpush3.msra.mxu0 %v6441_v54  ;;  %5376 = vmatpush3.msra.mxu1 %v6391_v61 }
0x19db   :  { %5382 = vmatprep.subr.mxu0 %v5716_v3  ;;  %5377 = vmatprep.mubr.msk.f32.mxu1 %vm5717_vm1, %v5716_v3 }
0x19dc   :  { %5383 = vmatpush3.msra.mxu0 %v6452_v26  ;;  %5388 = vmatprep.mubr.msk.f32.mxu0 %vm5717_vm1, %v5716_v3 }
0x19dd   :  { %5384 = vmatprep.subr.mxu0 %v5716_v3  ;;  %5391 = vmatprep.subr.mxu1 %v5716_v3 }
0x19de   :  { %5385 = vmatpush3.msra.mxu0 %v6462_v28 }
0x19df   :  { %5386 = vmatprep.subr.mxu0 %v5716_v3 }
0x19e0   :  { %5387 = vmatpush3.msra.mxu0 %v6470_v59 }
0x19e1   :  { %5402 = vmatprep.subr.mxu0 %v5716_v3 }
0x1a91   :  { %v3238_v32 = vpop.f32.mrf.mxu0  ;;  %v3318_v42 = vpop.f32.mrf.mxu1 }
0x1a92   :  { %v3243_v29 = vrot.slane %v3238_v32, 2  ;;  %v3323_v31 = vrot.slane %v3318_v42, 2 }
0x1a93   :  { %v5346_v33 = vpop.f32.mrf.mxu0  ;;  %v5357_v57 = vpop.f32.mrf.mxu1 }
0x1a94   :  { %v3245_v56 = vadd.f32 %v3243_v29, %v6507_v22  ;;  %3324 = vrot.lane.b32.xlu0 %v3323_v31, %s5719_s1  ;;  %v6712_v29 = vadd.f32 %v6502_v14, %v6518_v34 }
0x1a96   :  { %v4639_v35 = vmul.f32 -1.442695, %v3245_v56 }
0x1a98   :  { %5629 = vpow2.f32 %v4639_v35  ;;  %v6718_v35 = vadd.f32 %v6502_v14, %v6525_v51 }
0x1a99   :  { %v3400_v45 = vpop.f32.mrf.mxu0 }
0x1a9a   :  { %v3401_v41 = vadd.f32 %v3400_v45, %v6513_v38 }
0x1a9b   :  { %v5368_v36 = vpop.f32.mrf.mxu0 }
0x1a9c   :  { %v3405_v18 = vrot.slane %v3401_v41, 2 }
0x1aa5   :  { %v5630_v37 = vpop.eup %5629 }
0x1aa6   :  { %v3249_v39 = vadd.f32 1.0, %v5630_v37 }
0x1aa8   :  { %5631 = vrcp.f32 %v3249_v39 }
0x1ab5   :  { %v5632_v1 = vpop.eup %5631 }
0x1ab6   :  { %v3407_v16 = vmul.f32 %v5632_v1, %v3405_v18 }
0x1ab8   :  { %3409 = vrot.lane.b32.xlu1 %v3407_v16, %s5718_s0 }
0x1b06   :  { %v3325_v8 = vpop.permute.xlu0 %3324 }
0x1b07   :  { %v3327_v11 = vadd.f32 %v3325_v8, %v6528_v52 }
0x1b09   :  { %v4641_v13 = vmul.f32 -1.442695, %v3327_v11 }
0x1b2a   :  { %v3410_v6 = vpop.permute.xlu1 %3409 }
0x1b2b   :  { %v3412_v17 = vadd.f32 %v3410_v6, %v6521_v7 }
0x1b2d   :  { %5633 = vtanh.f32 %v3412_v17 }
0x1b2e   :  { %5635 = vpow2.f32 %v4641_v13 }
0x1b3a   :  { %v5634_v22 = vpop.eup %5633 }
0x1b3b   :  { %3416 = vrot.lane.b32.xlu1 %v5634_v22, %s5720_s20  ;;  %v5636_v43 = vpop.eup %5635 }
0x1b3c   :  { %v3331_v15 = vadd.f32 1.0, %v5636_v43 }
0x1b3e   :  { %5637 = vrcp.f32 %v3331_v15 }
0x1b4b   :  { %v5638_v46 = vpop.eup %5637 }
0x1b4c   :  { %v3414_v50 = vsub.f32 1.0, %v5638_v46  ;;  %v3422_v55 = vmul.f32 %v5638_v46, %v3420_v47 }
0x1bad   :  { %v3417_v53 = vpop.permute.xlu1 %3416 }
0x1bae   :  { %v3419_v63 = vmul.f32 %v3417_v53, %v3414_v50 }
0x1bb0   :  { %v6667_v7 = vadd.f32 %v3422_v55, %v3419_v63 }
0x1bb2   :  { %v3429_v58 = vrot.slane %v6667_v7, 6 }
0x1bb4   :  { %3430 = vrot.lane.b32.xlu0 %v3429_v58, %s5720_s20 }
0x1c26   :  { %v3431_v52 = vpop.permute.xlu0 %3430 }
0x1c27   :  { %5378 = vmatmul.mubr.msk.f32.vlgmr.msra.gmra.mxu1 %vm187_vm4, %v3431_v52  ;;  %5389 = vmatmul.mubr.msk.f32.vlgmr.msra.gmra.mxu0 %vm187_vm4, %v3431_v52 }
0x1c28   :  { %5392 = vmatpush3.msra.mxu1 %v6396_v40  ;;  %5399 = vmatprep.mubr.msk.f32.mxu1 %vm5717_vm1, %v5716_v3 }
0x1c29   :  { %5393 = vmatprep.subr.mxu1 %v5716_v3  ;;  %5403 = vmatpush3.msra.mxu0 %v6363_v60 }
0x1c2a   :  { %5394 = vmatpush3.msra.mxu1 %v6405_v44  ;;  %5404 = vmatprep.subr.mxu0 %v5716_v3 }
0x1c2b   :  { %5395 = vmatprep.subr.mxu1 %v5716_v3  ;;  %5405 = vmatpush3.msra.mxu0 %v6369_v27 }
0x1c2c   :  { %5396 = vmatpush3.msra.mxu1 %v6414_v48  ;;  %5406 = vmatprep.subr.mxu0 %v5716_v3 }
0x1c2d   :  { %5397 = vmatprep.subr.mxu1 %v5716_v3  ;;  %5407 = vmatpush3.msra.mxu0 %v6378_v4 }
0x1c2e   :  { %5398 = vmatpush3.msra.mxu1 %v6423_v49  ;;  %5408 = vmatprep.subr.mxu0 %v5716_v3 }
0x1c2f   :  { %5400 = vmatmul.mubr.msk.f32.vlgmr.msra.gmra.mxu1 %vm187_vm4, %v3431_v52  ;;  %5413 = vmatprep.subr.mxu1 %v5716_v3 }
0x1c30   :  { %5414 = vmatpush3.msra.mxu1 %v6441_v54  ;;  %5409 = vmatpush3.msra.mxu0 %v6391_v61 }
0x1c31   :  { %5415 = vmatprep.subr.mxu1 %v5716_v3  ;;  %5410 = vmatprep.mubr.msk.f32.mxu0 %vm5717_vm1, %v5716_v3 }
0x1c32   :  { %5416 = vmatpush3.msra.mxu1 %v6452_v26  ;;  %5421 = vmatprep.mubr.msk.f32.mxu1 %vm5717_vm1, %v5716_v3 }
0x1c33   :  { %5417 = vmatprep.subr.mxu1 %v5716_v3  ;;  %5424 = vmatprep.subr.mxu0 %v5716_v3 }
0x1c34   :  { %5418 = vmatpush3.msra.mxu1 %v6462_v28 }
0x1c35   :  { %5419 = vmatprep.subr.mxu1 %v5716_v3 }
0x1c36   :  { %5420 = vmatpush3.msra.mxu1 %v6470_v59 }
0x1c37   :  { %5435 = vmatprep.subr.mxu1 %v5716_v3 }
0x1ce7   :  { %v3500_v62 = vpop.f32.mrf.mxu1  ;;  %v3577_v0 = vpop.f32.mrf.mxu0 }
0x1ce8   :  { %v3504_v2 = vadd.f32 %v3500_v62, %v6505_v19  ;;  %3582 = vrot.lane.b32.xlu0 %v3577_v0, %s5719_s1 }
0x1ce9   :  { %v5379_v5 = vpop.f32.mrf.mxu1  ;;  %v5390_v9 = vpop.f32.mrf.mxu0 }
0x1cea   :  { %v4644_v10 = vmul.f32 -1.442695, %v3504_v2 }
0x1cec   :  { %5639 = vpow2.f32 %v4644_v10 }
0x1cef   :  { %v3658_v12 = vpop.f32.mrf.mxu1 }
0x1cf0   :  { %v3659_v30 = vadd.f32 %v3658_v12, %v6513_v38 }
0x1cf1   :  { %v5401_v20 = vpop.f32.mrf.mxu1 }
0x1cf9   :  { %v5640_v23 = vpop.eup %5639 }
0x1cfa   :  { %v3508_v25 = vadd.f32 1.0, %v5640_v23 }
0x1cfc   :  { %5641 = vrcp.f32 %v3508_v25 }
0x1d09   :  { %v5642_v32 = vpop.eup %5641 }
0x1d0a   :  { %v3662_v42 = vmul.f32 %v5642_v32, %v3659_v30 }
0x1d0c   :  { %3664 = vrot.lane.b32.xlu1 %v3662_v42, %s5718_s0 }
0x1d5a   :  { %v3583_v56 = vpop.permute.xlu0 %3582 }
0x1d5b   :  { %v3585_v45 = vadd.f32 %v3583_v56, %v6718_v35 }
0x1d5d   :  { %v4646_v36 = vmul.f32 -1.442695, %v3585_v45 }
0x1d7e   :  { %v3665_v31 = vpop.permute.xlu1 %3664 }
0x1d7f   :  { %v3667_v33 = vadd.f32 %v3665_v31, %v6712_v29 }
0x1d81   :  { %5643 = vtanh.f32 %v3667_v33 }
0x1d82   :  { %5645 = vpow2.f32 %v4646_v36 }
0x1d8e   :  { %v5644_v57 = vpop.eup %5643 }
0x1d8f   :  { %3671 = vrot.lane.b32.xlu1 %v5644_v57, %s5720_s20  ;;  %v5646_v37 = vpop.eup %5645 }
0x1d90   :  { %v3589_v39 = vadd.f32 1.0, %v5646_v37 }
0x1d92   :  { %5647 = vrcp.f32 %v3589_v39 }
0x1d9f   :  { %v5648_v34 = vpop.eup %5647 }
0x1da0   :  { %v3669_v41 = vsub.f32 1.0, %v5648_v34  ;;  %v3676_v1 = vmul.f32 %v5648_v34, %v3429_v58 }
0x1e01   :  { %v3672_v18 = vpop.permute.xlu1 %3671 }
0x1e02   :  { %v3674_v16 = vmul.f32 %v3672_v18, %v3669_v41 }
0x1e04   :  { %v6723_v6 = vadd.f32 %v3676_v1, %v3674_v16 }
0x1e06   :  { %3679 = vrot.lane.b32.xlu0 %v6723_v6, %s5720_s20  ;;  %v3933_v25 = vrot.slane %v6723_v6, 6 }
0x1e78   :  { %v3680_v14 = vpop.permute.xlu0 %3679 }
0x1e79   :  { %3682 = vst.msk [vmem:[#allocation2 + $0x8] sm:$0x3] %vm442_vm3, %v3680_v14  ;;  %5411 = vmatmul.mubr.msk.f32.vlgmr.msra.gmra.mxu0 %vm187_vm4, %v3680_v14  ;;  %5422 = vmatmul.mubr.msk.f32.vlgmr.msra.gmra.mxu1 %vm187_vm4, %v3680_v14 }
0x1e7a   :  { %5425 = vmatpush3.msra.mxu0 %v6396_v40  ;;  %5432 = vmatprep.mubr.msk.f32.mxu0 %vm5717_vm1, %v5716_v3 }
0x1e7b   :  { %5426 = vmatprep.subr.mxu0 %v5716_v3  ;;  %5436 = vmatpush3.msra.mxu1 %v6363_v60 }
0x1e7c   :  { %5427 = vmatpush3.msra.mxu0 %v6405_v44  ;;  %5437 = vmatprep.subr.mxu1 %v5716_v3 }
0x1e7d   :  { %5428 = vmatprep.subr.mxu0 %v5716_v3  ;;  %5438 = vmatpush3.msra.mxu1 %v6369_v27 }
0x1e7e   :  { %5429 = vmatpush3.msra.mxu0 %v6414_v48  ;;  %5439 = vmatprep.subr.mxu1 %v5716_v3 }
0x1e7f   :  { %5430 = vmatprep.subr.mxu0 %v5716_v3  ;;  %5440 = vmatpush3.msra.mxu1 %v6378_v4 }
0x1e80   :  { %5431 = vmatpush3.msra.mxu0 %v6423_v49  ;;  %5441 = vmatprep.subr.mxu1 %v5716_v3 }
0x1e81   :  { %5433 = vmatmul.mubr.msk.f32.vlgmr.msra.gmra.mxu0 %vm187_vm4, %v3680_v14  ;;  %5446 = vmatprep.subr.mxu0 %v5716_v3 }
0x1e82   :  { %5447 = vmatpush3.msra.mxu0 %v6441_v54  ;;  %5442 = vmatpush3.msra.mxu1 %v6391_v61 }
0x1e83   :  { %5448 = vmatprep.subr.mxu0 %v5716_v3  ;;  %5443 = vmatprep.mubr.msk.f32.mxu1 %vm5717_vm1, %v5716_v3 }
0x1e84   :  { %5449 = vmatpush3.msra.mxu0 %v6452_v26  ;;  %5454 = vmatprep.mubr.msk.f32.mxu0 %vm5717_vm1, %v5716_v3 }
0x1e85   :  { %5450 = vmatprep.subr.mxu0 %v5716_v3  ;;  %5457 = vmatprep.subr.mxu1 %v5716_v3 }
0x1e86   :  { %5451 = vmatpush3.msra.mxu0 %v6462_v28 }
0x1e87   :  { %5452 = vmatprep.subr.mxu0 %v5716_v3 }
0x1e88   :  { %5453 = vmatpush3.msra.mxu0 %v6470_v59 }
0x1e89   :  { %5468 = vmatprep.subr.mxu0 %v5716_v3 }
0x1f39   :  { %v3751_v51 = vpop.f32.mrf.mxu0  ;;  %v3831_v17 = vpop.f32.mrf.mxu1 }
0x1f3a   :  { %v3756_v22 = vrot.slane %v3751_v51, 6  ;;  %v3836_v8 = vrot.slane %v3831_v17, 6 }
0x1f3b   :  { %v5412_v11 = vpop.f32.mrf.mxu0  ;;  %v5423_v13 = vpop.f32.mrf.mxu1 }
0x1f3c   :  { %v3758_v43 = vadd.f32 %v3756_v22, %v6505_v19  ;;  %3837 = vrot.lane.b32.xlu0 %v3836_v8, %s5719_s1 }
0x1f3e   :  { %v4649_v15 = vmul.f32 -1.442695, %v3758_v43 }
0x1f40   :  { %5649 = vpow2.f32 %v4649_v15 }
0x1f41   :  { %v3913_v46 = vpop.f32.mrf.mxu0 }
0x1f42   :  { %v3914_v63 = vadd.f32 %v3913_v46, %v6513_v38 }
0x1f43   :  { %v5434_v47 = vpop.f32.mrf.mxu0 }
0x1f44   :  { %v3918_v55 = vrot.slane %v3914_v63, 6  ;;  %v5692_v63 = vld [vmem:[%s6900_s9 + $0x8] sm:$0xff] }
0x1f4d   :  { %v5650_v50 = vpop.eup %5649 }
0x1f4e   :  { %v3762_v53 = vadd.f32 1.0, %v5650_v50  ;;  %v5690_v50 = vld [vmem:[%s6900_s9 + $0x18] sm:$0xff] }
0x1f50   :  { %5651 = vrcp.f32 %v3762_v53  ;;  %v5691_v53 = vld [vmem:[%s6900_s9 + $0x10] sm:$0xff] }
0x1f5d   :  { %v5652_v58 = vpop.eup %5651 }
0x1f5e   :  { %v3920_v52 = vmul.f32 %v5652_v58, %v3918_v55  ;;  %v5693_v55 = vld [vmem:[%s6900_s9] sm:$0xff] }
0x1f60   :  { %3922 = vrot.lane.b32.xlu1 %v3920_v52, %s5718_s0 }
0x1fae   :  { %v3838_v5 = vpop.permute.xlu0 %3837 }
0x1faf   :  { %v3840_v9 = vadd.f32 %v3838_v5, %v6718_v35 }
0x1fb1   :  { %v4651_v10 = vmul.f32 -1.442695, %v3840_v9 }
0x1fd2   :  { %v3923_v62 = vpop.permute.xlu1 %3922 }
0x1fd3   :  { %v3925_v0 = vadd.f32 %v3923_v62, %v6712_v29 }
0x1fd5   :  { %5653 = vtanh.f32 %v3925_v0 }
0x1fd6   :  { %5655 = vpow2.f32 %v4651_v10 }
0x1fe2   :  { %v5654_v2 = vpop.eup %5653 }
0x1fe3   :  { %3929 = vrot.lane.b32.xlu1 %v5654_v2, %s5720_s20  ;;  %v5656_v12 = vpop.eup %5655 }
0x1fe4   :  { %v3844_v20 = vadd.f32 1.0, %v5656_v12 }
0x1fe6   :  { %5657 = vrcp.f32 %v3844_v20 }
0x1ff3   :  { %v5658_v23 = vpop.eup %5657 }
0x1ff4   :  { %v3927_v30 = vsub.f32 1.0, %v5658_v23  ;;  %v3935_v31 = vmul.f32 %v5658_v23, %v3933_v25 }
0x2055   :  { %v3930_v32 = vpop.permute.xlu1 %3929 }
0x2056   :  { %v3932_v42 = vmul.f32 %v3930_v32, %v3927_v30 }
0x2058   :  { %v6769_v33 = vadd.f32 %v3935_v31, %v3932_v42 }
0x205a   :  { %v3942_v57 = vrot.slane %v6769_v33, 2  ;;  %v4195_v8 = vrot.slane %v6769_v33, 6 }
0x205c   :  { %3943 = vrot.lane.b32.xlu0 %v3942_v57, %s5720_s20 }
0x20ce   :  { %v3944_v56 = vpop.permute.xlu0 %3943 }
0x20cf   :  { %5444 = vmatmul.mubr.msk.f32.vlgmr.msra.gmra.mxu1 %vm187_vm4, %v3944_v56  ;;  %5455 = vmatmul.mubr.msk.f32.vlgmr.msra.gmra.mxu0 %vm187_vm4, %v3944_v56 }
0x20d0   :  { %5458 = vmatpush3.msra.mxu1 %v6396_v40  ;;  %5465 = vmatprep.mubr.msk.f32.mxu1 %vm5717_vm1, %v5716_v3 }
0x20d1   :  { %5459 = vmatprep.subr.mxu1 %v5716_v3  ;;  %5469 = vmatpush3.msra.mxu0 %v6363_v60 }
0x20d2   :  { %5460 = vmatpush3.msra.mxu1 %v6405_v44  ;;  %5470 = vmatprep.subr.mxu0 %v5716_v3 }
0x20d3   :  { %5461 = vmatprep.subr.mxu1 %v5716_v3  ;;  %5471 = vmatpush3.msra.mxu0 %v6369_v27 }
0x20d4   :  { %5462 = vmatpush3.msra.mxu1 %v6414_v48  ;;  %5472 = vmatprep.subr.mxu0 %v5716_v3 }
0x20d5   :  { %5463 = vmatprep.subr.mxu1 %v5716_v3  ;;  %5473 = vmatpush3.msra.mxu0 %v6378_v4 }
0x20d6   :  { %5464 = vmatpush3.msra.mxu1 %v6423_v49  ;;  %5474 = vmatprep.subr.mxu0 %v5716_v3 }
0x20d7   :  { %5466 = vmatmul.mubr.msk.f32.vlgmr.msra.gmra.mxu1 %vm187_vm4, %v3944_v56  ;;  %5479 = vmatprep.subr.mxu1 %v5716_v3 }
0x20d8   :  { %5480 = vmatpush3.msra.mxu1 %v6441_v54  ;;  %5475 = vmatpush3.msra.mxu0 %v6391_v61 }
0x20d9   :  { %5481 = vmatprep.subr.mxu1 %v5716_v3  ;;  %5476 = vmatprep.mubr.msk.f32.mxu0 %vm5717_vm1, %v5716_v3 }
0x20da   :  { %5482 = vmatpush3.msra.mxu1 %v6452_v26  ;;  %5487 = vmatprep.mubr.msk.f32.mxu1 %vm5717_vm1, %v5716_v3 }
0x20db   :  { %5483 = vmatprep.subr.mxu1 %v5716_v3  ;;  %5490 = vmatprep.subr.mxu0 %v5716_v3 }
0x20dc   :  { %5484 = vmatpush3.msra.mxu1 %v6462_v28 }
0x20dd   :  { %5485 = vmatprep.subr.mxu1 %v5716_v3 }
0x20de   :  { %5486 = vmatpush3.msra.mxu1 %v6470_v59 }
0x218f   :  { %v4013_v60 = vpop.f32.mrf.mxu1  ;;  %v4093_v27 = vpop.f32.mrf.mxu0 }
0x2190   :  { %v4018_v4 = vrot.slane %v4013_v60, 4  ;;  %v4098_v61 = vrot.slane %v4093_v27, 4 }
0x2191   :  { %v5445_v40 = vpop.f32.mrf.mxu1  ;;  %v5456_v44 = vpop.f32.mrf.mxu0 }
0x2192   :  { %v4020_v48 = vadd.f32 %v4018_v4, %v6505_v19  ;;  %4099 = vrot.lane.b32.xlu0 %v4098_v61, %s5719_s1  ;;  %v4472_v40 = vld [vmem:[%s6902_s11 + $0x10] sm:$0xff] }
0x2194   :  { %v4654_v49 = vmul.f32 -1.442695, %v4020_v48 }
0x2196   :  { %5659 = vpow2.f32 %v4654_v49 }
0x2197   :  { %v4175_v54 = vpop.f32.mrf.mxu1 }
0x2198   :  { %v4176_v36 = vadd.f32 %v4175_v54, %v6513_v38 }
0x2199   :  { %v5467_v26 = vpop.f32.mrf.mxu1 }
0x219a   :  { %v4180_v59 = vrot.slane %v4176_v36, 4 }
0x21a3   :  { %v5660_v45 = vpop.eup %5659 }
0x21a4   :  { %v4024_v28 = vadd.f32 1.0, %v5660_v45 }
0x21a6   :  { %5661 = vrcp.f32 %v4024_v28 }
0x21b3   :  { %v5662_v37 = vpop.eup %5661 }
0x21b4   :  { %v4182_v39 = vmul.f32 %v5662_v37, %v4180_v59 }
0x21b6   :  { %4184 = vrot.lane.b32.xlu1 %v4182_v39, %s5718_s0 }
0x2204   :  { %v4100_v1 = vpop.permute.xlu0 %4099 }
0x2205   :  { %v4102_v16 = vadd.f32 %v4100_v1, %v6718_v35 }
0x2207   :  { %v4656_v6 = vmul.f32 -1.442695, %v4102_v16 }
0x2228   :  { %v4185_v34 = vpop.permute.xlu1 %4184 }
0x2229   :  { %v4187_v41 = vadd.f32 %v4185_v34, %v6712_v29 }
0x222b   :  { %5663 = vtanh.f32 %v4187_v41 }
0x222c   :  { %5665 = vpow2.f32 %v4656_v6 }
0x2238   :  { %v5664_v18 = vpop.eup %5663 }
0x2239   :  { %4191 = vrot.lane.b32.xlu1 %v5664_v18, %s5720_s20  ;;  %v5666_v14 = vpop.eup %5665 }
0x223a   :  { %v4106_v51 = vadd.f32 1.0, %v5666_v14 }
0x223c   :  { %5667 = vrcp.f32 %v4106_v51 }
0x2249   :  { %v5668_v17 = vpop.eup %5667 }
0x224a   :  { %v4189_v22 = vsub.f32 1.0, %v5668_v17  ;;  %v4197_v13 = vmul.f32 %v5668_v17, %v4195_v8 }
0x22ab   :  { %v4192_v11 = vpop.permute.xlu1 %4191 }
0x22ac   :  { %v4194_v43 = vmul.f32 %v4192_v11, %v4189_v22 }
0x22ae   :  { %v6813_v15 = vadd.f32 %v4197_v13, %v4194_v43 }
0x22b0   :  { %v4204_v46 = vrot.slane %v6813_v15, 4  ;;  %v4457_v44 = vrot.slane %v6813_v15, 6 }
0x22b2   :  { %4205 = vrot.lane.b32.xlu0 %v4204_v46, %s5720_s20 }
0x2324   :  { %v4206_v47 = vpop.permute.xlu0 %4205 }
0x2325   :  { %5477 = vmatmul.mubr.msk.f32.vlgmr.msra.gmra.mxu0 %vm187_vm4, %v4206_v47  ;;  %5488 = vmatmul.mubr.msk.f32.vlgmr.msra.gmra.mxu1 %vm187_vm4, %v4206_v47 }
0x2326   :  { %5491 = vmatpush3.msra.mxu0 %v5690_v50  ;;  %5498 = vmatprep.mubr.msk.f32.mxu0 %vm5717_vm1, %v5716_v3 }
0x2327   :  { %5492 = vmatprep.subr.mxu0 %v5716_v3 }
0x2328   :  { %5493 = vmatpush3.msra.mxu0 %v5691_v53 }
0x2329   :  { %5494 = vmatprep.subr.mxu0 %v5716_v3 }
0x232a   :  { %5495 = vmatpush3.msra.mxu0 %v5692_v63 }
0x232b   :  { %5496 = vmatprep.subr.mxu0 %v5716_v3 }
0x232c   :  { %5497 = vmatpush3.msra.mxu0 %v5693_v55 }
0x232d   :  { %5499 = vmatmul.mubr.msk.f32.vlgmr.msra.gmra.mxu0 %vm187_vm4, %v4206_v47 }
0x23e5   :  { %v4275_v58 = vpop.f32.mrf.mxu0  ;;  %v4355_v52 = vpop.f32.mrf.mxu1 }
0x23e6   :  { %v4280_v62 = vrot.slane %v4275_v58, 2  ;;  %v4360_v0 = vrot.slane %v4355_v52, 2 }
0x23e7   :  { %v5478_v2 = vpop.f32.mrf.mxu0  ;;  %v5489_v5 = vpop.f32.mrf.mxu1 }
0x23e8   :  { %v4282_v9 = vadd.f32 %v4280_v62, %v6505_v19  ;;  %4361 = vrot.lane.b32.xlu0 %v4360_v0, %s5719_s1 }
0x23ea   :  { %v4659_v10 = vmul.f32 -1.442695, %v4282_v9 }
0x23ec   :  { %5669 = vpow2.f32 %v4659_v10  ;;  %2901 = vrot.lane.b32.xlu0 %v6577_v21, %s5720_s20 }
0x23ed   :  { %v4437_v3 = vpop.f32.mrf.mxu0 }
0x23ee   :  { %v4438_v19 = vadd.f32 %v4437_v3, %v6513_v38 }
0x23ef   :  { %v5500_v12 = vpop.f32.mrf.mxu0 }
0x23f0   :  { %3425 = vrot.lane.b32.xlu0 %v6667_v7, %s5720_s20  ;;  %v4442_v25 = vrot.slane %v4438_v19, 2 }
0x23f4   :  { %4200 = vrot.lane.b32.xlu0 %v6813_v15, %s5720_s20 }
0x23f9   :  { %v5670_v20 = vpop.eup %5669 }
0x23fa   :  { %v4286_v23 = vadd.f32 1.0, %v5670_v20 }
0x23fc   :  { %5671 = vrcp.f32 %v4286_v23 }
0x2409   :  { %v5672_v30 = vpop.eup %5671 }
0x240a   :  { %v4444_v32 = vmul.f32 %v5672_v30, %v4442_v25 }
0x240c   :  { %4446 = vrot.lane.b32.xlu1 %v4444_v32, %s5718_s0 }
0x245a   :  { %v4362_v42 = vpop.permute.xlu0 %4361 }
0x245b   :  { %v4364_v60 = vadd.f32 %v4362_v42, %v6718_v35 }
0x245d   :  { %v4661_v27 = vmul.f32 -1.442695, %v4364_v60 }
0x245e   :  { %v2902_v21 = vpop.permute.xlu0 %2901 }
0x245f   :  { %2904 = vst.msk [vmem:[#allocation2] sm:$0xc] %vm702_vm5, %v2902_v21 }
0x2462   :  { %v3426_v31 = vpop.permute.xlu0 %3425 }
0x2463   :  { %3428 = vst.msk [vmem:[#allocation2] sm:$0xc0] %vm1228_vm6, %v3426_v31 }
0x2466   :  { %v4201_v7 = vpop.permute.xlu0 %4200 }
0x2467   :  { %4203 = vst.msk [vmem:[#allocation2 + $0x8] sm:$0x30] %vm965_vm7, %v4201_v7 }
0x247e   :  { %v4447_v57 = vpop.permute.xlu1 %4446 }
0x247f   :  { %v4449_v56 = vadd.f32 %v4447_v57, %v6712_v29  ;;  %v4473_v29 = vld [vmem:[%s6902_s11 + $0x18] sm:$0xff] }
0x2480   :  { %5501 = vmatprep.subr.mxu1 %v4473_v29 }
0x2481   :  { %5673 = vtanh.f32 %v4449_v56  ;;  %5502 = vmatpush3.msra.mxu1 %v4473_v29 }
0x2482   :  { %5675 = vpow2.f32 %v4661_v27  ;;  %5503 = vmatprep.subr.mxu1 %v4472_v40 }
0x2483   :  { %5504 = vmatpush3.msra.mxu1 %v4472_v40 }
0x248e   :  { %v5674_v38 = vpop.eup %5673 }
0x248f   :  { %4453 = vrot.lane.b32.xlu1 %v5674_v38, %s5720_s20  ;;  %v5676_v4 = vpop.eup %5675 }
0x2490   :  { %v4368_v61 = vadd.f32 1.0, %v5676_v4 }
0x2492   :  { %5677 = vrcp.f32 %v4368_v61 }
0x2493   :  { %3163 = vrot.lane.b32.xlu1 %v6622_v24, %s5720_s20  ;;  %v4471_v24 = vld [vmem:[%s6902_s11 + $0x8] sm:$0xff] }
0x2494   :  { %5505 = vmatprep.subr.mxu1 %v4471_v24 }
0x2495   :  { %5506 = vmatpush3.msra.mxu1 %v4471_v24 }
0x2497   :  { %3938 = vrot.lane.b32.xlu1 %v6769_v33, %s5720_s20  ;;  %v4470_v33 = vld [vmem:[%s6902_s11] sm:$0xff]  ;;  %s5721_s11 = smov [#allocation3]  }
0x2498   :  { %5507 = vmatprep.subr.mxu1 %v4470_v33  ;;  %s4571_s28 = sshll.u32 %s5721_s11, 4  ;;  %s4572_s28 = int_to_ptr.vmem [resolvable:$true] %s4571_s28 }
0x2499   :  { %5508 = vmatpush3.msra.mxu1 %v4470_v33  ;;  %s5694_s29 = scalar_lea.vmem %s4572_s28, 64  ;;  %p5699_p1 = scmp.lt.s32.totalorder %s4572_s28, %s4572_s28 }
0x249a   :  { %p5695_p0 = scmp.ne.s32.totalorder %s4572_s28, %s5694_s29  ;;  %p5700_p2 = scmp.lt.s32.totalorder %s5694_s29, %s5694_s29 }
0x249c   :  { %p5701_p3 = por %p5700_p2, %p5699_p1 }
0x249e   :  { %p5702_p4 = pnand %p5701_p3, %p5695_p0 }
0x249f   :  { %v5678_v35 = vpop.eup %5677 }
0x24a0   :  { %v4451_v48 = vsub.f32 1.0, %v5678_v35  ;;  %v4459_v26 = vmul.f32 %v5678_v35, %v4457_v44 }
0x2501   :  { %v4454_v49 = vpop.permute.xlu1 %4453 }
0x2502   :  { %v4456_v54 = vmul.f32 %v4454_v49, %v4451_v48 }
0x2504   :  { %v4460_v45 = vadd.f32 %v4459_v26, %v4456_v54 }
0x2505   :  { %v3164_v28 = vpop.permute.xlu1 %3163 }
0x2506   :  { %3166 = vst.msk [vmem:[#allocation2] sm:$0x30] %vm965_vm7, %v3164_v28  ;;  %4462 = vrot.lane.b32.xlu1 %v4460_v45, %s5720_s20 }
0x2509   :  { %v3939_v36 = vpop.permute.xlu1 %3938 }
0x250a   :  { %3941 = vst.msk [vmem:[#allocation2 + $0x8] sm:$0xc] %vm702_vm5, %v3939_v36 }
0x250d   :  { %v4468_v59 = vld [vmem:[#allocation2] sm:$0xff] }
0x250e   :  { %5509 = vmatprep.mubr.msk.f32.mxu1 %vm187_vm4, %v4468_v59 }
0x2578   :  { %v4463_v37 = vpop.permute.xlu1 %4462 }
0x2579   :  { %4465 = vst.msk [vmem:[#allocation2 + $0x8] sm:$0xc0] %vm1228_vm6, %v4463_v37  ;;  %4467 = vst.msk [vmem:[#allocation3 - $0x4] sm:$0xc0] %vm1228_vm6, %v4463_v37 }
0x2580   :  { %v4469_v39 = vld [vmem:[#allocation2 + $0x8] sm:$0xff] }
0x2581   :  { %5510 = vmatmul.mubr.msk.f32.vlgmr.msra.gmra.mxu1 %vm187_vm4, %v4469_v39 }
0x2582   :  { %5705 = shalt.err (!%p5702_p4)
}
0x2583   :  { %s5722_s20 = smov 2   ;;  %v4663_v34 = vld [vmem:[%s6903_s12] ss:$0 sm:$0xff] }
0x2584   :  { %4577 = dma.vmem_to_hbm [thread:$0]  %s4572_s28, 64, %s6905_s14, [#allocation4], %s5719_s1, %s5719_s1, %s5722_s20  }
0x2641   :  { %v5511_v41 = vpop.f32.mrf.mxu1 }
0x2642   :  { %v4559_v18 = vadd.f32 %v5511_v41, %v4663_v34 }
0x2643   :  { %v4553_v1 = vpop.f32.mrf.mxu1 }
0x2644   :  { %4563 = vst [vmem:[%s6904_s13 + $0x8] sm:$0xff] %v4559_v18  ;;  %v4554_v16 = vadd.f32 %v4663_v34, %v4553_v1 }
0x2646   :  { %4562 = vst [vmem:[%s6904_s13] sm:$0xff] %v4554_v16 }
0x2647   :  { %5714 = dma.done.wait [#allocation4], 64  }
0x2648   :  { %5715 = vsyncadd [#allocation4], 4294967232 }
0x2649   :  { %4583 = vsyncpa [#allocation4], 1 }

</bundles_post_ra>
